<compile_context>
chip_gen: v5e
topology: v5e:2x2
jax: 0.10.0
libtpu: 0.0.40
codegen_flags: <defaults>
</compile_context>

<pallas_src>
import jax
import jax.numpy as jnp
from jax.experimental import pallas as pl
from jax.experimental.pallas import tpu as pltpu

D_MODEL = 768
D_HIDDEN = 256
C_PAD_MIN = 128      # lane-dense class-dim padding
TILE_N = 256         # row tile: multiple of 256 (v6e/v7x MXU), 128-aligned for v5e


def grade_head_kernel(x_ref, w1_ref, b1_ref, w2_ref, b2_ref, o_ref):
    """Fused scoring head on one row tile: o = relu(x @ w1 + b1) @ w2 + b2."""
    # First matmul: f32 accumulation on the MXU regardless of input dtype.
    h = jnp.dot(x_ref[...], w1_ref[...], preferred_element_type=jnp.float32)
    h = jnp.maximum(h + b1_ref[...], 0.0)                      # bias + ReLU in f32
    # Second matmul: feed h in the weight dtype (bf16 path stays bf16 on MXU).
    s = jnp.dot(h.astype(w2_ref.dtype), w2_ref[...],
                preferred_element_type=jnp.float32)
    o_ref[...] = (s + b2_ref[...]).astype(o_ref.dtype)


def grade_head(sep_embedding, w1, b1, w2, b2, *, compute_dtype=jnp.float32):
    """Apply the GRADE scoring head via a blocked Pallas call.

    sep_embedding: [N, 768]; w1: [768, 256]; b1: [256]; w2: [256, C]; b2: [C]
    returns: [N, C] float32
    """
    n, d_in = sep_embedding.shape
    d_hidden = w1.shape[1]
    n_classes = w2.shape[1]

    # --- Lane-dense class dim: pad to a multiple of 128 with zero columns so
    # the output store is a full-lane vst and the final slice stays exact.
    c_pad = max(C_PAD_MIN, ((n_classes + 127) // 128) * 128)
    w2p = jnp.zeros((d_hidden, c_pad), w2.dtype).at[:, :n_classes].set(w2)
    b2p = jnp.zeros((1, c_pad), jnp.float32).at[0, :n_classes].set(b2)
    b1p = b1.reshape(1, d_hidden).astype(jnp.float32)

    # --- Row tiling: pad N to a multiple of TILE_N for a clean blocked grid.
    n_pad = ((n + TILE_N - 1) // TILE_N) * TILE_N
    x = sep_embedding.astype(compute_dtype)
    if n_pad != n:
        x = jnp.pad(x, ((0, n_pad - n), (0, 0)))
    w1c = w1.astype(compute_dtype)
    w2c = w2p.astype(compute_dtype)

    grid = (n_pad // TILE_N,)
    flops = 2 * n_pad * (d_in * d_hidden + d_hidden * c_pad)
    bytes_accessed = (x.size * x.dtype.itemsize
                      + w1c.size * w1c.dtype.itemsize
                      + w2c.size * w2c.dtype.itemsize
                      + b1p.size * 4 + b2p.size * 4
                      + n_pad * c_pad * 4)

    out = pl.pallas_call(
        grade_head_kernel,
        out_shape=jax.ShapeDtypeStruct((n_pad, c_pad), jnp.float32),
        grid_spec=pltpu.PrefetchScalarGridSpec(
            num_scalar_prefetch=0,
            grid=grid,
            in_specs=[
                pl.BlockSpec((TILE_N, d_in), lambda i: (i, 0)),     # x: streamed, double-buffered
                pl.BlockSpec((d_in, d_hidden), lambda i: (0, 0)),   # w1: VMEM-resident
                pl.BlockSpec((1, d_hidden), lambda i: (0, 0)),      # b1: VMEM-resident
                pl.BlockSpec((d_hidden, c_pad), lambda i: (0, 0)),  # w2: VMEM-resident
                pl.BlockSpec((1, c_pad), lambda i: (0, 0)),         # b2: VMEM-resident
            ],
            out_specs=pl.BlockSpec((TILE_N, c_pad), lambda i: (i, 0)),
        ),
        compiler_params=pltpu.CompilerParams(
            dimension_semantics=("parallel",),   # shard row tiles across v7x's 2 TCs
        ),
        cost_estimate=pl.CostEstimate(
            flops=flops, transcendentals=0, bytes_accessed=bytes_accessed),
    )(x, w1c, b1p, w2c, b2p)
    return out[:n, :n_classes]


def reference_head(sep_embedding, w1, b1, w2, b2):
    h = jnp.maximum(sep_embedding @ w1 + b1, 0.0)
    return h @ w2 + b2


if __name__ == "__main__":
    key = jax.random.PRNGKey(0)

    # Model hyper-params (mirrors GRADE_model.__init__).
    WINDOWSIZE = 5          # utterances per window -> SEP tokens per window
    NUMCLASSES = 5          # `level`

    # Small synthetic "batch": 2 windows, seq len 40 after tokenization.
    batch = 2
    seq_len = 40

    k_w1, k_b1, k_w2, k_b2, k_hid = jax.random.split(key, 5)

    # Deterministic parameter init (torch Linear-ish uniform fan-in scaling).
    lim1 = 1.0 / jnp.sqrt(D_MODEL)
    w1 = jax.random.uniform(k_w1, (D_MODEL, D_HIDDEN), jnp.float32, -lim1, lim1)
    b1 = jax.random.uniform(k_b1, (D_HIDDEN,), jnp.float32, -lim1, lim1)
    lim2 = 1.0 / jnp.sqrt(D_HIDDEN)
    w2 = jax.random.uniform(k_w2, (D_HIDDEN, NUMCLASSES), jnp.float32, -lim2, lim2)
    b2 = jax.random.uniform(k_b2, (NUMCLASSES,), jnp.float32, -lim2, lim2)

    # TODO(synk): tokenizer + pretrained BERT encoder are external pretrained
    # components; simulate `last_hidden_state` and the [SEP] positions instead.
    last_hidden_state = jax.random.normal(k_hid, (batch, seq_len, D_MODEL),
                                          jnp.float32)
    # Each window contributes WINDOWSIZE [SEP] tokens at fixed positions.
    sep_positions = jnp.arange(WINDOWSIZE) * 7 + 5            # [5, 12, 19, 26, 33]

    # Gather [SEP] embeddings with jit-safe integer indices (static shape),
    # replacing the data-dependent boolean-mask gather of the original code.
    flat_idx = (jnp.arange(batch)[:, None] * seq_len + sep_positions[None, :]
                ).reshape(-1)                                  # [batch * WINDOWSIZE]
    sep_embedding = jnp.take(last_hidden_state.reshape(-1, D_MODEL),
                             flat_idx, axis=0)                 # [N, 768]
    # TODO(synk): for production N, fuse this gather into the kernel via
    # PrefetchScalarGridSpec scalar-prefetched row indices to avoid one extra
    # HBM round-trip of the gathered embeddings.

    ref = reference_head(sep_embedding, w1, b1, w2, b2)

    # f32 path (tight check).
    scores = grade_head(sep_embedding, w1, b1, w2, b2, compute_dtype=jnp.float32)
    scores = jax.block_until_ready(scores)
    assert scores.shape == (batch * WINDOWSIZE, NUMCLASSES), scores.shape
    assert jnp.allclose(scores, ref, atol=1e-4, rtol=1e-4)

    # bf16 compute path (f32 accumulation) — the bandwidth-optimized variant.
    scores_bf16 = grade_head(sep_embedding, w1, b1, w2, b2,
                             compute_dtype=jnp.bfloat16)
    scores_bf16 = jax.block_until_ready(scores_bf16)
    assert scores_bf16.shape == (batch * WINDOWSIZE, NUMCLASSES)
    assert jnp.allclose(scores_bf16, ref, atol=5e-2, rtol=5e-2)

    print("KERNEL_OK")
</pallas_src>

<mosaic_0001>
module attributes {stable_mosaic.version = 11 : i64} {
  func.func @grade_head_kernel(%arg0: i32, %arg1: memref<256x768xf32, #tpu.memory_space<vmem>>, %arg2: memref<768x256xf32, #tpu.memory_space<vmem>>, %arg3: memref<1x256xf32, #tpu.memory_space<vmem>>, %arg4: memref<256x128xf32, #tpu.memory_space<vmem>>, %arg5: memref<1x128xf32, #tpu.memory_space<vmem>>, %arg6: memref<256x128xf32, #tpu.memory_space<vmem>>) attributes {dimension_semantics = [#tpu.dimension_semantics<parallel>], iteration_bounds = array<i64: 1>, scalar_prefetch = 0 : i64, scratch_operands = 0 : i64, tpu.core_type = #tpu.core_type<tc>, window_params = [{transform_indices = @transform_0, window_bounds = array<i64: 256, 768>}, {pipeline_mode = #tpu.pipeline_mode<synchronous>, transform_indices = @transform_1, window_bounds = array<i64: 768, 256>}, {pipeline_mode = #tpu.pipeline_mode<synchronous>, transform_indices = @transform_2, window_bounds = array<i64: 1, 256>}, {pipeline_mode = #tpu.pipeline_mode<synchronous>, transform_indices = @transform_3, window_bounds = array<i64: 256, 128>}, {pipeline_mode = #tpu.pipeline_mode<synchronous>, transform_indices = @transform_4, window_bounds = array<i64: 1, 128>}, {transform_indices = @transform_5, window_bounds = array<i64: 256, 128>}]} {
    %c0 = arith.constant 0 : index
    %c0_0 = arith.constant 0 : index
    %0 = vector.load %arg1[%c0, %c0_0] : memref<256x768xf32, #tpu.memory_space<vmem>>, vector<256x768xf32>
    %c0_1 = arith.constant 0 : index
    %c0_2 = arith.constant 0 : index
    %1 = vector.load %arg2[%c0_1, %c0_2] : memref<768x256xf32, #tpu.memory_space<vmem>>, vector<768x256xf32>
    %cst = arith.constant dense<0.000000e+00> : vector<256x256xf32>
    %2 = tpu.matmul %0, %1, %cst {dimension_numbers = #tpu.dot_dimension_numbers<[1], [0], [0], [1], [0, 0, 1, 1], [], []>} : vector<256x768xf32>, vector<768x256xf32>, vector<256x256xf32> -> vector<256x256xf32>
    %c0_3 = arith.constant 0 : index
    %c0_4 = arith.constant 0 : index
    %3 = vector.load %arg3[%c0_3, %c0_4] : memref<1x256xf32, #tpu.memory_space<vmem>>, vector<1x256xf32>
    %4 = vector.broadcast %3 : vector<1x256xf32> to vector<256x256xf32>
    %5 = arith.addf %2, %4 : vector<256x256xf32>
    %cst_5 = arith.constant 0.000000e+00 : f32
    %6 = vector.broadcast %cst_5 : f32 to vector<256x256xf32>
    %7 = arith.maximumf %5, %6 : vector<256x256xf32>
    %c0_6 = arith.constant 0 : index
    %c0_7 = arith.constant 0 : index
    %8 = vector.load %arg4[%c0_6, %c0_7] : memref<256x128xf32, #tpu.memory_space<vmem>>, vector<256x128xf32>
    %cst_8 = arith.constant dense<0.000000e+00> : vector<256x128xf32>
    %9 = tpu.matmul %7, %8, %cst_8 {dimension_numbers = #tpu.dot_dimension_numbers<[1], [0], [0], [1], [0, 0, 1, 1], [], []>} : vector<256x256xf32>, vector<256x128xf32>, vector<256x128xf32> -> vector<256x128xf32>
    %c0_9 = arith.constant 0 : index
    %c0_10 = arith.constant 0 : index
    %10 = vector.load %arg5[%c0_9, %c0_10] : memref<1x128xf32, #tpu.memory_space<vmem>>, vector<1x128xf32>
    %11 = vector.broadcast %10 : vector<1x128xf32> to vector<256x128xf32>
    %12 = arith.addf %9, %11 : vector<256x128xf32>
    %c0_11 = arith.constant 0 : index
    %c0_12 = arith.constant 0 : index
    %13 = vector.load %arg6[%c0_11, %c0_12] : memref<256x128xf32, #tpu.memory_space<vmem>>, vector<256x128xf32>
    tpu.vector_store %arg6[%c0_11, %c0_12], %12 {strides = array<i32>} : memref<256x128xf32, #tpu.memory_space<vmem>>, vector<256x128xf32>,
    return
  }
  func.func @transform_0(%arg0: i32) -> (i32, i32) {
    %c0_i32 = arith.constant 0 : i32
    %c0_i32_0 = arith.constant 0 : i32
    return %arg0, %c0_i32 : i32, i32
  }
  func.func @transform_1(%arg0: i32) -> (i32, i32) {
    %c0_i32 = arith.constant 0 : i32
    %c0_i32_0 = arith.constant 0 : i32
    %c0_i32_1 = arith.constant 0 : i32
    return %c0_i32, %c0_i32_0 : i32, i32
  }
  func.func @transform_2(%arg0: i32) -> (i32, i32) {
    %c0_i32 = arith.constant 0 : i32
    %c0_i32_0 = arith.constant 0 : i32
    %c0_i32_1 = arith.constant 0 : i32
    return %c0_i32, %c0_i32_0 : i32, i32
  }
  func.func @transform_3(%arg0: i32) -> (i32, i32) {
    %c0_i32 = arith.constant 0 : i32
    %c0_i32_0 = arith.constant 0 : i32
    %c0_i32_1 = arith.constant 0 : i32
    return %c0_i32, %c0_i32_0 : i32, i32
  }
  func.func @transform_4(%arg0: i32) -> (i32, i32) {
    %c0_i32 = arith.constant 0 : i32
    %c0_i32_0 = arith.constant 0 : i32
    %c0_i32_1 = arith.constant 0 : i32
    return %c0_i32, %c0_i32_0 : i32, i32
  }
  func.func @transform_5(%arg0: i32) -> (i32, i32) {
    %c0_i32 = arith.constant 0 : i32
    %c0_i32_0 = arith.constant 0 : i32
    return %arg0, %c0_i32 : i32, i32
  }
}

</mosaic_0001>

<bundles_post_ra>
// kernel: tpu_custom_call.1
= control target key start
LH: loop header
LB: loop body
LE: loop exit
PB: predicated region body
PF: predicated region fallthrough
CT: control target
= control target key end

     0   :  { %10 = vsyncpa [#allocation3], 0  ;;  %s3198_s0 = inlined_call_operand.hbm [shape: f32[256,768], index: 0, kind: input, shape index: {}]   ;;  %s3199_s1 = inlined_call_operand.hbm [shape: f32[768,256], index: 1, kind: input, shape index: {}]   ;;  %s3200_s2 = inlined_call_operand.hbm [shape: f32[1,256], index: 2, kind: input, shape index: {}]   ;;  %s3201_s3 = inlined_call_operand.hbm [shape: f32[256,128], index: 3, kind: input, shape index: {}]   ;;  %s3202_s4 = inlined_call_operand.vmem [shape: f32[1,128], index: 4, kind: input, shape index: {}]   ;;  %s3203_s5 = inlined_call_operand.hbm [shape: f32[256,128], index: 5, kind: output, shape index: {}]  }
   0x1   :  { %11 = vsyncpa [#allocation6], 0 }
   0x2   :  { %12 = vsyncpa [#allocation9], 0  ;;  %s31_s20 = sshll.u32 %s3199_s1, 4  ;;  %s32_s20 = int_to_ptr.hbm [resolvable:$true] %s31_s20 }
   0x3   :  { %13 = vsyncpa [#allocation4], 0  ;;  %s2567_s21 = smov [#allocation5]   ;;  %s18_s25 = sshll.u32 %s3198_s0, 4  ;;  %s19_s25 = int_to_ptr.hbm [resolvable:$true] %s18_s25 }
   0x4   :  { %s33_s22 = sshll.u32 %s2567_s21, 4  ;;  %s2568_s26 = smov 256   ;;  %s34_s22 = int_to_ptr.vmem [resolvable:$true] %s33_s22 }
   0x5   :  { %s2569_s27 = smov 16   ;;  %s2570_s28 = smov [#allocation2]  }
   0x6   :  { %39 = dma.hbm_to_vmem [thread:$0]  %s32_s20, 24576, %s34_s22, [#allocation6], %s2568_s26, %s2568_s26, %s2569_s27  }
   0x7   :  { %s20_s29 = sshll.u32 %s2570_s28, 4  ;;  %s2571_s30 = smov 768   ;;  %s21_s29 = int_to_ptr.vmem [resolvable:$true] %s20_s29 }
   0x8   :  { %s2572_s6 = smov 48   ;;  %s45_s8 = sshll.u32 %s3200_s2, 4  ;;  %s46_s8 = int_to_ptr.hbm [resolvable:$true] %s45_s8 }
   0x9   :  { %26 = dma.hbm_to_vmem [thread:$0]  %s19_s25, 24576, %s21_s29, [#allocation3], %s2571_s30, %s2571_s30, %s2572_s6  }
   0xa   :  { %s2573_s9 = smov [#allocation7]   ;;  %s55_s12 = sshll.u32 %s3201_s3, 4  ;;  %s56_s12 = int_to_ptr.hbm [resolvable:$true] %s55_s12 }
   0xb   :  { %s47_s10 = sshll.u32 %s2573_s9, 4  ;;  %s2574_s13 = smov [#allocation8]   ;;  %s48_s10 = int_to_ptr.vmem [resolvable:$true] %s47_s10 }
   0xc   :  { %50 = dma.hbm_to_vmem [thread:$0]  %s46_s8, 32, %s48_s10, [#allocation6]  }
   0xd   :  { %s57_s14 = sshll.u32 %s2574_s13, 4  ;;  %s2575_s15 = smov 128   ;;  %s58_s14 = int_to_ptr.vmem [resolvable:$true] %s57_s14 }
   0xe   :  { %s2576_s16 = smov 8  }
   0xf   :  { %63 = dma.hbm_to_vmem [thread:$0]  %s56_s12, 4096, %s58_s14, [#allocation9], %s2575_s15, %s2575_s15, %s2576_s16  }
  0x10   :  { %2559 = dma.done.wait [#allocation3], 24576  }
  0x11   :  { %2560 = vsyncadd [#allocation3], 4294942720 }
  0x12   :  { %2561 = dma.done.wait [#allocation6], 24608  }
  0x13   :  { %2562 = vsyncadd [#allocation6], 4294942688 }
  0x14   :  { %2563 = dma.done.wait [#allocation9], 4096  }
  0x15   :  { %2564 = vsyncadd [#allocation9], 4294963200  ;;  %v304_v0 = vld [vmem:[#allocation5 + $0xf0] sm:$0xff]  ;;  %v302_v1 = vld [vmem:[#allocation5 + $0xe0] sm:$0xff]  ;;  %s2192_s20 = sshll.u32 %s3203_s5, 4  ;;  %s2193_s20 = int_to_ptr.hbm [resolvable:$true] %s2192_s20 }
  0x16   :  { %v336_v2 = vld [vmem:[#allocation5 + $0x1f0] sm:$0xff]  ;;  %472 = vmatpush.msra.mxu0 %v304_v0  ;;  %2207 = vmatpush.msra.mxu2 %v304_v0  ;;  %v334_v3 = vld [vmem:[#allocation5 + $0x1e0] sm:$0xff]  ;;  %v179_v35 = vld [vmem:[#allocation2 + $0x308] sm:$0xff] }
  0x17   :  { %2223 = vmatpush.msra.mxu3 %v336_v2  ;;  %v300_v4 = vld [vmem:[#allocation5 + $0xd0] sm:$0xff]  ;;  %585 = vmatpush.msra.mxu1 %v336_v2  ;;  %v298_v6 = vld [vmem:[#allocation5 + $0xc0] sm:$0xff]  ;;  %v83_v38 = vld [vmem:[#allocation2 + $0x8] sm:$0xff] }
  0x18   :  { %473 = vmatpush.msra.mxu0 %v302_v1  ;;  %2208 = vmatpush.msra.mxu2 %v302_v1  ;;  %v332_v5 = vld [vmem:[#allocation5 + $0x1d0] sm:$0xff]  ;;  %v330_v7 = vld [vmem:[#allocation5 + $0x1c0] sm:$0xff]  ;;  %v185_v47 = vld [vmem:[#allocation2 + $0x338] sm:$0xff] }
  0x19   :  { %2224 = vmatpush.msra.mxu3 %v334_v3  ;;  %586 = vmatpush.msra.mxu1 %v334_v3  ;;  %v296_v8 = vld [vmem:[#allocation5 + $0xb0] sm:$0xff]  ;;  %v294_v10 = vld [vmem:[#allocation5 + $0xa0] sm:$0xff]  ;;  %v89_v50 = vld [vmem:[#allocation2 + $0x38] sm:$0xff] }
  0x1a   :  { %474 = vmatpush.msra.mxu0 %v300_v4  ;;  %2209 = vmatpush.msra.mxu2 %v300_v4  ;;  %v328_v9 = vld [vmem:[#allocation5 + $0x1b0] sm:$0xff]  ;;  %v326_v11 = vld [vmem:[#allocation5 + $0x1a0] sm:$0xff]  ;;  %v191_v54 = vld [vmem:[#allocation2 + $0x368] sm:$0xff] }
  0x1b   :  { %2225 = vmatpush.msra.mxu3 %v332_v5  ;;  %587 = vmatpush.msra.mxu1 %v332_v5  ;;  %v292_v12 = vld [vmem:[#allocation5 + $0x90] sm:$0xff]  ;;  %v290_v14 = vld [vmem:[#allocation5 + $0x80] sm:$0xff]  ;;  %v95_v56 = vld [vmem:[#allocation2 + $0x68] sm:$0xff] }
  0x1c   :  { %475 = vmatpush.msra.mxu0 %v298_v6  ;;  %2210 = vmatpush.msra.mxu2 %v298_v6  ;;  %v324_v13 = vld [vmem:[#allocation5 + $0x190] sm:$0xff]  ;;  %v322_v15 = vld [vmem:[#allocation5 + $0x180] sm:$0xff]  ;;  %v197_v60 = vld [vmem:[#allocation2 + $0x398] sm:$0xff] }
  0x1d   :  { %2226 = vmatpush.msra.mxu3 %v330_v7  ;;  %588 = vmatpush.msra.mxu1 %v330_v7  ;;  %v288_v16 = vld [vmem:[#allocation5 + $0x70] sm:$0xff]  ;;  %v286_v18 = vld [vmem:[#allocation5 + $0x60] sm:$0xff]  ;;  %v101_v62 = vld [vmem:[#allocation2 + $0x98] sm:$0xff] }
  0x1e   :  { %476 = vmatpush.msra.mxu0 %v296_v8  ;;  %2211 = vmatpush.msra.mxu2 %v296_v8  ;;  %v320_v17 = vld [vmem:[#allocation5 + $0x170] sm:$0xff]  ;;  %v318_v19 = vld [vmem:[#allocation5 + $0x160] sm:$0xff]  ;;  %v203_v2 = vld [vmem:[#allocation2 + $0x3c8] sm:$0xff] }
  0x1f   :  { %2227 = vmatpush.msra.mxu3 %v328_v9  ;;  %589 = vmatpush.msra.mxu1 %v328_v9  ;;  %v284_v20 = vld [vmem:[#allocation5 + $0x50] sm:$0xff]  ;;  %v282_v22 = vld [vmem:[#allocation5 + $0x40] sm:$0xff]  ;;  %v107_v4 = vld [vmem:[#allocation2 + $0xc8] sm:$0xff] }
  0x20   :  { %477 = vmatpush.msra.mxu0 %v294_v10  ;;  %2212 = vmatpush.msra.mxu2 %v294_v10  ;;  %v316_v21 = vld [vmem:[#allocation5 + $0x150] sm:$0xff]  ;;  %v314_v23 = vld [vmem:[#allocation5 + $0x140] sm:$0xff]  ;;  %v209_v8 = vld [vmem:[#allocation2 + $0x3f8] sm:$0xff] }
  0x21   :  { %2228 = vmatpush.msra.mxu3 %v326_v11  ;;  %590 = vmatpush.msra.mxu1 %v326_v11  ;;  %v280_v24 = vld [vmem:[#allocation5 + $0x30] sm:$0xff]  ;;  %v278_v26 = vld [vmem:[#allocation5 + $0x20] sm:$0xff]  ;;  %v113_v10 = vld [vmem:[#allocation2 + $0xf8] sm:$0xff] }
  0x22   :  { %478 = vmatpush.msra.mxu0 %v292_v12  ;;  %2213 = vmatpush.msra.mxu2 %v292_v12  ;;  %v312_v25 = vld [vmem:[#allocation5 + $0x130] sm:$0xff]  ;;  %v310_v27 = vld [vmem:[#allocation5 + $0x120] sm:$0xff] }
  0x23   :  { %2229 = vmatpush.msra.mxu3 %v324_v13  ;;  %591 = vmatpush.msra.mxu1 %v324_v13  ;;  %v276_v28 = vld [vmem:[#allocation5 + $0x10] sm:$0xff]  ;;  %v274_v30 = vld [vmem:[#allocation5] sm:$0xff] }
  0x24   :  { %479 = vmatpush.msra.mxu0 %v290_v14  ;;  %2214 = vmatpush.msra.mxu2 %v290_v14  ;;  %v308_v29 = vld [vmem:[#allocation5 + $0x110] sm:$0xff]  ;;  %v82_v31 = vld [vmem:[#allocation2] sm:$0xff]  ;;  %v215_v14 = vld [vmem:[#allocation2 + $0x428] sm:$0xff] }
  0x25   :  { %2230 = vmatpush.msra.mxu3 %v322_v15  ;;  %592 = vmatpush.msra.mxu1 %v322_v15  ;;  %v178_v32 = vld [vmem:[#allocation2 + $0x300] sm:$0xff]  ;;  %v368_v33 = vld [vmem:[#allocation5 + $0x2f0] sm:$0xff] }
  0x26   :  { %480 = vmatpush.msra.mxu0 %v288_v16  ;;  %2215 = vmatpush.msra.mxu2 %v288_v16  ;;  %v306_v34 = vld [vmem:[#allocation5 + $0x100] sm:$0xff]  ;;  %v400_v36 = vld [vmem:[#allocation5 + $0x3f0] sm:$0xff]  ;;  %v119_v16 = vld [vmem:[#allocation2 + $0x128] sm:$0xff] }
  0x27   :  { %2231 = vmatpush.msra.mxu3 %v320_v17  ;;  %593 = vmatpush.msra.mxu1 %v320_v17  ;;  %v366_v37 = vld [vmem:[#allocation5 + $0x2e0] sm:$0xff]  ;;  %v364_v40 = vld [vmem:[#allocation5 + $0x2d0] sm:$0xff] }
  0x28   :  { %481 = vmatpush.msra.mxu0 %v286_v18  ;;  %2216 = vmatpush.msra.mxu2 %v286_v18  ;;  %v398_v39 = vld [vmem:[#allocation5 + $0x3e0] sm:$0xff]  ;;  %v396_v41 = vld [vmem:[#allocation5 + $0x3d0] sm:$0xff] }
  0x29   :  { %2232 = vmatpush.msra.mxu3 %v318_v19  ;;  %594 = vmatpush.msra.mxu1 %v318_v19  ;;  %v362_v42 = vld [vmem:[#allocation5 + $0x2c0] sm:$0xff]  ;;  %v88_v43 = vld [vmem:[#allocation2 + $0x30] sm:$0xff] }
  0x2a   :  { %482 = vmatpush.msra.mxu0 %v284_v20  ;;  %2217 = vmatpush.msra.mxu2 %v284_v20  ;;  %v184_v44 = vld [vmem:[#allocation2 + $0x330] sm:$0xff]  ;;  %v394_v45 = vld [vmem:[#allocation5 + $0x3c0] sm:$0xff]  ;;  %v221_v20 = vld [vmem:[#allocation2 + $0x458] sm:$0xff] }
  0x2b   :  { %2233 = vmatpush.msra.mxu3 %v316_v21  ;;  %595 = vmatpush.msra.mxu1 %v316_v21  ;;  %v360_v46 = vld [vmem:[#allocation5 + $0x2b0] sm:$0xff]  ;;  %v358_v49 = vld [vmem:[#allocation5 + $0x2a0] sm:$0xff] }
  0x2c   :  { %483 = vmatpush.msra.mxu0 %v282_v22  ;;  %2218 = vmatpush.msra.mxu2 %v282_v22  ;;  %v392_v48 = vld [vmem:[#allocation5 + $0x3b0] sm:$0xff]  ;;  %v390_v51 = vld [vmem:[#allocation5 + $0x3a0] sm:$0xff]  ;;  %v125_v22 = vld [vmem:[#allocation2 + $0x158] sm:$0xff] }
  0x2d   :  { %2234 = vmatpush.msra.mxu3 %v314_v23  ;;  %596 = vmatpush.msra.mxu1 %v314_v23  ;;  %v94_v52 = vld [vmem:[#allocation2 + $0x60] sm:$0xff]  ;;  %v356_v55 = vld [vmem:[#allocation5 + $0x290] sm:$0xff] }
  0x2e   :  { %484 = vmatpush.msra.mxu0 %v280_v24  ;;  %2219 = vmatpush.msra.mxu2 %v280_v24  ;;  %v190_v53 = vld [vmem:[#allocation2 + $0x360] sm:$0xff]  ;;  %v388_v57 = vld [vmem:[#allocation5 + $0x390] sm:$0xff] }
  0x2f   :  { %2235 = vmatpush.msra.mxu3 %v312_v25  ;;  %597 = vmatpush.msra.mxu1 %v312_v25  ;;  %v100_v58 = vld [vmem:[#allocation2 + $0x90] sm:$0xff]  ;;  %v354_v61 = vld [vmem:[#allocation5 + $0x280] sm:$0xff] }
  0x30   :  { %485 = vmatpush.msra.mxu0 %v278_v26  ;;  %2220 = vmatpush.msra.mxu2 %v278_v26  ;;  %v196_v59 = vld [vmem:[#allocation2 + $0x390] sm:$0xff]  ;;  %v386_v63 = vld [vmem:[#allocation5 + $0x380] sm:$0xff]  ;;  %v227_v26 = vld [vmem:[#allocation2 + $0x488] sm:$0xff] }
  0x31   :  { %2236 = vmatpush.msra.mxu3 %v310_v27  ;;  %598 = vmatpush.msra.mxu1 %v310_v27  ;;  %v106_v0 = vld [vmem:[#allocation2 + $0xc0] sm:$0xff]  ;;  %v352_v3 = vld [vmem:[#allocation5 + $0x270] sm:$0xff] }
  0x32   :  { %486 = vmatpush.msra.mxu0 %v276_v28  ;;  %2221 = vmatpush.msra.mxu2 %v276_v28  ;;  %v202_v1 = vld [vmem:[#allocation2 + $0x3c0] sm:$0xff]  ;;  %v384_v5 = vld [vmem:[#allocation5 + $0x370] sm:$0xff] }
  0x33   :  { %2237 = vmatpush.msra.mxu3 %v308_v29  ;;  %599 = vmatpush.msra.mxu1 %v308_v29  ;;  %v112_v6 = vld [vmem:[#allocation2 + $0xf0] sm:$0xff]  ;;  %v350_v9 = vld [vmem:[#allocation5 + $0x260] sm:$0xff]  ;;  %v131_v29 = vld [vmem:[#allocation2 + $0x188] sm:$0xff] }
  0x34   :  { %487 = vmatpush.msra.mxu0 %v274_v30  ;;  %2222 = vmatpush.msra.mxu2 %v274_v30  ;;  %v208_v7 = vld [vmem:[#allocation2 + $0x3f0] sm:$0xff]  ;;  %v382_v11 = vld [vmem:[#allocation5 + $0x360] sm:$0xff] }
  0x35   :  { %488 = vmatmul.f32.vlgmr.msra.gmra.mxu0 %v82_v31  ;;  %536 = vmatmul.f32.vlgmr.msra.gmra.mxu2 %v178_v32  ;;  %v118_v12 = vld [vmem:[#allocation2 + $0x120] sm:$0xff]  ;;  %v348_v15 = vld [vmem:[#allocation5 + $0x250] sm:$0xff] }
  0x36   :  { %698 = vmatpush.msrb.mxu2 %v368_v33  ;;  %2238 = vmatpush.msra.mxu3 %v306_v34  ;;  %v214_v13 = vld [vmem:[#allocation2 + $0x420] sm:$0xff]  ;;  %v380_v17 = vld [vmem:[#allocation5 + $0x350] sm:$0xff] }
  0x37   :  { %649 = vmatmul.f32.vlgmr.msra.gmra.mxu3 %v179_v35  ;;  %600 = vmatpush.msra.mxu1 %v306_v34  ;;  %v124_v18 = vld [vmem:[#allocation2 + $0x150] sm:$0xff]  ;;  %v346_v21 = vld [vmem:[#allocation5 + $0x240] sm:$0xff] }
  0x38   :  { %811 = vmatpush.msrb.mxu3 %v400_v36  ;;  %699 = vmatpush.msrb.mxu2 %v366_v37  ;;  %v220_v19 = vld [vmem:[#allocation2 + $0x450] sm:$0xff]  ;;  %v378_v23 = vld [vmem:[#allocation5 + $0x340] sm:$0xff]  ;;  %v233_v36 = vld [vmem:[#allocation2 + $0x4b8] sm:$0xff] }
  0x39   :  { %601 = vmatmul.f32.vlgmr.msra.gmra.mxu1 %v83_v38  ;;  %v130_v24 = vld [vmem:[#allocation2 + $0x180] sm:$0xff]  ;;  %v344_v27 = vld [vmem:[#allocation5 + $0x230] sm:$0xff] }
  0x3a   :  { %812 = vmatpush.msrb.mxu3 %v398_v39  ;;  %700 = vmatpush.msrb.mxu2 %v364_v40  ;;  %v226_v25 = vld [vmem:[#allocation2 + $0x480] sm:$0xff]  ;;  %v432_v28 = vld [vmem:[#allocation5 + $0x4f0] sm:$0xff]  ;;  %v137_v39 = vld [vmem:[#allocation2 + $0x1b8] sm:$0xff] }
  0x3b   :  { %924 = vmatpush.msrb.mxu0 %v432_v28  ;;  %v376_v30 = vld [vmem:[#allocation5 + $0x330] sm:$0xff]  ;;  %v430_v31 = vld [vmem:[#allocation5 + $0x4e0] sm:$0xff]  ;;  %v263_v28 = vld [vmem:[#allocation2 + $0x5a8] sm:$0xff] }
  0x3c   :  { %813 = vmatpush.msrb.mxu3 %v396_v41  ;;  %701 = vmatpush.msrb.mxu2 %v362_v42  ;;  %v428_v32 = vld [vmem:[#allocation5 + $0x4d0] sm:$0xff]  ;;  %v426_v33 = vld [vmem:[#allocation5 + $0x4c0] sm:$0xff] }
  0x3d   :  { %491 = vmatmul.f32.gmra.mxu0 %v88_v43  ;;  %539 = vmatmul.f32.gmra.mxu2 %v184_v44  ;;  %v136_v34 = vld [vmem:[#allocation2 + $0x1b0] sm:$0xff]  ;;  %v342_v37 = vld [vmem:[#allocation5 + $0x220] sm:$0xff] }
  0x3e   :  { %814 = vmatpush.msrb.mxu3 %v394_v45  ;;  %702 = vmatpush.msrb.mxu2 %v360_v46  ;;  %v232_v35 = vld [vmem:[#allocation2 + $0x4b0] sm:$0xff]  ;;  %v374_v40 = vld [vmem:[#allocation5 + $0x320] sm:$0xff] }
  0x3f   :  { %652 = vmatmul.f32.gmra.mxu3 %v185_v47  ;;  %925 = vmatpush.msrb.mxu0 %v430_v31  ;;  %v424_v38 = vld [vmem:[#allocation5 + $0x4b0] sm:$0xff]  ;;  %v422_v41 = vld [vmem:[#allocation5 + $0x4a0] sm:$0xff]  ;;  %v335_v31 = vld [vmem:[#allocation5 + $0x1e8] sm:$0xff] }
  0x40   :  { %815 = vmatpush.msrb.mxu3 %v392_v48  ;;  %703 = vmatpush.msrb.mxu2 %v358_v49  ;;  %v420_v42 = vld [vmem:[#allocation5 + $0x490] sm:$0xff]  ;;  %v418_v44 = vld [vmem:[#allocation5 + $0x480] sm:$0xff]  ;;  %v239_v48 = vld [vmem:[#allocation2 + $0x4e8] sm:$0xff] }
  0x41   :  { %604 = vmatmul.f32.gmra.mxu1 %v89_v50  ;;  %926 = vmatpush.msrb.mxu0 %v428_v32  ;;  %v464_v43 = vld [vmem:[#allocation5 + $0x5f0] sm:$0xff]  ;;  %v462_v45 = vld [vmem:[#allocation5 + $0x5e0] sm:$0xff] }
  0x42   :  { %816 = vmatpush.msrb.mxu3 %v390_v51  ;;  %704 = vmatpush.msrb.mxu2 %v356_v55  ;;  %v142_v46 = vld [vmem:[#allocation2 + $0x1e0] sm:$0xff]  ;;  %v340_v49 = vld [vmem:[#allocation5 + $0x210] sm:$0xff] }
  0x43   :  { %927 = vmatpush.msrb.mxu0 %v426_v33  ;;  %v238_v47 = vld [vmem:[#allocation2 + $0x4e0] sm:$0xff]  ;;  %1037 = vmatpush.msrb.mxu1 %v464_v43  ;;  %v416_v50 = vld [vmem:[#allocation5 + $0x470] sm:$0xff] }
  0x44   :  { %817 = vmatpush.msrb.mxu3 %v388_v57  ;;  %705 = vmatpush.msrb.mxu2 %v354_v61  ;;  %v460_v51 = vld [vmem:[#allocation5 + $0x5d0] sm:$0xff]  ;;  %v458_v55 = vld [vmem:[#allocation5 + $0x5c0] sm:$0xff] }
  0x45   :  { %494 = vmatmul.f32.gmra.mxu0 %v94_v52  ;;  %542 = vmatmul.f32.gmra.mxu2 %v190_v53  ;;  %v143_v52 = vld [vmem:[#allocation2 + $0x1e8] sm:$0xff]  ;;  %v372_v53 = vld [vmem:[#allocation5 + $0x310] sm:$0xff]  ;;  %v454_v61 = vld [vmem:[#allocation5 + $0x5a0] sm:$0xff] }
  0x46   :  { %818 = vmatpush.msrb.mxu3 %v386_v63  ;;  %706 = vmatpush.msrb.mxu2 %v352_v3  ;;  %v456_v57 = vld [vmem:[#allocation5 + $0x5b0] sm:$0xff]  ;;  %v338_v63 = vld [vmem:[#allocation5 + $0x200] sm:$0xff] }
  0x47   :  { %655 = vmatmul.f32.gmra.mxu3 %v191_v54  ;;  %928 = vmatpush.msrb.mxu0 %v424_v38  ;;  %v414_v54 = vld [vmem:[#allocation5 + $0x460] sm:$0xff]  ;;  %v172_v32 = vld [vmem:[#allocation2 + $0x2d0] sm:$0xff] }
  0x48   :  { %819 = vmatpush.msrb.mxu3 %v384_v5  ;;  %707 = vmatpush.msrb.mxu2 %v350_v9  ;;  %v370_v3 = vld [vmem:[#allocation5 + $0x300] sm:$0xff]  ;;  %v268_v33 = vld [vmem:[#allocation2 + $0x5d0] sm:$0xff] }
  0x49   :  { %607 = vmatmul.f32.gmra.mxu1 %v95_v56  ;;  %929 = vmatpush.msrb.mxu0 %v422_v41  ;;  %v412_v56 = vld [vmem:[#allocation5 + $0x450] sm:$0xff]  ;;  %v450_v5 = vld [vmem:[#allocation5 + $0x580] sm:$0xff] }
  0x4a   :  { %820 = vmatpush.msrb.mxu3 %v382_v11  ;;  %708 = vmatpush.msrb.mxu2 %v348_v15  ;;  %v250_v9 = vld [vmem:[#allocation2 + $0x540] sm:$0xff]  ;;  %v155_v15 = vld [vmem:[#allocation2 + $0x248] sm:$0xff]  ;;  %v84_v38 = vld [vmem:[#allocation2 + $0x10] sm:$0xff] }
  0x4b   :  { %930 = vmatpush.msrb.mxu0 %v420_v42  ;;  %1038 = vmatpush.msrb.mxu1 %v462_v45  ;;  %v446_v11 = vld [vmem:[#allocation5 + $0x560] sm:$0xff]  ;;  %v301_v42 = vld [vmem:[#allocation5 + $0xd8] sm:$0xff] }
  0x4c   :  { %821 = vmatpush.msrb.mxu3 %v380_v17  ;;  %709 = vmatpush.msrb.mxu2 %v346_v21  ;;  %v442_v17 = vld [vmem:[#allocation5 + $0x540] sm:$0xff]  ;;  %v333_v45 = vld [vmem:[#allocation5 + $0x1d8] sm:$0xff] }
  0x4d   :  { %497 = vmatmul.f32.gmra.mxu0 %v100_v58  ;;  %545 = vmatmul.f32.gmra.mxu2 %v196_v59  ;;  %v410_v58 = vld [vmem:[#allocation5 + $0x440] sm:$0xff]  ;;  %v148_v59 = vld [vmem:[#allocation2 + $0x210] sm:$0xff] }
  0x4e   :  { %822 = vmatpush.msrb.mxu3 %v378_v23  ;;  %710 = vmatpush.msrb.mxu2 %v344_v27  ;;  %v438_v21 = vld [vmem:[#allocation5 + $0x520] sm:$0xff]  ;;  %v436_v23 = vld [vmem:[#allocation5 + $0x510] sm:$0xff] }
  0x4f   :  { %658 = vmatmul.f32.gmra.mxu3 %v197_v60  ;;  %931 = vmatpush.msrb.mxu0 %v418_v44  ;;  %v244_v60 = vld [vmem:[#allocation2 + $0x510] sm:$0xff]  ;;  %v262_v27 = vld [vmem:[#allocation2 + $0x5a0] sm:$0xff]  ;;  %v87_v44 = vld [vmem:[#allocation2 + $0x28] sm:$0xff] }
  0x50   :  { %823 = vmatpush.msrb.mxu3 %v376_v30  ;;  %711 = vmatpush.msrb.mxu2 %v342_v37  ;;  %v167_v30 = vld [vmem:[#allocation2 + $0x2a8] sm:$0xff] }
  0x51   :  { %610 = vmatmul.f32.gmra.mxu1 %v101_v62  ;;  %932 = vmatpush.msrb.mxu0 %v416_v50  ;;  %v245_v62 = vld [vmem:[#allocation2 + $0x518] sm:$0xff]  ;;  %v90_v50 = vld [vmem:[#allocation2 + $0x40] sm:$0xff] }
  0x52   :  { %824 = vmatpush.msrb.mxu3 %v374_v40  ;;  %712 = vmatpush.msrb.mxu2 %v340_v49  ;;  %v85_v40 = vld [vmem:[#allocation2 + $0x18] sm:$0xff] }
  0x53   :  { %1039 = vmatpush.msrb.mxu1 %v460_v51  ;;  %933 = vmatpush.msrb.mxu0 %v414_v54  ;;  %v92_v51 = vld [vmem:[#allocation2 + $0x50] sm:$0xff] }
  0x54   :  { %825 = vmatpush.msrb.mxu3 %v372_v53  ;;  %713 = vmatpush.msrb.mxu2 %v338_v63  ;;  %v91_v53 = vld [vmem:[#allocation2 + $0x48] sm:$0xff]  ;;  %v97_v63 = vld [vmem:[#allocation2 + $0x78] sm:$0xff] }
  0x55   :  { %500 = vmatmul.f32.gmra.mxu0 %v106_v0  ;;  %548 = vmatmul.f32.gmra.mxu2 %v202_v1  ;;  %v408_v0 = vld [vmem:[#allocation5 + $0x430] sm:$0xff] }
  0x56   :  { %1040 = vmatpush.msrb.mxu1 %v458_v55  ;;  %934 = vmatpush.msrb.mxu0 %v412_v56  ;;  %v452_v1 = vld [vmem:[#allocation5 + $0x590] sm:$0xff]  ;;  %v93_v55 = vld [vmem:[#allocation2 + $0x58] sm:$0xff] }
  0x57   :  { %661 = vmatmul.f32.gmra.mxu3 %v203_v2  ;;  %v149_v2 = vld [vmem:[#allocation2 + $0x218] sm:$0xff] }
  0x58   :  { %1041 = vmatpush.msrb.mxu1 %v456_v57  ;;  %935 = vmatpush.msrb.mxu0 %v410_v58 }
  0x59   :  { %613 = vmatmul.f32.gmra.mxu1 %v107_v4  ;;  %v406_v4 = vld [vmem:[#allocation5 + $0x420] sm:$0xff]  ;;  %826 = vmatpush.msrb.mxu3 %v370_v3  ;;  %v331_v3 = vld [vmem:[#allocation5 + $0x1c8] sm:$0xff] }
  0x5a   :  { %1042 = vmatpush.msrb.mxu1 %v454_v61  ;;  %936 = vmatpush.msrb.mxu0 %v408_v0  ;;  %v98_v61 = vld [vmem:[#allocation2 + $0x80] sm:$0xff]  ;;  %v299_v0 = vld [vmem:[#allocation5 + $0xc8] sm:$0xff] }
  0x5c   :  { %1043 = vmatpush.msrb.mxu1 %v452_v1  ;;  %937 = vmatpush.msrb.mxu0 %v406_v4 }
  0x5d   :  { %503 = vmatmul.f32.gmra.mxu0 %v112_v6  ;;  %551 = vmatmul.f32.gmra.mxu2 %v208_v7  ;;  %v404_v6 = vld [vmem:[#allocation5 + $0x410] sm:$0xff] }
  0x5e   :  { %v448_v7 = vld [vmem:[#allocation5 + $0x570] sm:$0xff]  ;;  %1044 = vmatpush.msrb.mxu1 %v450_v5  ;;  %938 = vmatpush.msrb.mxu0 %v404_v6 }
  0x5f   :  { %664 = vmatmul.f32.gmra.mxu3 %v209_v8  ;;  %v154_v8 = vld [vmem:[#allocation2 + $0x240] sm:$0xff] }
  0x60   :  { %1045 = vmatpush.msrb.mxu1 %v448_v7 }
  0x61   :  { %616 = vmatmul.f32.gmra.mxu1 %v113_v10  ;;  %v402_v10 = vld [vmem:[#allocation5 + $0x400] sm:$0xff] }
  0x62   :  { %939 = vmatpush.msrb.mxu0 %v402_v10  ;;  %1046 = vmatpush.msrb.mxu1 %v446_v11  ;;  %v103_v11 = vld [vmem:[#allocation2 + $0xa8] sm:$0xff] }
  0x65   :  { %506 = vmatmul.f32.gmra.mxu0 %v118_v12  ;;  %554 = vmatmul.f32.gmra.mxu2 %v214_v13  ;;  %v251_v12 = vld [vmem:[#allocation2 + $0x548] sm:$0xff]  ;;  %v305_v13 = vld [vmem:[#allocation5 + $0xf8] sm:$0xff] }
  0x66   :  { %1150 = vmatpush.msra.mxu2 %v305_v13  ;;  %v105_v13 = vld [vmem:[#allocation2 + $0xb8] sm:$0xff] }
  0x67   :  { %667 = vmatmul.f32.gmra.mxu3 %v215_v14  ;;  %v444_v14 = vld [vmem:[#allocation5 + $0x550] sm:$0xff] }
  0x68   :  { %1047 = vmatpush.msrb.mxu1 %v444_v14 }
  0x69   :  { %619 = vmatmul.f32.gmra.mxu1 %v119_v16  ;;  %v337_v16 = vld [vmem:[#allocation5 + $0x1f8] sm:$0xff] }
  0x6a   :  { %1263 = vmatpush.msra.mxu3 %v337_v16  ;;  %1048 = vmatpush.msrb.mxu1 %v442_v17 }
  0x6c   :  { %1264 = vmatpush.msra.mxu3 %v335_v31  ;;  %v116_v31 = vld [vmem:[#allocation2 + $0x110] sm:$0xff] }
  0x6d   :  { %509 = vmatmul.f32.gmra.mxu0 %v124_v18  ;;  %557 = vmatmul.f32.gmra.mxu2 %v220_v19  ;;  %v440_v18 = vld [vmem:[#allocation5 + $0x530] sm:$0xff] }
  0x6e   :  { %v160_v19 = vld [vmem:[#allocation2 + $0x270] sm:$0xff]  ;;  %1049 = vmatpush.msrb.mxu1 %v440_v18  ;;  %1265 = vmatpush.msra.mxu3 %v333_v45 }
  0x6f   :  { %670 = vmatmul.f32.gmra.mxu3 %v221_v20  ;;  %v256_v20 = vld [vmem:[#allocation2 + $0x570] sm:$0xff] }
  0x70   :  { %1050 = vmatpush.msrb.mxu1 %v438_v21  ;;  %1266 = vmatpush.msra.mxu3 %v331_v3  ;;  %v108_v18 = vld [vmem:[#allocation2 + $0xd0] sm:$0xff]  ;;  %v109_v21 = vld [vmem:[#allocation2 + $0xd8] sm:$0xff] }
  0x71   :  { %622 = vmatmul.f32.gmra.mxu1 %v125_v22  ;;  %v257_v22 = vld [vmem:[#allocation2 + $0x578] sm:$0xff] }
  0x72   :  { %1051 = vmatpush.msrb.mxu1 %v436_v23 }
  0x75   :  { %512 = vmatmul.f32.gmra.mxu0 %v130_v24  ;;  %560 = vmatmul.f32.gmra.mxu2 %v226_v25  ;;  %v161_v24 = vld [vmem:[#allocation2 + $0x278] sm:$0xff]  ;;  %v434_v25 = vld [vmem:[#allocation5 + $0x500] sm:$0xff] }
  0x76   :  { %1052 = vmatpush.msrb.mxu1 %v434_v25  ;;  %v329_v25 = vld [vmem:[#allocation5 + $0x1b8] sm:$0xff] }
  0x77   :  { %673 = vmatmul.f32.gmra.mxu3 %v227_v26  ;;  %v166_v26 = vld [vmem:[#allocation2 + $0x2a0] sm:$0xff] }
  0x78   :  { %1267 = vmatpush.msra.mxu3 %v329_v25  ;;  %v138_v25 = vld [vmem:[#allocation2 + $0x1c0] sm:$0xff] }
  0x79   :  { %625 = vmatmul.f32.gmra.mxu1 %v131_v29  ;;  %v303_v29 = vld [vmem:[#allocation5 + $0xe8] sm:$0xff] }
  0x7a   :  { %1151 = vmatpush.msra.mxu2 %v303_v29 }
  0x7c   :  { %1152 = vmatpush.msra.mxu2 %v301_v42  ;;  %v120_v42 = vld [vmem:[#allocation2 + $0x130] sm:$0xff] }
  0x7d   :  { %515 = vmatmul.f32.gmra.mxu0 %v136_v34  ;;  %563 = vmatmul.f32.gmra.mxu2 %v232_v35  ;;  %v269_v34 = vld [vmem:[#allocation2 + $0x5d8] sm:$0xff] }
  0x7e   :  { %v173_v35 = vld [vmem:[#allocation2 + $0x2d8] sm:$0xff]  ;;  %1153 = vmatpush.msra.mxu2 %v299_v0 }
  0x7f   :  { %676 = vmatmul.f32.gmra.mxu3 %v233_v36  ;;  %v466_v36 = vld [vmem:[#allocation7] sm:$0x3] }
  0x80   :  { %v2625_v41 = vperm.slane %v466_v36, 0 }
  0x81   :  { %628 = vmatmul.f32.gmra.mxu1 %v137_v39  ;;  %v86_v39 = vld [vmem:[#allocation2 + $0x20] sm:$0xff] }
  0x85   :  { %518 = vmatmul.f32.gmra.mxu0 %v142_v46  ;;  %566 = vmatmul.f32.gmra.mxu2 %v238_v47 }
  0x87   :  { %679 = vmatmul.f32.gmra.mxu3 %v239_v48 }
  0x89   :  { %631 = vmatmul.f32.gmra.mxu1 %v143_v52 }
  0x8d   :  { %521 = vmatmul.f32.gmra.mxu0 %v148_v59  ;;  %569 = vmatmul.f32.gmra.mxu2 %v244_v60  ;;  %v96_v60 = vld [vmem:[#allocation2 + $0x70] sm:$0xff] }
  0x8f   :  { %682 = vmatmul.f32.gmra.mxu3 %v245_v62 }
  0x91   :  { %634 = vmatmul.f32.gmra.mxu1 %v149_v2  ;;  %v99_v2 = vld [vmem:[#allocation2 + $0x88] sm:$0xff] }
  0x95   :  { %524 = vmatmul.f32.gmra.mxu0 %v154_v8  ;;  %572 = vmatmul.f32.gmra.mxu2 %v250_v9  ;;  %v102_v8 = vld [vmem:[#allocation2 + $0xa0] sm:$0xff]  ;;  %v104_v9 = vld [vmem:[#allocation2 + $0xb0] sm:$0xff] }
  0x97   :  { %685 = vmatmul.f32.gmra.mxu3 %v251_v12 }
  0x99   :  { %637 = vmatmul.f32.gmra.mxu1 %v155_v15 }
  0x9d   :  { %527 = vmatmul.f32.gmra.mxu0 %v160_v19  ;;  %575 = vmatmul.f32.gmra.mxu2 %v256_v20  ;;  %v110_v19 = vld [vmem:[#allocation2 + $0xe0] sm:$0xff] }
  0x9f   :  { %688 = vmatmul.f32.gmra.mxu3 %v257_v22  ;;  %v297_v22 = vld [vmem:[#allocation5 + $0xb8] sm:$0xff] }
  0xa0   :  { %1154 = vmatpush.msra.mxu2 %v297_v22 }
  0xa1   :  { %640 = vmatmul.f32.gmra.mxu1 %v161_v24  ;;  %v111_v24 = vld [vmem:[#allocation2 + $0xe8] sm:$0xff] }
  0xa5   :  { %530 = vmatmul.f32.gmra.mxu0 %v166_v26  ;;  %578 = vmatmul.f32.gmra.mxu2 %v262_v27 }
  0xa7   :  { %691 = vmatmul.f32.gmra.mxu3 %v263_v28 }
  0xa9   :  { %643 = vmatmul.f32.gmra.mxu1 %v167_v30  ;;  %v114_v30 = vld [vmem:[#allocation2 + $0x100] sm:$0xff] }
  0xad   :  { %533 = vmatmul.f32.gmra.mxu0 %v172_v32  ;;  %581 = vmatmul.f32.gmra.mxu2 %v268_v33  ;;  %v115_v33 = vld [vmem:[#allocation2 + $0x108] sm:$0xff] }
  0xaf   :  { %694 = vmatmul.f32.gmra.mxu3 %v269_v34 }
  0xb1   :  { %646 = vmatmul.f32.gmra.mxu1 %v173_v35  ;;  %v117_v35 = vld [vmem:[#allocation2 + $0x118] sm:$0xff] }
  0xb2   :  { %v2623_v37 = vpop.f32.mrf.mxu0 }
  0xb5   :  { %714 = vmatmul.f32.vlgmr.msrb.gmra.mxu2 %v84_v38  ;;  %940 = vmatmul.f32.vlgmr.msrb.gmra.mxu0 %v86_v39 }
  0xb6   :  { %v2627_v43 = vpop.f32.mrf.mxu1 }
  0xb7   :  { %827 = vmatmul.f32.vlgmr.msrb.gmra.mxu3 %v85_v40 }
  0xb8   :  { %v537_v46 = vpop.f32.mrf.mxu2 }
  0xb9   :  { %v538_v47 = vadd.f32 %v537_v46, %v2625_v41  ;;  %1053 = vmatmul.f32.vlgmr.msrb.gmra.mxu1 %v87_v44  ;;  %v122_v44 = vld [vmem:[#allocation2 + $0x140] sm:$0xff]  ;;  %v121_v46 = vld [vmem:[#allocation2 + $0x138] sm:$0xff] }
  0xba   :  { %v2630_v48 = vpop.f32.mrf.mxu0  ;;  %v650_v49 = vpop.f32.mrf.mxu3 }
  0xbb   :  { %v2632_v52 = vadd.f32 %v650_v49, %v538_v47  ;;  %v295_v47 = vld [vmem:[#allocation5 + $0xa8] sm:$0xff] }
  0xbc   :  { %1155 = vmatpush.msra.mxu2 %v295_v47  ;;  %v291_v47 = vld [vmem:[#allocation5 + $0x88] sm:$0xff] }
  0xbd   :  { %717 = vmatmul.f32.gmra.mxu2 %v90_v50  ;;  %943 = vmatmul.f32.gmra.mxu0 %v92_v51  ;;  %v123_v50 = vld [vmem:[#allocation2 + $0x148] sm:$0xff] }
  0xbe   :  { %v2634_v54 = vpop.f32.mrf.mxu1  ;;  %v327_v51 = vld [vmem:[#allocation5 + $0x1a8] sm:$0xff] }
  0xbf   :  { %830 = vmatmul.f32.gmra.mxu3 %v91_v53 }
  0xc0   :  { %v540_v56 = vpop.f32.mrf.mxu2  ;;  %1268 = vmatpush.msra.mxu3 %v327_v51  ;;  %v147_v51 = vld [vmem:[#allocation2 + $0x208] sm:$0xff] }
  0xc1   :  { %v541_v57 = vadd.f32 %v540_v56, %v2625_v41  ;;  %1056 = vmatmul.f32.gmra.mxu1 %v93_v55 }
  0xc2   :  { %v2637_v58 = vpop.f32.mrf.mxu0  ;;  %v653_v59 = vpop.f32.mrf.mxu3 }
  0xc3   :  { %v2639_v62 = vadd.f32 %v653_v59, %v541_v57  ;;  %v126_v59 = vld [vmem:[#allocation2 + $0x160] sm:$0xff] }
  0xc5   :  { %720 = vmatmul.f32.gmra.mxu2 %v96_v60  ;;  %946 = vmatmul.f32.gmra.mxu0 %v98_v61  ;;  %v128_v60 = vld [vmem:[#allocation2 + $0x170] sm:$0xff] }
  0xc6   :  { %v2641_v1 = vpop.f32.mrf.mxu1 }
  0xc7   :  { %833 = vmatmul.f32.gmra.mxu3 %v97_v63  ;;  %v127_v63 = vld [vmem:[#allocation2 + $0x168] sm:$0xff] }
  0xc8   :  { %v543_v4 = vpop.f32.mrf.mxu2 }
  0xc9   :  { %v544_v5 = vadd.f32 %v543_v4, %v2625_v41  ;;  %1059 = vmatmul.f32.gmra.mxu1 %v99_v2  ;;  %v129_v2 = vld [vmem:[#allocation2 + $0x178] sm:$0xff] }
  0xca   :  { %v2644_v6 = vpop.f32.mrf.mxu0  ;;  %v656_v7 = vpop.f32.mrf.mxu3 }
  0xcb   :  { %v2646_v10 = vadd.f32 %v656_v7, %v544_v5 }
  0xcd   :  { %723 = vmatmul.f32.gmra.mxu2 %v102_v8  ;;  %949 = vmatmul.f32.gmra.mxu0 %v104_v9  ;;  %v132_v8 = vld [vmem:[#allocation2 + $0x190] sm:$0xff]  ;;  %v134_v9 = vld [vmem:[#allocation2 + $0x1a0] sm:$0xff] }
  0xce   :  { %v2648_v12 = vpop.f32.mrf.mxu1 }
  0xcf   :  { %836 = vmatmul.f32.gmra.mxu3 %v103_v11 }
  0xd0   :  { %v546_v14 = vpop.f32.mrf.mxu2 }
  0xd1   :  { %v547_v15 = vadd.f32 %v546_v14, %v2625_v41  ;;  %1062 = vmatmul.f32.gmra.mxu1 %v105_v13  ;;  %v133_v13 = vld [vmem:[#allocation2 + $0x198] sm:$0xff] }
  0xd2   :  { %v2651_v16 = vpop.f32.mrf.mxu0  ;;  %v659_v17 = vpop.f32.mrf.mxu3  ;;  %v293_v14 = vld [vmem:[#allocation5 + $0x98] sm:$0xff] }
  0xd3   :  { %v2653_v20 = vadd.f32 %v659_v17, %v547_v15  ;;  %v135_v17 = vld [vmem:[#allocation2 + $0x1a8] sm:$0xff]  ;;  %1156 = vmatpush.msra.mxu2 %v293_v14 }
  0xd5   :  { %726 = vmatmul.f32.gmra.mxu2 %v108_v18  ;;  %952 = vmatmul.f32.gmra.mxu0 %v110_v19  ;;  %v325_v18 = vld [vmem:[#allocation5 + $0x198] sm:$0xff] }
  0xd6   :  { %v2655_v23 = vpop.f32.mrf.mxu1  ;;  %1269 = vmatpush.msra.mxu3 %v325_v18  ;;  %1157 = vmatpush.msra.mxu2 %v291_v47  ;;  %v156_v18 = vld [vmem:[#allocation2 + $0x250] sm:$0xff] }
  0xd7   :  { %839 = vmatmul.f32.gmra.mxu3 %v109_v21 }
  0xd8   :  { %v549_v26 = vpop.f32.mrf.mxu2 }
  0xd9   :  { %v550_v27 = vadd.f32 %v549_v26, %v2625_v41  ;;  %1065 = vmatmul.f32.gmra.mxu1 %v111_v24  ;;  %v140_v26 = vld [vmem:[#allocation2 + $0x1d0] sm:$0xff] }
  0xda   :  { %v2658_v28 = vpop.f32.mrf.mxu0  ;;  %v662_v29 = vpop.f32.mrf.mxu3 }
  0xdb   :  { %v2660_v32 = vadd.f32 %v662_v29, %v550_v27  ;;  %v139_v29 = vld [vmem:[#allocation2 + $0x1c8] sm:$0xff] }
  0xdd   :  { %729 = vmatmul.f32.gmra.mxu2 %v114_v30  ;;  %955 = vmatmul.f32.gmra.mxu0 %v116_v31  ;;  %v141_v31 = vld [vmem:[#allocation2 + $0x1d8] sm:$0xff] }
  0xde   :  { %v2662_v34 = vpop.f32.mrf.mxu1 }
  0xdf   :  { %842 = vmatmul.f32.gmra.mxu3 %v115_v33 }
  0xe0   :  { %v552_v36 = vpop.f32.mrf.mxu2 }
  0xe1   :  { %v553_v38 = vadd.f32 %v552_v36, %v2625_v41  ;;  %1068 = vmatmul.f32.gmra.mxu1 %v117_v35 }
  0xe2   :  { %v2665_v39 = vpop.f32.mrf.mxu0  ;;  %v665_v40 = vpop.f32.mrf.mxu3 }
  0xe3   :  { %v2667_v45 = vadd.f32 %v665_v40, %v553_v38  ;;  %v144_v40 = vld [vmem:[#allocation2 + $0x1f0] sm:$0xff] }
  0xe5   :  { %732 = vmatmul.f32.gmra.mxu2 %v120_v42  ;;  %958 = vmatmul.f32.gmra.mxu0 %v122_v44  ;;  %v146_v42 = vld [vmem:[#allocation2 + $0x200] sm:$0xff] }
  0xe6   :  { %v2669_v49 = vpop.f32.mrf.mxu1 }
  0xe7   :  { %845 = vmatmul.f32.gmra.mxu3 %v121_v46  ;;  %v145_v46 = vld [vmem:[#allocation2 + $0x1f8] sm:$0xff] }
  0xe8   :  { %v555_v53 = vpop.f32.mrf.mxu2 }
  0xe9   :  { %v556_v55 = vadd.f32 %v555_v53, %v2625_v41  ;;  %1071 = vmatmul.f32.gmra.mxu1 %v123_v50  ;;  %v323_v53 = vld [vmem:[#allocation5 + $0x188] sm:$0xff] }
  0xea   :  { %v2672_v56 = vpop.f32.mrf.mxu0  ;;  %v668_v57 = vpop.f32.mrf.mxu3  ;;  %1270 = vmatpush.msra.mxu3 %v323_v53  ;;  %v369_v53 = vld [vmem:[#allocation5 + $0x2f8] sm:$0xff] }
  0xeb   :  { %v2674_v61 = vadd.f32 %v668_v57, %v556_v55  ;;  %1376 = vmatpush.msra.mxu0 %v369_v53  ;;  %v175_v53 = vld [vmem:[#allocation2 + $0x2e8] sm:$0xff] }
  0xed   :  { %735 = vmatmul.f32.gmra.mxu2 %v126_v59  ;;  %961 = vmatmul.f32.gmra.mxu0 %v128_v60 }
  0xee   :  { %v2676_v0 = vpop.f32.mrf.mxu1 }
  0xef   :  { %848 = vmatmul.f32.gmra.mxu3 %v127_v63  ;;  %v150_v63 = vld [vmem:[#allocation2 + $0x220] sm:$0xff] }
  0xf0   :  { %v558_v3 = vpop.f32.mrf.mxu2 }
  0xf1   :  { %v559_v4 = vadd.f32 %v558_v3, %v2625_v41  ;;  %1074 = vmatmul.f32.gmra.mxu1 %v129_v2  ;;  %v152_v2 = vld [vmem:[#allocation2 + $0x230] sm:$0xff] }
  0xf2   :  { %v2679_v5 = vpop.f32.mrf.mxu0  ;;  %v671_v7 = vpop.f32.mrf.mxu3 }
  0xf3   :  { %v2681_v11 = vadd.f32 %v671_v7, %v559_v4  ;;  %v151_v4 = vld [vmem:[#allocation2 + $0x228] sm:$0xff] }
  0xf5   :  { %738 = vmatmul.f32.gmra.mxu2 %v132_v8  ;;  %964 = vmatmul.f32.gmra.mxu0 %v134_v9  ;;  %v153_v8 = vld [vmem:[#allocation2 + $0x238] sm:$0xff] }
  0xf6   :  { %v2683_v15 = vpop.f32.mrf.mxu1 }
  0xf7   :  { %851 = vmatmul.f32.gmra.mxu3 %v133_v13 }
  0xf8   :  { %v561_v19 = vpop.f32.mrf.mxu2 }
  0xf9   :  { %v562_v21 = vadd.f32 %v561_v19, %v2625_v41  ;;  %1077 = vmatmul.f32.gmra.mxu1 %v135_v17  ;;  %v158_v19 = vld [vmem:[#allocation2 + $0x260] sm:$0xff] }
  0xfa   :  { %v2686_v22 = vpop.f32.mrf.mxu0  ;;  %v674_v24 = vpop.f32.mrf.mxu3 }
  0xfb   :  { %v2688_v27 = vadd.f32 %v674_v24, %v562_v21  ;;  %v157_v24 = vld [vmem:[#allocation2 + $0x258] sm:$0xff] }
  0xfd   :  { %741 = vmatmul.f32.gmra.mxu2 %v138_v25  ;;  %967 = vmatmul.f32.gmra.mxu0 %v140_v26  ;;  %v289_v25 = vld [vmem:[#allocation5 + $0x78] sm:$0xff] }
  0xfe   :  { %v2690_v30 = vpop.f32.mrf.mxu1  ;;  %1158 = vmatpush.msra.mxu2 %v289_v25  ;;  %v171_v25 = vld [vmem:[#allocation2 + $0x2c8] sm:$0xff] }
  0xff   :  { %854 = vmatmul.f32.gmra.mxu3 %v139_v29  ;;  %v159_v29 = vld [vmem:[#allocation2 + $0x268] sm:$0xff] }
 0x100   :  { %v564_v33 = vpop.f32.mrf.mxu2 }
 0x101   :  { %v565_v35 = vadd.f32 %v564_v33, %v2625_v41  ;;  %1080 = vmatmul.f32.gmra.mxu1 %v141_v31  ;;  %v321_v31 = vld [vmem:[#allocation5 + $0x178] sm:$0xff] }
 0x102   :  { %v2693_v36 = vpop.f32.mrf.mxu0  ;;  %v677_v38 = vpop.f32.mrf.mxu3  ;;  %1271 = vmatpush.msra.mxu3 %v321_v31 }
 0x103   :  { %v2695_v44 = vadd.f32 %v677_v38, %v565_v35 }
 0x105   :  { %744 = vmatmul.f32.gmra.mxu2 %v144_v40  ;;  %970 = vmatmul.f32.gmra.mxu0 %v146_v42  ;;  %v162_v42 = vld [vmem:[#allocation2 + $0x280] sm:$0xff] }
 0x106   :  { %v2697_v50 = vpop.f32.mrf.mxu1 }
 0x107   :  { %857 = vmatmul.f32.gmra.mxu3 %v145_v46  ;;  %v164_v46 = vld [vmem:[#allocation2 + $0x290] sm:$0xff] }
 0x108   :  { %v567_v55 = vpop.f32.mrf.mxu2 }
 0x109   :  { %v568_v57 = vadd.f32 %v567_v55, %v2625_v41  ;;  %1083 = vmatmul.f32.gmra.mxu1 %v147_v51  ;;  %v163_v51 = vld [vmem:[#allocation2 + $0x288] sm:$0xff] }
 0x10a   :  { %v2700_v59 = vpop.f32.mrf.mxu0  ;;  %v680_v60 = vpop.f32.mrf.mxu3 }
 0x10b   :  { %v2702_v3 = vadd.f32 %v680_v60, %v568_v57  ;;  %v165_v57 = vld [vmem:[#allocation2 + $0x298] sm:$0xff] }
 0x10d   :  { %747 = vmatmul.f32.gmra.mxu2 %v150_v63  ;;  %973 = vmatmul.f32.gmra.mxu0 %v152_v2  ;;  %v401_v2 = vld [vmem:[#allocation5 + $0x3f8] sm:$0xff] }
 0x10e   :  { %v2704_v7 = vpop.f32.mrf.mxu1  ;;  %1489 = vmatpush.msra.mxu1 %v401_v2 }
 0x10f   :  { %860 = vmatmul.f32.gmra.mxu3 %v151_v4 }
 0x110   :  { %v570_v9 = vpop.f32.mrf.mxu2 }
 0x111   :  { %v571_v13 = vadd.f32 %v570_v9, %v2625_v41  ;;  %1086 = vmatmul.f32.gmra.mxu1 %v153_v8  ;;  %v168_v9 = vld [vmem:[#allocation2 + $0x2b0] sm:$0xff] }
 0x112   :  { %v2707_v14 = vpop.f32.mrf.mxu0  ;;  %v683_v17 = vpop.f32.mrf.mxu3 }
 0x113   :  { %v2709_v21 = vadd.f32 %v683_v17, %v571_v13  ;;  %v170_v13 = vld [vmem:[#allocation2 + $0x2c0] sm:$0xff] }
 0x115   :  { %750 = vmatmul.f32.gmra.mxu2 %v156_v18  ;;  %976 = vmatmul.f32.gmra.mxu0 %v158_v19  ;;  %v169_v18 = vld [vmem:[#allocation2 + $0x2b8] sm:$0xff]  ;;  %v287_v19 = vld [vmem:[#allocation5 + $0x68] sm:$0xff] }
 0x116   :  { %v2711_v26 = vpop.f32.mrf.mxu1  ;;  %1159 = vmatpush.msra.mxu2 %v287_v19 }
 0x117   :  { %863 = vmatmul.f32.gmra.mxu3 %v157_v24 }
 0x118   :  { %v573_v33 = vpop.f32.mrf.mxu2 }
 0x119   :  { %v574_v35 = vadd.f32 %v573_v33, %v2625_v41  ;;  %1089 = vmatmul.f32.gmra.mxu1 %v159_v29  ;;  %v319_v33 = vld [vmem:[#allocation5 + $0x168] sm:$0xff] }
 0x11a   :  { %v2714_v38 = vpop.f32.mrf.mxu0  ;;  %v686_v40 = vpop.f32.mrf.mxu3  ;;  %1272 = vmatpush.msra.mxu3 %v319_v33  ;;  %v181_v33 = vld [vmem:[#allocation2 + $0x318] sm:$0xff] }
 0x11b   :  { %v2716_v47 = vadd.f32 %v686_v40, %v574_v35 }
 0x11d   :  { %753 = vmatmul.f32.gmra.mxu2 %v162_v42  ;;  %979 = vmatmul.f32.gmra.mxu0 %v164_v46  ;;  %v174_v42 = vld [vmem:[#allocation2 + $0x2e0] sm:$0xff]  ;;  %v176_v46 = vld [vmem:[#allocation2 + $0x2f0] sm:$0xff] }
 0x11e   :  { %v2718_v55 = vpop.f32.mrf.mxu1 }
 0x11f   :  { %866 = vmatmul.f32.gmra.mxu3 %v163_v51 }
 0x120   :  { %v576_v60 = vpop.f32.mrf.mxu2 }
 0x121   :  { %v577_v63 = vadd.f32 %v576_v60, %v2625_v41  ;;  %1092 = vmatmul.f32.gmra.mxu1 %v165_v57  ;;  %v367_v57 = vld [vmem:[#allocation5 + $0x2e8] sm:$0xff] }
 0x122   :  { %v2721_v4 = vpop.f32.mrf.mxu0  ;;  %v689_v8 = vpop.f32.mrf.mxu3  ;;  %1377 = vmatpush.msra.mxu0 %v367_v57  ;;  %v493_v57 = vadd.f32 %v2630_v48, %v2625_v41 }
 0x123   :  { %v2723_v17 = vadd.f32 %v689_v8, %v577_v63  ;;  %v177_v63 = vld [vmem:[#allocation2 + $0x2f8] sm:$0xff]  ;;  %v490_v8 = vadd.f32 %v2623_v37, %v2625_v41 }
 0x125   :  { %756 = vmatmul.f32.gmra.mxu2 %v168_v9  ;;  %982 = vmatmul.f32.gmra.mxu0 %v170_v13  ;;  %v399_v13 = vld [vmem:[#allocation5 + $0x3e8] sm:$0xff] }
 0x126   :  { %v2725_v24 = vpop.f32.mrf.mxu1  ;;  %1490 = vmatpush.msra.mxu1 %v399_v13 }
 0x127   :  { %869 = vmatmul.f32.gmra.mxu3 %v169_v18 }
 0x128   :  { %v579_v29 = vpop.f32.mrf.mxu2 }
 0x129   :  { %v580_v31 = vadd.f32 %v579_v29, %v2625_v41  ;;  %1095 = vmatmul.f32.gmra.mxu1 %v171_v25  ;;  %v180_v25 = vld [vmem:[#allocation2 + $0x310] sm:$0xff]  ;;  %v182_v29 = vld [vmem:[#allocation2 + $0x320] sm:$0xff] }
 0x12a   :  { %v2728_v35 = vpop.f32.mrf.mxu0  ;;  %v692_v40 = vpop.f32.mrf.mxu3 }
 0x12b   :  { %v2730_v51 = vadd.f32 %v692_v40, %v580_v31  ;;  %v603_v40 = vadd.f32 %v2627_v43, %v490_v8  ;;  %v187_v8 = vld [vmem:[#allocation2 + $0x348] sm:$0xff] }
 0x12d   :  { %3204 = vst [vmem:[#allocation15_spill] sm:$0xff] %v2730_v51  ;;  %759 = vmatmul.f32.gmra.mxu2 %v174_v42  ;;  %985 = vmatmul.f32.gmra.mxu0 %v176_v46  ;;  %v285_v42 = vld [vmem:[#allocation5 + $0x58] sm:$0xff] }
 0x12e   :  { %v2732_v60 = vpop.f32.mrf.mxu1  ;;  %1160 = vmatpush.msra.mxu2 %v285_v42  ;;  %v189_v51 = vld [vmem:[#allocation2 + $0x358] sm:$0xff] }
 0x12f   :  { %872 = vmatmul.f32.gmra.mxu3 %v175_v53  ;;  %v183_v53 = vld [vmem:[#allocation2 + $0x328] sm:$0xff] }
 0x130   :  { %v582_v2 = vpop.f32.mrf.mxu2 }
 0x131   :  { %v583_v9 = vadd.f32 %v582_v2, %v2625_v41  ;;  %1098 = vmatmul.f32.gmra.mxu1 %v177_v63  ;;  %v317_v2 = vld [vmem:[#allocation5 + $0x158] sm:$0xff] }
 0x132   :  { %v695_v18 = vpop.f32.mrf.mxu3  ;;  %v941_v19 = vpop.f32.mrf.mxu0  ;;  %1273 = vmatpush.msra.mxu3 %v317_v2 }
 0x133   :  { %v2737_v31 = vadd.f32 %v695_v18, %v583_v9  ;;  %v186_v18 = vld [vmem:[#allocation2 + $0x340] sm:$0xff] }
 0x135   :  { %3205 = vst [vmem:[#allocation16_spill] sm:$0xff] %v2737_v31  ;;  %762 = vmatmul.f32.gmra.mxu2 %v180_v25  ;;  %988 = vmatmul.f32.gmra.mxu0 %v182_v29  ;;  %v188_v31 = vld [vmem:[#allocation2 + $0x350] sm:$0xff]  ;;  %v606_v25 = vadd.f32 %v2634_v54, %v493_v57  ;;  %v194_v57 = vld [vmem:[#allocation2 + $0x380] sm:$0xff] }
 0x136   :  { %v1054_v46 = vpop.f32.mrf.mxu1  ;;  %v192_v54 = vld [vmem:[#allocation2 + $0x370] sm:$0xff] }
 0x137   :  { %875 = vmatmul.f32.gmra.mxu3 %v181_v33  ;;  %v365_v33 = vld [vmem:[#allocation5 + $0x2d8] sm:$0xff] }
 0x138   :  { %v715_v37 = vpop.f32.mrf.mxu2  ;;  %1378 = vmatpush.msra.mxu0 %v365_v33 }
 0x139   :  { %v716_v63 = vadd.f32 %v715_v37, %v603_v40  ;;  %1101 = vmatmul.f32.gmra.mxu1 %v183_v53  ;;  %v496_v53 = vadd.f32 %v2637_v58, %v2625_v41 }
 0x13a   :  { %v828_v13 = vpop.f32.mrf.mxu3  ;;  %v944_v9 = vpop.f32.mrf.mxu0 }
 0x13b   :  { %v829_v43 = vadd.f32 %v828_v13, %v716_v63  ;;  %v397_v63 = vld [vmem:[#allocation5 + $0x3d8] sm:$0xff] }
 0x13c   :  { %1491 = vmatpush.msra.mxu1 %v397_v63 }
 0x13d   :  { %765 = vmatmul.f32.gmra.mxu2 %v186_v18  ;;  %991 = vmatmul.f32.gmra.mxu0 %v188_v31  ;;  %v942_v29 = vadd.f32 %v941_v19, %v829_v43  ;;  %v193_v31 = vld [vmem:[#allocation2 + $0x378] sm:$0xff]  ;;  %v609_v18 = vadd.f32 %v2641_v1, %v496_v53  ;;  %v283_v43 = vld [vmem:[#allocation5 + $0x48] sm:$0xff]  ;;  %v198_v1 = vld [vmem:[#allocation2 + $0x3a0] sm:$0xff] }
 0x13e   :  { %v1057_v42 = vpop.f32.mrf.mxu1  ;;  %1161 = vmatpush.msra.mxu2 %v283_v43  ;;  %v200_v53 = vld [vmem:[#allocation2 + $0x3b0] sm:$0xff] }
 0x13f   :  { %v2743_v48 = vadd.f32 %v1054_v46, %v942_v29  ;;  %878 = vmatmul.f32.gmra.mxu3 %v187_v8  ;;  %v195_v29 = vld [vmem:[#allocation2 + $0x388] sm:$0xff] }
 0x140   :  { %v718_v40 = vpop.f32.mrf.mxu2 }
 0x141   :  { %v719_v37 = vadd.f32 %v718_v40, %v606_v25  ;;  %1104 = vmatmul.f32.gmra.mxu1 %v189_v51  ;;  %v499_v25 = vadd.f32 %v2644_v6, %v2625_v41  ;;  %v315_v40 = vld [vmem:[#allocation5 + $0x148] sm:$0xff] }
 0x142   :  { %v831_v2 = vpop.f32.mrf.mxu3  ;;  %v947_v13 = vpop.f32.mrf.mxu0  ;;  %1274 = vmatpush.msra.mxu3 %v315_v40  ;;  %v205_v40 = vld [vmem:[#allocation2 + $0x3d8] sm:$0xff] }
 0x143   :  { %v832_v19 = vadd.f32 %v831_v2, %v719_v37  ;;  %v199_v2 = vld [vmem:[#allocation2 + $0x3a8] sm:$0xff] }
 0x145   :  { %768 = vmatmul.f32.gmra.mxu2 %v192_v54  ;;  %994 = vmatmul.f32.gmra.mxu0 %v194_v57  ;;  %v945_v46 = vadd.f32 %v944_v9, %v832_v19  ;;  %v612_v54 = vadd.f32 %v2648_v12, %v499_v25  ;;  %v363_v57 = vld [vmem:[#allocation5 + $0x2c8] sm:$0xff]  ;;  %v204_v12 = vld [vmem:[#allocation2 + $0x3d0] sm:$0xff]  ;;  %v206_v25 = vld [vmem:[#allocation2 + $0x3e0] sm:$0xff] }
 0x146   :  { %v1060_v8 = vpop.f32.mrf.mxu1  ;;  %1379 = vmatpush.msra.mxu0 %v363_v57  ;;  %v313_v57 = vld [vmem:[#allocation5 + $0x138] sm:$0xff] }
 0x147   :  { %v2748_v58 = vadd.f32 %v1057_v42, %v945_v46  ;;  %881 = vmatmul.f32.gmra.mxu3 %v193_v31  ;;  %v201_v31 = vld [vmem:[#allocation2 + $0x3b8] sm:$0xff]  ;;  %v502_v46 = vadd.f32 %v2651_v16, %v2625_v41 }
 0x148   :  { %v721_v51 = vpop.f32.mrf.mxu2  ;;  %1275 = vmatpush.msra.mxu3 %v313_v57  ;;  %v279_v57 = vld [vmem:[#allocation5 + $0x28] sm:$0xff] }
 0x149   :  { %v722_v33 = vadd.f32 %v721_v51, %v609_v18  ;;  %1107 = vmatmul.f32.gmra.mxu1 %v195_v29  ;;  %v395_v29 = vld [vmem:[#allocation5 + $0x3c8] sm:$0xff] }
 0x14a   :  { %v834_v37 = vpop.f32.mrf.mxu3  ;;  %v950_v63 = vpop.f32.mrf.mxu0  ;;  %1492 = vmatpush.msra.mxu1 %v395_v29 }
 0x14b   :  { %v835_v9 = vadd.f32 %v834_v37, %v722_v33  ;;  %v615_v37 = vadd.f32 %v2655_v23, %v502_v46  ;;  %v210_v23 = vld [vmem:[#allocation2 + $0x400] sm:$0xff]  ;;  %v212_v46 = vld [vmem:[#allocation2 + $0x410] sm:$0xff] }
 0x14d   :  { %771 = vmatmul.f32.gmra.mxu2 %v198_v1  ;;  %997 = vmatmul.f32.gmra.mxu0 %v200_v53  ;;  %v948_v42 = vadd.f32 %v947_v13, %v835_v9  ;;  %v281_v1 = vld [vmem:[#allocation5 + $0x38] sm:$0xff]  ;;  %v207_v9 = vld [vmem:[#allocation2 + $0x3e8] sm:$0xff] }
 0x14e   :  { %v1063_v19 = vpop.f32.mrf.mxu1  ;;  %1162 = vmatpush.msra.mxu2 %v281_v1 }
 0x14f   :  { %v2753_v6 = vadd.f32 %v1060_v8, %v948_v42  ;;  %884 = vmatmul.f32.gmra.mxu3 %v199_v2 }
 0x150   :  { %v724_v18 = vpop.f32.mrf.mxu2  ;;  %1163 = vmatpush.msra.mxu2 %v279_v57  ;;  %v230_v57 = vld [vmem:[#allocation2 + $0x4a0] sm:$0xff] }
 0x151   :  { %v725_v43 = vadd.f32 %v724_v18, %v612_v54  ;;  %1110 = vmatmul.f32.gmra.mxu1 %v201_v31  ;;  %v505_v54 = vadd.f32 %v2658_v28, %v2625_v41 }
 0x152   :  { %v837_v51 = vpop.f32.mrf.mxu3  ;;  %v953_v33 = vpop.f32.mrf.mxu0 }
 0x153   :  { %v838_v13 = vadd.f32 %v837_v51, %v725_v43  ;;  %v211_v43 = vld [vmem:[#allocation2 + $0x408] sm:$0xff]  ;;  %v618_v29 = vadd.f32 %v2662_v34, %v505_v54  ;;  %v361_v51 = vld [vmem:[#allocation5 + $0x2b8] sm:$0xff]  ;;  %v216_v34 = vld [vmem:[#allocation2 + $0x430] sm:$0xff] }
 0x154   :  { %1380 = vmatpush.msra.mxu0 %v361_v51  ;;  %v217_v54 = vld [vmem:[#allocation2 + $0x438] sm:$0xff] }
 0x155   :  { %774 = vmatmul.f32.gmra.mxu2 %v204_v12  ;;  %1000 = vmatmul.f32.gmra.mxu0 %v206_v25  ;;  %v951_v8 = vadd.f32 %v950_v63, %v838_v13  ;;  %v213_v25 = vld [vmem:[#allocation2 + $0x418] sm:$0xff] }
 0x156   :  { %v1066_v53 = vpop.f32.mrf.mxu1 }
 0x157   :  { %v2758_v16 = vadd.f32 %v1063_v19, %v951_v8  ;;  %887 = vmatmul.f32.gmra.mxu3 %v205_v40  ;;  %v508_v40 = vadd.f32 %v2665_v39, %v2625_v41  ;;  %v393_v8 = vld [vmem:[#allocation5 + $0x3b8] sm:$0xff] }
 0x158   :  { %v727_v2 = vpop.f32.mrf.mxu2  ;;  %1493 = vmatpush.msra.mxu1 %v393_v8 }
 0x159   :  { %v728_v42 = vadd.f32 %v727_v2, %v615_v37  ;;  %1113 = vmatmul.f32.gmra.mxu1 %v207_v9  ;;  %v218_v2 = vld [vmem:[#allocation2 + $0x440] sm:$0xff] }
 0x15a   :  { %v840_v31 = vpop.f32.mrf.mxu3  ;;  %v956_v18 = vpop.f32.mrf.mxu0 }
 0x15b   :  { %v841_v63 = vadd.f32 %v840_v31, %v728_v42  ;;  %v621_v42 = vadd.f32 %v2669_v49, %v508_v40  ;;  %v222_v49 = vld [vmem:[#allocation2 + $0x460] sm:$0xff] }
 0x15d   :  { %777 = vmatmul.f32.gmra.mxu2 %v210_v23  ;;  %1003 = vmatmul.f32.gmra.mxu0 %v212_v46  ;;  %v954_v19 = vadd.f32 %v953_v33, %v841_v63  ;;  %v219_v23 = vld [vmem:[#allocation2 + $0x448] sm:$0xff]  ;;  %v511_v63 = vadd.f32 %v2672_v56, %v2625_v41 }
 0x15e   :  { %v1069_v12 = vpop.f32.mrf.mxu1 }
 0x15f   :  { %v2763_v28 = vadd.f32 %v1066_v53, %v954_v19  ;;  %890 = vmatmul.f32.gmra.mxu3 %v211_v43  ;;  %v624_v40 = vadd.f32 %v2676_v0, %v511_v63  ;;  %v228_v0 = vld [vmem:[#allocation2 + $0x490] sm:$0xff]  ;;  %v277_v63 = vld [vmem:[#allocation5 + $0x18] sm:$0xff] }
 0x160   :  { %v730_v13 = vpop.f32.mrf.mxu2  ;;  %1164 = vmatpush.msra.mxu2 %v277_v63  ;;  %v241_v63 = vld [vmem:[#allocation2 + $0x4f8] sm:$0xff] }
 0x161   :  { %v731_v37 = vadd.f32 %v730_v13, %v618_v29  ;;  %1116 = vmatmul.f32.gmra.mxu1 %v213_v25  ;;  %v311_v29 = vld [vmem:[#allocation5 + $0x128] sm:$0xff]  ;;  %v224_v25 = vld [vmem:[#allocation2 + $0x470] sm:$0xff] }
 0x162   :  { %v843_v1 = vpop.f32.mrf.mxu3  ;;  %v959_v9 = vpop.f32.mrf.mxu0  ;;  %1276 = vmatpush.msra.mxu3 %v311_v29  ;;  %v223_v13 = vld [vmem:[#allocation2 + $0x468] sm:$0xff] }
 0x163   :  { %v844_v33 = vadd.f32 %v843_v1, %v731_v37  ;;  %v359_v37 = vld [vmem:[#allocation5 + $0x2a8] sm:$0xff]  ;;  %v225_v1 = vld [vmem:[#allocation2 + $0x478] sm:$0xff] }
 0x164   :  { %1381 = vmatpush.msra.mxu0 %v359_v37  ;;  %v231_v29 = vld [vmem:[#allocation2 + $0x4a8] sm:$0xff] }
 0x165   :  { %780 = vmatmul.f32.gmra.mxu2 %v216_v34  ;;  %1006 = vmatmul.f32.gmra.mxu0 %v218_v2  ;;  %v957_v53 = vadd.f32 %v956_v18, %v844_v33  ;;  %v514_v2 = vadd.f32 %v2679_v5, %v2625_v41  ;;  %v235_v37 = vld [vmem:[#allocation2 + $0x4c8] sm:$0xff] }
 0x166   :  { %v1072_v31 = vpop.f32.mrf.mxu1 }
 0x167   :  { %v2768_v39 = vadd.f32 %v1069_v12, %v957_v53  ;;  %893 = vmatmul.f32.gmra.mxu3 %v217_v54  ;;  %v391_v54 = vld [vmem:[#allocation5 + $0x3a8] sm:$0xff] }
 0x168   :  { %v733_v46 = vpop.f32.mrf.mxu2  ;;  %1494 = vmatpush.msra.mxu1 %v391_v54 }
 0x169   :  { %v734_v43 = vadd.f32 %v733_v46, %v621_v42  ;;  %1119 = vmatmul.f32.gmra.mxu1 %v219_v23  ;;  %v229_v23 = vld [vmem:[#allocation2 + $0x498] sm:$0xff]  ;;  %v627_v46 = vadd.f32 %v2683_v15, %v514_v2  ;;  %v234_v15 = vld [vmem:[#allocation2 + $0x4c0] sm:$0xff] }
 0x16a   :  { %v846_v19 = vpop.f32.mrf.mxu3  ;;  %v962_v51 = vpop.f32.mrf.mxu0 }
 0x16b   :  { %v847_v18 = vadd.f32 %v846_v19, %v734_v43 }
 0x16d   :  { %783 = vmatmul.f32.gmra.mxu2 %v222_v49  ;;  %1009 = vmatmul.f32.gmra.mxu0 %v224_v25  ;;  %v960_v12 = vadd.f32 %v959_v9, %v847_v18  ;;  %v517_v49 = vadd.f32 %v2686_v22, %v2625_v41  ;;  %v309_v18 = vld [vmem:[#allocation5 + $0x118] sm:$0xff] }
 0x16e   :  { %v1075_v8 = vpop.f32.mrf.mxu1  ;;  %1277 = vmatpush.msra.mxu3 %v309_v18 }
 0x16f   :  { %v2773_v56 = vadd.f32 %v1072_v31, %v960_v12  ;;  %896 = vmatmul.f32.gmra.mxu3 %v223_v13  ;;  %v236_v12 = vld [vmem:[#allocation2 + $0x4d0] sm:$0xff] }
 0x170   :  { %v736_v34 = vpop.f32.mrf.mxu2 }
 0x171   :  { %v737_v33 = vadd.f32 %v736_v34, %v624_v40  ;;  %1122 = vmatmul.f32.gmra.mxu1 %v225_v1  ;;  %v630_v1 = vadd.f32 %v2690_v30, %v517_v49  ;;  %v357_v34 = vld [vmem:[#allocation5 + $0x298] sm:$0xff]  ;;  %v240_v30 = vld [vmem:[#allocation2 + $0x4f0] sm:$0xff] }
 0x172   :  { %v849_v42 = vpop.f32.mrf.mxu3  ;;  %v965_v53 = vpop.f32.mrf.mxu0  ;;  %1382 = vmatpush.msra.mxu0 %v357_v34  ;;  %v353_v49 = vld [vmem:[#allocation5 + $0x278] sm:$0xff]  ;;  %v248_v34 = vld [vmem:[#allocation2 + $0x530] sm:$0xff] }
 0x173   :  { %v850_v9 = vadd.f32 %v849_v42, %v737_v33  ;;  %v237_v33 = vld [vmem:[#allocation2 + $0x4d8] sm:$0xff]  ;;  %v520_v42 = vadd.f32 %v2693_v36, %v2625_v41 }
 0x175   :  { %786 = vmatmul.f32.gmra.mxu2 %v228_v0  ;;  %1012 = vmatmul.f32.gmra.mxu0 %v230_v57  ;;  %v963_v31 = vadd.f32 %v962_v51, %v850_v9  ;;  %v389_v57 = vld [vmem:[#allocation5 + $0x398] sm:$0xff] }
 0x176   :  { %v1078_v43 = vpop.f32.mrf.mxu1  ;;  %1495 = vmatpush.msra.mxu1 %v389_v57 }
 0x177   :  { %v2778_v5 = vadd.f32 %v1075_v8, %v963_v31  ;;  %899 = vmatmul.f32.gmra.mxu3 %v229_v23  ;;  %v355_v31 = vld [vmem:[#allocation5 + $0x288] sm:$0xff] }
 0x178   :  { %v739_v19 = vpop.f32.mrf.mxu2  ;;  %1383 = vmatpush.msra.mxu0 %v355_v31 }
 0x179   :  { %v740_v25 = vadd.f32 %v739_v19, %v627_v46  ;;  %1125 = vmatmul.f32.gmra.mxu1 %v231_v29  ;;  %v242_v46 = vld [vmem:[#allocation2 + $0x500] sm:$0xff]  ;;  %v275_v19 = vld [vmem:[#allocation5 + $0x8] sm:$0xff] }
 0x17a   :  { %v852_v13 = vpop.f32.mrf.mxu3  ;;  %v968_v40 = vpop.f32.mrf.mxu0  ;;  %1165 = vmatpush.msra.mxu2 %v275_v19  ;;  %1384 = vmatpush.msra.mxu0 %v353_v49  ;;  %v252_v49 = vld [vmem:[#allocation2 + $0x550] sm:$0xff] }
 0x17b   :  { %v853_v51 = vadd.f32 %v852_v13, %v740_v25  ;;  %v243_v25 = vld [vmem:[#allocation2 + $0x508] sm:$0xff] }
 0x17c   :  { %v351_v13 = vld [vmem:[#allocation5 + $0x268] sm:$0xff] }
 0x17d   :  { %789 = vmatmul.f32.gmra.mxu2 %v234_v15  ;;  %1015 = vmatmul.f32.gmra.mxu0 %v236_v12  ;;  %v966_v8 = vadd.f32 %v965_v53, %v853_v51  ;;  %v523_v12 = vadd.f32 %v2700_v59, %v2625_v41  ;;  %v345_v59 = vld [vmem:[#allocation5 + $0x238] sm:$0xff] }
 0x17e   :  { %v1081_v2 = vpop.f32.mrf.mxu1  ;;  %1385 = vmatpush.msra.mxu0 %v351_v13  ;;  %v339_v13 = vld [vmem:[#allocation5 + $0x208] sm:$0xff] }
 0x17f   :  { %v2783_v22 = vadd.f32 %v1078_v43, %v966_v8  ;;  %902 = vmatmul.f32.gmra.mxu3 %v235_v37  ;;  %v633_v43 = vadd.f32 %v2697_v50, %v520_v42  ;;  %v307_v50 = vld [vmem:[#allocation5 + $0x108] sm:$0xff]  ;;  %v349_v37 = vld [vmem:[#allocation5 + $0x258] sm:$0xff]  ;;  %v246_v8 = vld [vmem:[#allocation2 + $0x520] sm:$0xff]  ;;  %v636_v42 = vadd.f32 %v2704_v7, %v523_v12 }
 0x180   :  { %v742_v54 = vpop.f32.mrf.mxu2  ;;  %1278 = vmatpush.msra.mxu3 %v307_v50  ;;  %1386 = vmatpush.msra.mxu0 %v349_v37  ;;  %v341_v7 = vld [vmem:[#allocation5 + $0x218] sm:$0xff] }
 0x181   :  { %v743_v0 = vadd.f32 %v742_v54, %v630_v1  ;;  %1128 = vmatmul.f32.gmra.mxu1 %v237_v33  ;;  %v247_v54 = vld [vmem:[#allocation2 + $0x528] sm:$0xff]  ;;  %v253_v12 = vld [vmem:[#allocation2 + $0x558] sm:$0xff] }
 0x182   :  { %v855_v9 = vpop.f32.mrf.mxu3  ;;  %v971_v23 = vpop.f32.mrf.mxu0  ;;  %v433_v50 = vld [vmem:[#allocation5 + $0x4f8] sm:$0xff] }
 0x183   :  { %v856_v53 = vadd.f32 %v855_v9, %v743_v0  ;;  %v249_v9 = vld [vmem:[#allocation2 + $0x538] sm:$0xff]  ;;  %1602 = vmatpush.msrb.mxu2 %v433_v50 }
 0x184   :  { %v381_v37 = vld [vmem:[#allocation5 + $0x358] sm:$0xff] }
 0x185   :  { %792 = vmatmul.f32.gmra.mxu2 %v240_v30  ;;  %1018 = vmatmul.f32.gmra.mxu0 %v242_v46  ;;  %v969_v29 = vadd.f32 %v968_v40, %v856_v53  ;;  %v387_v46 = vld [vmem:[#allocation5 + $0x388] sm:$0xff] }
 0x186   :  { %v1084_v36 = vpop.f32.mrf.mxu1  ;;  %v343_v53 = vld [vmem:[#allocation5 + $0x228] sm:$0xff]  ;;  %1496 = vmatpush.msra.mxu1 %v387_v46  ;;  %v260_v46 = vld [vmem:[#allocation2 + $0x590] sm:$0xff] }
 0x187   :  { %v2788_v18 = vadd.f32 %v1081_v2, %v969_v29  ;;  %905 = vmatmul.f32.gmra.mxu3 %v241_v63  ;;  %v347_v2 = vld [vmem:[#allocation5 + $0x248] sm:$0xff]  ;;  %v526_v63 = vadd.f32 %v2707_v14, %v2625_v41  ;;  %v385_v29 = vld [vmem:[#allocation5 + $0x378] sm:$0xff] }
 0x188   :  { %v745_v15 = vpop.f32.mrf.mxu2  ;;  %1387 = vmatpush.msra.mxu0 %v347_v2  ;;  %1497 = vmatpush.msra.mxu1 %v385_v29  ;;  %v261_v29 = vld [vmem:[#allocation2 + $0x598] sm:$0xff] }
 0x189   :  { %v746_v51 = vadd.f32 %v745_v15, %v633_v43  ;;  %1131 = vmatmul.f32.gmra.mxu1 %v243_v25  ;;  %v254_v25 = vld [vmem:[#allocation2 + $0x560] sm:$0xff]  ;;  %v383_v15 = vld [vmem:[#allocation5 + $0x368] sm:$0xff] }
 0x18a   :  { %v858_v40 = vpop.f32.mrf.mxu3  ;;  %v974_v1 = vpop.f32.mrf.mxu0  ;;  %1388 = vmatpush.msra.mxu0 %v345_v59  ;;  %1498 = vmatpush.msra.mxu1 %v383_v15 }
 0x18b   :  { %v859_v33 = vadd.f32 %v858_v40, %v746_v51  ;;  %v639_v51 = vadd.f32 %v2711_v26, %v526_v63  ;;  %v465_v26 = vld [vmem:[#allocation5 + $0x5f8] sm:$0xff] }
 0x18c   :  { %1389 = vmatpush.msra.mxu0 %v343_v53  ;;  %1499 = vmatpush.msra.mxu1 %v381_v37  ;;  %v375_v53 = vld [vmem:[#allocation5 + $0x328] sm:$0xff] }
 0x18d   :  { %795 = vmatmul.f32.gmra.mxu2 %v246_v8  ;;  %1021 = vmatmul.f32.gmra.mxu0 %v248_v34  ;;  %v972_v0 = vadd.f32 %v971_v23, %v859_v33  ;;  %v255_v8 = vld [vmem:[#allocation2 + $0x568] sm:$0xff] }
 0x18e   :  { %v1087_v57 = vpop.f32.mrf.mxu1  ;;  %1390 = vmatpush.msra.mxu0 %v341_v7  ;;  %v379_v33 = vld [vmem:[#allocation5 + $0x348] sm:$0xff]  ;;  %1715 = vmatpush.msrb.mxu3 %v465_v26 }
 0x18f   :  { %v2793_v30 = vadd.f32 %v1084_v36, %v972_v0  ;;  %908 = vmatmul.f32.gmra.mxu3 %v247_v54  ;;  %1500 = vmatpush.msra.mxu1 %v379_v33  ;;  %v529_v54 = vadd.f32 %v2714_v38, %v2625_v41  ;;  %v377_v0 = vld [vmem:[#allocation5 + $0x338] sm:$0xff]  ;;  %v267_v33 = vld [vmem:[#allocation2 + $0x5c8] sm:$0xff] }
 0x190   :  { %v748_v31 = vpop.f32.mrf.mxu2  ;;  %1391 = vmatpush.msra.mxu0 %v339_v13  ;;  %v463_v26 = vld [vmem:[#allocation5 + $0x5e8] sm:$0xff] }
 0x191   :  { %v749_v43 = vadd.f32 %v748_v31, %v636_v42  ;;  %1134 = vmatmul.f32.gmra.mxu1 %v249_v9  ;;  %v2802_v9 = vld [vmem:[#allocation2 + $0x580] sm:$0xff]  ;;  %v259_v31 = vld [vmem:[#allocation2 + $0x588] sm:$0xff]  ;;  %v642_v63 = vadd.f32 %v2718_v55, %v529_v54  ;;  %v535_v54 = vadd.f32 %v2728_v35, %v2625_v41  ;;  %1716 = vmatpush.msrb.mxu3 %v463_v26 }
 0x192   :  { %v861_v23 = vpop.f32.mrf.mxu3  ;;  %v977_v19 = vpop.f32.mrf.mxu0  ;;  %1501 = vmatpush.msra.mxu1 %v377_v0 }
 0x193   :  { %v862_v36 = vadd.f32 %v861_v23, %v749_v43  ;;  %v373_v43 = vld [vmem:[#allocation5 + $0x318] sm:$0xff] }
 0x194   :  { %1502 = vmatpush.msra.mxu1 %v375_v53  ;;  %v648_v53 = vadd.f32 %v2732_v60, %v535_v54  ;;  %v2255_v54 = vld [vmem:[#allocation2 + $0x30] sm:$0xff] }
 0x195   :  { %798 = vmatmul.f32.gmra.mxu2 %v252_v49  ;;  %1024 = vmatmul.f32.gmra.mxu0 %v254_v25  ;;  %v975_v14 = vadd.f32 %v974_v1, %v862_v36  ;;  %v371_v49 = vld [vmem:[#allocation5 + $0x308] sm:$0xff]  ;;  %v532_v36 = vadd.f32 %v2721_v4, %v2625_v41  ;;  %v273_v41 = vld [vmem:[#allocation2 + $0x5f8] sm:$0xff] }
 0x196   :  { %v1090_v40 = vpop.f32.mrf.mxu1  ;;  %1503 = vmatpush.msra.mxu1 %v373_v43 }
 0x197   :  { %v2798_v34 = vadd.f32 %v1087_v57, %v975_v14  ;;  %911 = vmatmul.f32.gmra.mxu3 %v253_v12  ;;  %v2810_v12 = vld [vmem:[#allocation2 + $0x5b0] sm:$0xff]  ;;  %v2812_v14 = vld [vmem:[#allocation2 + $0x5b8] sm:$0xff]  ;;  %v645_v50 = vadd.f32 %v2725_v24, %v532_v36 }
 0x198   :  { %v751_v2 = vpop.f32.mrf.mxu2  ;;  %1504 = vmatpush.msra.mxu1 %v371_v49  ;;  %v2252_v36 = vld [vmem:[#allocation2 + $0x10] sm:$0xff] }
 0x199   :  { %v752_v42 = vadd.f32 %v751_v2, %v639_v51  ;;  %1137 = vmatmul.f32.gmra.mxu1 %v255_v8 }
 0x19a   :  { %v864_v1 = vpop.f32.mrf.mxu3  ;;  %v980_v59 = vpop.f32.mrf.mxu0 }
 0x19b   :  { %v865_v57 = vadd.f32 %v864_v1, %v752_v42  ;;  %v2821_v1 = vld [vmem:[#allocation2 + $0x5e0] sm:$0xff] }
 0x19d   :  { %801 = vmatmul.f32.gmra.mxu2 %v2802_v9  ;;  %1027 = vmatmul.f32.gmra.mxu0 %v260_v46  ;;  %v978_v38 = vadd.f32 %v977_v19, %v865_v57  ;;  %v266_v19 = vld [vmem:[#allocation2 + $0x5c0] sm:$0xff]  ;;  %v2823_v57 = vld [vmem:[#allocation2 + $0x5e8] sm:$0xff] }
 0x19e   :  { %v1093_v7 = vpop.f32.mrf.mxu1 }
 0x19f   :  { %v2806_v23 = vadd.f32 %v1090_v40, %v978_v38  ;;  %914 = vmatmul.f32.gmra.mxu3 %v259_v31  ;;  %v431_v40 = vld [vmem:[#allocation5 + $0x4e8] sm:$0xff] }
 0x1a0   :  { %v754_v25 = vpop.f32.mrf.mxu2  ;;  %1603 = vmatpush.msrb.mxu2 %v431_v40  ;;  %v461_v40 = vld [vmem:[#allocation5 + $0x5d8] sm:$0xff] }
 0x1a1   :  { %v755_v13 = vadd.f32 %v754_v25, %v642_v63  ;;  %1140 = vmatmul.f32.gmra.mxu1 %v261_v29  ;;  %v2251_v25 = vld [vmem:[#allocation2] sm:$0xff]  ;;  %1717 = vmatpush.msrb.mxu3 %v461_v40 }
 0x1a2   :  { %v867_v55 = vpop.f32.mrf.mxu3  ;;  %v983_v15 = vpop.f32.mrf.mxu0  ;;  %v2264_v40 = vld [vmem:[#allocation2 + $0xa0] sm:$0xff] }
 0x1a3   :  { %v868_v51 = vadd.f32 %v867_v55, %v755_v13  ;;  %v429_v13 = vld [vmem:[#allocation5 + $0x4d8] sm:$0xff] }
 0x1a4   :  { %1604 = vmatpush.msrb.mxu2 %v429_v13  ;;  %v2262_v13 = vld [vmem:[#allocation2 + $0x78] sm:$0xff] }
 0x1a5   :  { %804 = vmatmul.f32.gmra.mxu2 %v2810_v12  ;;  %1030 = vmatmul.f32.gmra.mxu0 %v266_v19  ;;  %v981_v37 = vadd.f32 %v980_v59, %v868_v51  ;;  %v272_v59 = vld [vmem:[#allocation2 + $0x5f0] sm:$0xff]  ;;  %v2253_v19 = vld [vmem:[#allocation2 + $0x8] sm:$0xff] }
 0x1a6   :  { %v1096_v8 = vpop.f32.mrf.mxu1 }
 0x1a7   :  { %v2816_v4 = vadd.f32 %v1093_v7, %v981_v37  ;;  %917 = vmatmul.f32.gmra.mxu3 %v2812_v14  ;;  %v2254_v37 = vld [vmem:[#allocation2 + $0x18] sm:$0xff] }
 0x1a8   :  { %v757_v2 = vpop.f32.mrf.mxu2 }
 0x1a9   :  { %v758_v42 = vadd.f32 %v757_v2, %v645_v50  ;;  %1143 = vmatmul.f32.gmra.mxu1 %v267_v33 }
 0x1aa   :  { %v870_v24 = vpop.f32.mrf.mxu3  ;;  %v986_v0 = vpop.f32.mrf.mxu0 }
 0x1ab   :  { %v871_v46 = vadd.f32 %v870_v24, %v758_v42  ;;  %v2256_v42 = vld [vmem:[#allocation2 + $0x40] sm:$0xff] }
 0x1ad   :  { %807 = vmatmul.f32.gmra.mxu2 %v2821_v1  ;;  %1033 = vmatmul.f32.gmra.mxu0 %v272_v59  ;;  %v984_v31 = vadd.f32 %v983_v15, %v871_v46  ;;  %v2257_v59 = vld [vmem:[#allocation2 + $0x38] sm:$0xff] }
 0x1ae   :  { %v1099_v63 = vpop.f32.mrf.mxu1 }
 0x1af   :  { %v2827_v35 = vadd.f32 %v1096_v8, %v984_v31  ;;  %920 = vmatmul.f32.gmra.mxu3 %v2823_v57 }
 0x1b0   :  { %v760_v38 = vpop.f32.mrf.mxu2 }
 0x1b1   :  { %v761_v43 = vadd.f32 %v760_v38, %v648_v53  ;;  %1146 = vmatmul.f32.gmra.mxu1 %v273_v41  ;;  %v2258_v53 = vld [vmem:[#allocation2 + $0x48] sm:$0xff]  ;;  %v2259_v38 = vld [vmem:[#allocation2 + $0x60] sm:$0xff] }
 0x1b2   :  { %v873_v7 = vpop.f32.mrf.mxu3  ;;  %v989_v29 = vpop.f32.mrf.mxu0 }
 0x1b3   :  { %v874_v49 = vadd.f32 %v873_v7, %v761_v43  ;;  %v2260_v43 = vld [vmem:[#allocation2 + $0x70] sm:$0xff] }
 0x1b5   :  { %1166 = vmatmul.f32.vlgmr.msra.gmra.mxu2 %v2251_v25  ;;  %1392 = vmatmul.f32.vlgmr.msra.gmra.mxu0 %v2252_v36  ;;  %v987_v60 = vadd.f32 %v986_v0, %v874_v49  ;;  %v427_v49 = vld [vmem:[#allocation5 + $0x4c8] sm:$0xff] }
 0x1b6   :  { %v1102_v55 = vpop.f32.mrf.mxu1  ;;  %1605 = vmatpush.msrb.mxu2 %v427_v49  ;;  %v2261_v36 = vld [vmem:[#allocation2 + $0x68] sm:$0xff]  ;;  %v2270_v49 = vld [vmem:[#allocation2 + $0xd8] sm:$0xff] }
 0x1b7   :  { %v2830_v15 = vadd.f32 %v1099_v63, %v987_v60  ;;  %1279 = vmatmul.f32.vlgmr.msra.gmra.mxu3 %v2253_v19 }
 0x1b8   :  { %v763_v51 = vpop.f32.mrf.mxu2 }
 0x1b9   :  { %v764_v50 = vadd.f32 %v763_v51, %v2632_v52  ;;  %1505 = vmatmul.f32.vlgmr.msra.gmra.mxu1 %v2254_v37  ;;  %v2263_v37 = vld [vmem:[#allocation2 + $0x90] sm:$0xff] }
 0x1ba   :  { %v876_v8 = vpop.f32.mrf.mxu3  ;;  %v992_v33 = vpop.f32.mrf.mxu0 }
 0x1bb   :  { %v877_v2 = vadd.f32 %v876_v8, %v764_v50 }
 0x1bd   :  { %1169 = vmatmul.f32.gmra.mxu2 %v2255_v54  ;;  %1395 = vmatmul.f32.gmra.mxu0 %v2256_v42  ;;  %v990_v26 = vadd.f32 %v989_v29, %v877_v2  ;;  %v2265_v54 = vld [vmem:[#allocation2 + $0x98] sm:$0xff] }
 0x1be   :  { %v1105_v24 = vpop.f32.mrf.mxu1 }
 0x1bf   :  { %v2833_v0 = vadd.f32 %v1102_v55, %v990_v26  ;;  %1282 = vmatmul.f32.gmra.mxu3 %v2257_v59  ;;  %v459_v55 = vld [vmem:[#allocation5 + $0x5c8] sm:$0xff] }
 0x1c0   :  { %v766_v46 = vpop.f32.mrf.mxu2  ;;  %1718 = vmatpush.msrb.mxu3 %v459_v55  ;;  %v2266_v26 = vld [vmem:[#allocation2 + $0xa8] sm:$0xff]  ;;  %v2272_v55 = vld [vmem:[#allocation2 + $0x100] sm:$0xff] }
 0x1c1   :  { %v767_v52 = vadd.f32 %v766_v46, %v2639_v62  ;;  %1508 = vmatmul.f32.gmra.mxu1 %v2258_v53  ;;  %v2268_v53 = vld [vmem:[#allocation2 + $0xd0] sm:$0xff] }
 0x1c2   :  { %v879_v31 = vpop.f32.mrf.mxu3  ;;  %v995_v63 = vpop.f32.mrf.mxu0 }
 0x1c3   :  { %v880_v41 = vadd.f32 %v879_v31, %v767_v52  ;;  %v2267_v52 = vld [vmem:[#allocation2 + $0xc0] sm:$0xff] }
 0x1c5   :  { %1172 = vmatmul.f32.gmra.mxu2 %v2259_v38  ;;  %1398 = vmatmul.f32.gmra.mxu0 %v2260_v43  ;;  %v993_v7 = vadd.f32 %v992_v33, %v880_v41  ;;  %v425_v41 = vld [vmem:[#allocation5 + $0x4b8] sm:$0xff]  ;;  %v2269_v43 = vld [vmem:[#allocation2 + $0xc8] sm:$0xff] }
 0x1c6   :  { %v1108_v29 = vpop.f32.mrf.mxu1  ;;  %1606 = vmatpush.msrb.mxu2 %v425_v41  ;;  %v2278_v41 = vld [vmem:[#allocation2 + $0x138] sm:$0xff] }
 0x1c7   :  { %v2836_v25 = vadd.f32 %v1105_v24, %v993_v7  ;;  %1285 = vmatmul.f32.gmra.mxu3 %v2261_v36 }
 0x1c8   :  { %v769_v60 = vpop.f32.mrf.mxu2 }
 0x1c9   :  { %v770_v62 = vadd.f32 %v769_v60, %v2646_v10  ;;  %1511 = vmatmul.f32.gmra.mxu1 %v2262_v13  ;;  %v2271_v13 = vld [vmem:[#allocation2 + $0xf0] sm:$0xff] }
 0x1ca   :  { %v882_v19 = vpop.f32.mrf.mxu3  ;;  %v998_v51 = vpop.f32.mrf.mxu0 }
 0x1cb   :  { %v883_v50 = vadd.f32 %v882_v19, %v770_v62 }
 0x1cd   :  { %1175 = vmatmul.f32.gmra.mxu2 %v2263_v37  ;;  %1401 = vmatmul.f32.gmra.mxu0 %v2264_v40  ;;  %v996_v8 = vadd.f32 %v995_v63, %v883_v50  ;;  %v2273_v37 = vld [vmem:[#allocation2 + $0xf8] sm:$0xff] }
 0x1ce   :  { %v1111_v33 = vpop.f32.mrf.mxu1 }
 0x1cf   :  { %v2839_v2 = vadd.f32 %v1108_v29, %v996_v8  ;;  %1288 = vmatmul.f32.gmra.mxu3 %v2265_v54  ;;  %v457_v29 = vld [vmem:[#allocation5 + $0x5b8] sm:$0xff]  ;;  %v2274_v8 = vld [vmem:[#allocation2 + $0x108] sm:$0xff] }
 0x1d0   :  { %v772_v42 = vpop.f32.mrf.mxu2  ;;  %1719 = vmatpush.msrb.mxu3 %v457_v29  ;;  %v2280_v29 = vld [vmem:[#allocation2 + $0x160] sm:$0xff] }
 0x1d1   :  { %v773_v10 = vadd.f32 %v772_v42, %v2653_v20  ;;  %1514 = vmatmul.f32.gmra.mxu1 %v2266_v26  ;;  %v2276_v26 = vld [vmem:[#allocation2 + $0x130] sm:$0xff] }
 0x1d2   :  { %v885_v24 = vpop.f32.mrf.mxu3  ;;  %v1001_v59 = vpop.f32.mrf.mxu0 }
 0x1d3   :  { %v886_v46 = vadd.f32 %v885_v24, %v773_v10  ;;  %v2275_v10 = vld [vmem:[#allocation2 + $0x120] sm:$0xff] }
 0x1d5   :  { %1178 = vmatmul.f32.gmra.mxu2 %v2267_v52  ;;  %1404 = vmatmul.f32.gmra.mxu0 %v2268_v53  ;;  %v999_v31 = vadd.f32 %v998_v51, %v886_v46  ;;  %v423_v46 = vld [vmem:[#allocation5 + $0x4a8] sm:$0xff] }
 0x1d6   :  { %v1114_v63 = vpop.f32.mrf.mxu1  ;;  %1607 = vmatpush.msrb.mxu2 %v423_v46  ;;  %v2277_v53 = vld [vmem:[#allocation2 + $0x128] sm:$0xff]  ;;  %v2286_v46 = vld [vmem:[#allocation2 + $0x198] sm:$0xff] }
 0x1d7   :  { %v2842_v38 = vadd.f32 %v1111_v33, %v999_v31  ;;  %1291 = vmatmul.f32.gmra.mxu3 %v2269_v43 }
 0x1d8   :  { %v775_v7 = vpop.f32.mrf.mxu2 }
 0x1d9   :  { %v776_v20 = vadd.f32 %v775_v7, %v2660_v32  ;;  %1517 = vmatmul.f32.gmra.mxu1 %v2270_v49  ;;  %v2279_v49 = vld [vmem:[#allocation2 + $0x150] sm:$0xff] }
 0x1da   :  { %v888_v36 = vpop.f32.mrf.mxu3  ;;  %v1004_v60 = vpop.f32.mrf.mxu0 }
 0x1db   :  { %v889_v62 = vadd.f32 %v888_v36, %v776_v20 }
 0x1dd   :  { %1181 = vmatmul.f32.gmra.mxu2 %v2271_v13  ;;  %1407 = vmatmul.f32.gmra.mxu0 %v2272_v55  ;;  %v1002_v19 = vadd.f32 %v1001_v59, %v889_v62  ;;  %v2281_v13 = vld [vmem:[#allocation2 + $0x158] sm:$0xff] }
 0x1de   :  { %v1117_v51 = vpop.f32.mrf.mxu1 }
 0x1df   :  { %v2845_v50 = vadd.f32 %v1114_v63, %v1002_v19  ;;  %1294 = vmatmul.f32.gmra.mxu3 %v2273_v37  ;;  %v455_v63 = vld [vmem:[#allocation5 + $0x5a8] sm:$0xff] }
 0x1e0   :  { %v778_v40 = vpop.f32.mrf.mxu2  ;;  %1720 = vmatpush.msrb.mxu3 %v455_v63  ;;  %v2282_v19 = vld [vmem:[#allocation2 + $0x168] sm:$0xff]  ;;  %v2288_v63 = vld [vmem:[#allocation2 + $0x1c0] sm:$0xff] }
 0x1e1   :  { %v779_v32 = vadd.f32 %v778_v40, %v2667_v45  ;;  %1520 = vmatmul.f32.gmra.mxu1 %v2274_v8  ;;  %v2284_v8 = vld [vmem:[#allocation2 + $0x190] sm:$0xff] }
 0x1e2   :  { %v891_v33 = vpop.f32.mrf.mxu3  ;;  %v1007_v54 = vpop.f32.mrf.mxu0 }
 0x1e3   :  { %v892_v42 = vadd.f32 %v891_v33, %v779_v32  ;;  %v2283_v32 = vld [vmem:[#allocation2 + $0x180] sm:$0xff] }
 0x1e5   :  { %1184 = vmatmul.f32.gmra.mxu2 %v2275_v10  ;;  %1410 = vmatmul.f32.gmra.mxu0 %v2276_v26  ;;  %v1005_v24 = vadd.f32 %v1004_v60, %v892_v42  ;;  %v421_v42 = vld [vmem:[#allocation5 + $0x498] sm:$0xff]  ;;  %v2285_v26 = vld [vmem:[#allocation2 + $0x188] sm:$0xff] }
 0x1e6   :  { %v1120_v59 = vpop.f32.mrf.mxu1  ;;  %1608 = vmatpush.msrb.mxu2 %v421_v42  ;;  %v2294_v42 = vld [vmem:[#allocation2 + $0x1f8] sm:$0xff] }
 0x1e7   :  { %v2848_v52 = vadd.f32 %v1117_v51, %v1005_v24  ;;  %1297 = vmatmul.f32.gmra.mxu3 %v2277_v53 }
 0x1e8   :  { %v781_v31 = vpop.f32.mrf.mxu2 }
 0x1e9   :  { %v782_v45 = vadd.f32 %v781_v31, %v2674_v61  ;;  %1523 = vmatmul.f32.gmra.mxu1 %v2278_v41  ;;  %v2287_v41 = vld [vmem:[#allocation2 + $0x1b0] sm:$0xff] }
 0x1ea   :  { %v894_v43 = vpop.f32.mrf.mxu3  ;;  %v1010_v7 = vpop.f32.mrf.mxu0 }
 0x1eb   :  { %v895_v20 = vadd.f32 %v894_v43, %v782_v45 }
 0x1ed   :  { %1187 = vmatmul.f32.gmra.mxu2 %v2279_v49  ;;  %1413 = vmatmul.f32.gmra.mxu0 %v2280_v29  ;;  %v1008_v36 = vadd.f32 %v1007_v54, %v895_v20  ;;  %v2289_v49 = vld [vmem:[#allocation2 + $0x1b8] sm:$0xff] }
 0x1ee   :  { %v1123_v60 = vpop.f32.mrf.mxu1 }
 0x1ef   :  { %v2851_v62 = vadd.f32 %v1120_v59, %v1008_v36  ;;  %1300 = vmatmul.f32.gmra.mxu3 %v2281_v13  ;;  %v453_v59 = vld [vmem:[#allocation5 + $0x598] sm:$0xff]  ;;  %v2290_v36 = vld [vmem:[#allocation2 + $0x1c8] sm:$0xff] }
 0x1f0   :  { %v784_v55 = vpop.f32.mrf.mxu2  ;;  %1721 = vmatpush.msrb.mxu3 %v453_v59  ;;  %v2296_v59 = vld [vmem:[#allocation2 + $0x220] sm:$0xff] }
 0x1f1   :  { %v785_v61 = vadd.f32 %v784_v55, %v2681_v11  ;;  %1526 = vmatmul.f32.gmra.mxu1 %v2282_v19  ;;  %v2292_v19 = vld [vmem:[#allocation2 + $0x1f0] sm:$0xff] }
 0x1f2   :  { %v897_v51 = vpop.f32.mrf.mxu3  ;;  %v1013_v37 = vpop.f32.mrf.mxu0 }
 0x1f3   :  { %v898_v40 = vadd.f32 %v897_v51, %v785_v61  ;;  %v2291_v61 = vld [vmem:[#allocation2 + $0x1e0] sm:$0xff] }
 0x1f5   :  { %1190 = vmatmul.f32.gmra.mxu2 %v2283_v32  ;;  %1416 = vmatmul.f32.gmra.mxu0 %v2284_v8  ;;  %v1011_v33 = vadd.f32 %v1010_v7, %v898_v40  ;;  %v419_v40 = vld [vmem:[#allocation5 + $0x488] sm:$0xff] }
 0x1f6   :  { %v1126_v54 = vpop.f32.mrf.mxu1  ;;  %1609 = vmatpush.msrb.mxu2 %v419_v40  ;;  %v2293_v8 = vld [vmem:[#allocation2 + $0x1e8] sm:$0xff]  ;;  %v2302_v40 = vld [vmem:[#allocation2 + $0x258] sm:$0xff] }
 0x1f7   :  { %v2854_v10 = vadd.f32 %v1123_v60, %v1011_v33  ;;  %1303 = vmatmul.f32.gmra.mxu3 %v2285_v26 }
 0x1f8   :  { %v787_v24 = vpop.f32.mrf.mxu2 }
 0x1f9   :  { %v788_v11 = vadd.f32 %v787_v24, %v2688_v27  ;;  %1529 = vmatmul.f32.gmra.mxu1 %v2286_v46  ;;  %v2295_v46 = vld [vmem:[#allocation2 + $0x210] sm:$0xff] }
 0x1fa   :  { %v900_v53 = vpop.f32.mrf.mxu3  ;;  %v1016_v31 = vpop.f32.mrf.mxu0 }
 0x1fb   :  { %v901_v45 = vadd.f32 %v900_v53, %v788_v11 }
 0x1fd   :  { %1193 = vmatmul.f32.gmra.mxu2 %v2287_v41  ;;  %1419 = vmatmul.f32.gmra.mxu0 %v2288_v63  ;;  %v1014_v43 = vadd.f32 %v1013_v37, %v901_v45  ;;  %v2297_v41 = vld [vmem:[#allocation2 + $0x218] sm:$0xff] }
 0x1fe   :  { %v1129_v7 = vpop.f32.mrf.mxu1 }
 0x1ff   :  { %v2857_v20 = vadd.f32 %v1126_v54, %v1014_v43  ;;  %1306 = vmatmul.f32.gmra.mxu3 %v2289_v49  ;;  %v451_v54 = vld [vmem:[#allocation5 + $0x588] sm:$0xff] }
 0x200   :  { %v790_v29 = vpop.f32.mrf.mxu2  ;;  %1722 = vmatpush.msrb.mxu3 %v451_v54  ;;  %v2298_v43 = vld [vmem:[#allocation2 + $0x228] sm:$0xff]  ;;  %v2304_v54 = vld [vmem:[#allocation2 + $0x280] sm:$0xff] }
 0x201   :  { %v791_v27 = vadd.f32 %v790_v29, %v2695_v44  ;;  %1532 = vmatmul.f32.gmra.mxu1 %v2290_v36  ;;  %v2300_v36 = vld [vmem:[#allocation2 + $0x250] sm:$0xff] }
 0x202   :  { %v903_v60 = vpop.f32.mrf.mxu3  ;;  %v1019_v13 = vpop.f32.mrf.mxu0 }
 0x203   :  { %v904_v55 = vadd.f32 %v903_v60, %v791_v27  ;;  %v2299_v27 = vld [vmem:[#allocation2 + $0x240] sm:$0xff] }
 0x205   :  { %1196 = vmatmul.f32.gmra.mxu2 %v2291_v61  ;;  %1422 = vmatmul.f32.gmra.mxu0 %v2292_v19  ;;  %v1017_v51 = vadd.f32 %v1016_v31, %v904_v55  ;;  %v417_v55 = vld [vmem:[#allocation5 + $0x478] sm:$0xff]  ;;  %v2301_v19 = vld [vmem:[#allocation2 + $0x248] sm:$0xff] }
 0x206   :  { %v1132_v37 = vpop.f32.mrf.mxu1  ;;  %1610 = vmatpush.msrb.mxu2 %v417_v55  ;;  %v2309_v55 = vld [vmem:[#allocation2 + $0x2a8] sm:$0xff] }
 0x207   :  { %v2860_v32 = vadd.f32 %v1129_v7, %v1017_v51  ;;  %1309 = vmatmul.f32.gmra.mxu3 %v2293_v8 }
 0x208   :  { %v793_v33 = vpop.f32.mrf.mxu2 }
 0x209   :  { %v794_v44 = vadd.f32 %v793_v33, %v2702_v3  ;;  %1535 = vmatmul.f32.gmra.mxu1 %v2294_v42  ;;  %v2303_v42 = vld [vmem:[#allocation2 + $0x270] sm:$0xff] }
 0x20a   :  { %v906_v26 = vpop.f32.mrf.mxu3  ;;  %v1022_v24 = vpop.f32.mrf.mxu0 }
 0x20b   :  { %v907_v11 = vadd.f32 %v906_v26, %v794_v44 }
 0x20d   :  { %1199 = vmatmul.f32.gmra.mxu2 %v2295_v46  ;;  %1425 = vmatmul.f32.gmra.mxu0 %v2296_v59  ;;  %v1020_v53 = vadd.f32 %v1019_v13, %v907_v11  ;;  %v2305_v59 = vld [vmem:[#allocation2 + $0x278] sm:$0xff] }
 0x20e   :  { %v1135_v31 = vpop.f32.mrf.mxu1 }
 0x20f   :  { %v2863_v45 = vadd.f32 %v1132_v37, %v1020_v53  ;;  %1312 = vmatmul.f32.gmra.mxu3 %v2297_v41  ;;  %v449_v37 = vld [vmem:[#allocation5 + $0x578] sm:$0xff]  ;;  %v2306_v41 = vld [vmem:[#allocation2 + $0x288] sm:$0xff] }
 0x210   :  { %v796_v63 = vpop.f32.mrf.mxu2  ;;  %1723 = vmatpush.msrb.mxu3 %v449_v37 }
 0x211   :  { %v797_v3 = vadd.f32 %v796_v63, %v2709_v21  ;;  %1538 = vmatmul.f32.gmra.mxu1 %v2298_v43 }
 0x212   :  { %v909_v7 = vpop.f32.mrf.mxu3  ;;  %v1025_v49 = vpop.f32.mrf.mxu0 }
 0x213   :  { %v910_v29 = vadd.f32 %v909_v7, %v797_v3  ;;  %v2307_v7 = vld [vmem:[#allocation2 + $0x2a0] sm:$0xff] }
 0x215   :  { %1202 = vmatmul.f32.gmra.mxu2 %v2299_v27  ;;  %1428 = vmatmul.f32.gmra.mxu0 %v2300_v36  ;;  %v1023_v60 = vadd.f32 %v1022_v24, %v910_v29  ;;  %v1907_v24 = vld [vmem:[#allocation8 + $0x78] sm:$0xff]  ;;  %v415_v27 = vld [vmem:[#allocation5 + $0x468] sm:$0xff] }
 0x216   :  { %v1138_v13 = vpop.f32.mrf.mxu1  ;;  %1928 = vmatpush.msrb.mxu0 %v1907_v24  ;;  %1611 = vmatpush.msrb.mxu2 %v415_v27  ;;  %v2317_v27 = vld [vmem:[#allocation7] sm:$0x3] }
 0x217   :  { %v2866_v61 = vadd.f32 %v1135_v31, %v1023_v60  ;;  %1315 = vmatmul.f32.gmra.mxu3 %v2301_v19 }
 0x218   :  { %v799_v51 = vpop.f32.mrf.mxu2 }
 0x219   :  { %v800_v21 = vadd.f32 %v799_v51, %v2716_v47  ;;  %1541 = vmatmul.f32.gmra.mxu1 %v2302_v40  ;;  %v1923_v47 = vld [vmem:[#allocation8 + $0xf8] sm:$0xff] }
 0x21a   :  { %v912_v8 = vpop.f32.mrf.mxu3  ;;  %v1028_v33 = vpop.f32.mrf.mxu0  ;;  %2041 = vmatpush.msrb.mxu1 %v1923_v47 }
 0x21b   :  { %v913_v44 = vadd.f32 %v912_v8, %v800_v21  ;;  %v2310_v21 = vld [vmem:[#allocation2 + $0x2b8] sm:$0xff] }
 0x21d   :  { %1205 = vmatmul.f32.gmra.mxu2 %v2303_v42  ;;  %1431 = vmatmul.f32.gmra.mxu0 %v2304_v54  ;;  %v1026_v26 = vadd.f32 %v1025_v49, %v913_v44  ;;  %v2308_v49 = vld [vmem:[#allocation2 + $0x2b0] sm:$0xff] }
 0x21e   :  { %v1141_v11 = vpop.f32.mrf.mxu1  ;;  %v2311_v44 = vld [vmem:[#allocation2 + $0x2d0] sm:$0xff] }
 0x21f   :  { %v2869_v46 = vadd.f32 %v1138_v13, %v1026_v26  ;;  %1318 = vmatmul.f32.gmra.mxu3 %v2305_v59  ;;  %v447_v13 = vld [vmem:[#allocation5 + $0x568] sm:$0xff]  ;;  %v1906_v54 = vld [vmem:[#allocation8 + $0x70] sm:$0xff] }
 0x220   :  { %v802_v53 = vpop.f32.mrf.mxu2  ;;  %1724 = vmatpush.msrb.mxu3 %v447_v13  ;;  %1929 = vmatpush.msrb.mxu0 %v1906_v54  ;;  %v1922_v59 = vld [vmem:[#allocation8 + $0xf0] sm:$0xff]  ;;  %v2321_v54 = vld [vmem:[#allocation2 + $0x340] sm:$0xff] }
 0x221   :  { %v803_v31 = vadd.f32 %v802_v53, %v2723_v17  ;;  %1544 = vmatmul.f32.gmra.mxu1 %v2306_v41  ;;  %v3206_v17 = vld [vmem:[#allocation15_spill] sm:$0xff]  ;;  %v3208_v53 = vld [vmem:[#allocation16_spill] sm:$0xff] }
 0x222   :  { %v915_v63 = vpop.f32.mrf.mxu3  ;;  %v1031_v3 = vpop.f32.mrf.mxu0  ;;  %2042 = vmatpush.msrb.mxu1 %v1922_v59  ;;  %v2314_v41 = vld [vmem:[#allocation2 + $0x2e8] sm:$0xff] }
 0x223   :  { %v916_v43 = vadd.f32 %v915_v63, %v803_v31  ;;  %v1905_v59 = vld [vmem:[#allocation8 + $0x68] sm:$0xff] }
 0x224   :  { %1930 = vmatpush.msrb.mxu0 %v1905_v59  ;;  %v2328_v59 = vld [vmem:[#allocation2 + $0x390] sm:$0xff] }
 0x225   :  { %1208 = vmatmul.f32.gmra.mxu2 %v2307_v7  ;;  %1434 = vmatmul.f32.gmra.mxu0 %v2308_v49  ;;  %v1029_v29 = vadd.f32 %v1028_v33, %v916_v43  ;;  %v2312_v33 = vld [vmem:[#allocation2 + $0x2e0] sm:$0xff] }
 0x226   :  { %v1144_v36 = vpop.f32.mrf.mxu1  ;;  %v2315_v49 = vld [vmem:[#allocation2 + $0x300] sm:$0xff] }
 0x227   :  { %v2872_v60 = vadd.f32 %v1141_v11, %v1029_v29  ;;  %1321 = vmatmul.f32.gmra.mxu3 %v2309_v55  ;;  %v2313_v11 = vld [vmem:[#allocation2 + $0x2d8] sm:$0xff] }
 0x228   :  { %v805_v19 = vpop.f32.mrf.mxu2  ;;  %v413_v55 = vld [vmem:[#allocation5 + $0x458] sm:$0xff] }
 0x229   :  { %v806_v51 = vadd.f32 %v805_v19, %v3206_v17  ;;  %1547 = vmatmul.f32.gmra.mxu1 %v2310_v21  ;;  %1612 = vmatpush.msrb.mxu2 %v413_v55  ;;  %v2318_v17 = vld [vmem:[#allocation2 + $0x308] sm:$0xff] }
 0x22a   :  { %v918_v40 = vpop.f32.mrf.mxu3  ;;  %v1034_v37 = vpop.f32.mrf.mxu0 }
 0x22b   :  { %v919_v8 = vadd.f32 %v918_v40, %v806_v51  ;;  %v445_v51 = vld [vmem:[#allocation5 + $0x558] sm:$0xff] }
 0x22c   :  { %1725 = vmatpush.msrb.mxu3 %v445_v51 }
 0x22d   :  { %1211 = vmatmul.f32.gmra.mxu2 %v2311_v44  ;;  %1437 = vmatmul.f32.gmra.mxu0 %v2312_v33  ;;  %v1032_v42 = vadd.f32 %v1031_v3, %v919_v8  ;;  %v2316_v3 = vld [vmem:[#allocation2 + $0x310] sm:$0xff]  ;;  %v2319_v8 = vld [vmem:[#allocation2 + $0x318] sm:$0xff] }
 0x22e   :  { %v1147_v26 = vpop.f32.mrf.mxu1 }
 0x22f   :  { %v2875_v24 = vadd.f32 %v1144_v36, %v1032_v42  ;;  %1324 = vmatmul.f32.gmra.mxu3 %v2313_v11  ;;  %v2878_v36 = vperm.slane %v2317_v27, 1  ;;  %v2320_v42 = vld [vmem:[#allocation2 + $0x330] sm:$0xff]  ;;  %v2324_v27 = vld [vmem:[#allocation2 + $0x360] sm:$0xff] }
 0x230   :  { %v808_v47 = vpop.f32.mrf.mxu2 }
 0x231   :  { %3207 = vst [vmem:[#allocation15_spill] sm:$0xff] %v2875_v24  ;;  %v809_v31 = vadd.f32 %v808_v47, %v3208_v53  ;;  %1550 = vmatmul.f32.gmra.mxu1 %v2314_v41  ;;  %v2322_v53 = vld [vmem:[#allocation2 + $0x338] sm:$0xff] }
 0x232   :  { %v921_v63 = vpop.f32.mrf.mxu3  ;;  %v1393_v43 = vpop.f32.mrf.mxu0 }
 0x233   :  { %v922_v7 = vadd.f32 %v921_v63, %v809_v31  ;;  %v1921_v31 = vld [vmem:[#allocation8 + $0xe8] sm:$0xff] }
 0x234   :  { %2043 = vmatpush.msrb.mxu1 %v1921_v31  ;;  %v1904_v31 = vld [vmem:[#allocation8 + $0x60] sm:$0xff] }
 0x235   :  { %1214 = vmatmul.f32.gmra.mxu2 %v2315_v49  ;;  %1440 = vmatmul.f32.gmra.mxu0 %v2316_v3  ;;  %v1035_v29 = vadd.f32 %v1034_v37, %v922_v7  ;;  %v2323_v7 = vld [vmem:[#allocation2 + $0x348] sm:$0xff] }
 0x236   :  { %v1506_v13 = vpop.f32.mrf.mxu1  ;;  %1931 = vmatpush.msrb.mxu0 %v1904_v31 }
 0x237   :  { %v2880_v19 = vadd.f32 %v1147_v26, %v1035_v29  ;;  %1327 = vmatmul.f32.gmra.mxu3 %v2318_v17  ;;  %v411_v17 = vld [vmem:[#allocation5 + $0x448] sm:$0xff] }
 0x238   :  { %v1167_v21 = vpop.f32.mrf.mxu2  ;;  %1613 = vmatpush.msrb.mxu2 %v411_v17 }
 0x239   :  { %3209 = vst [vmem:[#allocation16_spill] sm:$0xff] %v2880_v19  ;;  %v1168_v40 = vadd.f32 %v1167_v21, %v2878_v36  ;;  %1553 = vmatmul.f32.gmra.mxu1 %v2319_v8  ;;  %v2326_v21 = vld [vmem:[#allocation2 + $0x368] sm:$0xff] }
 0x23a   :  { %v1280_v44 = vpop.f32.mrf.mxu3  ;;  %v1396_v33 = vpop.f32.mrf.mxu0 }
 0x23b   :  { %v1281_v37 = vadd.f32 %v1280_v44, %v1168_v40  ;;  %v443_v40 = vld [vmem:[#allocation5 + $0x548] sm:$0xff] }
 0x23c   :  { %1726 = vmatpush.msrb.mxu3 %v443_v40 }
 0x23d   :  { %1217 = vmatmul.f32.gmra.mxu2 %v2320_v42  ;;  %1443 = vmatmul.f32.gmra.mxu0 %v2321_v54  ;;  %v1394_v11 = vadd.f32 %v1393_v43, %v1281_v37  ;;  %v2325_v43 = vld [vmem:[#allocation2 + $0x370] sm:$0xff]  ;;  %v2327_v37 = vld [vmem:[#allocation2 + $0x378] sm:$0xff] }
 0x23e   :  { %v1509_v26 = vpop.f32.mrf.mxu1 }
 0x23f   :  { %v2883_v47 = vadd.f32 %v1506_v13, %v1394_v11  ;;  %1330 = vmatmul.f32.gmra.mxu3 %v2322_v53 }
 0x240   :  { %v1170_v41 = vpop.f32.mrf.mxu2 }
 0x241   :  { %v1171_v63 = vadd.f32 %v1170_v41, %v2878_v36  ;;  %1556 = vmatmul.f32.gmra.mxu1 %v2323_v7  ;;  %v1920_v7 = vld [vmem:[#allocation8 + $0xe0] sm:$0xff] }
 0x242   :  { %v1283_v49 = vpop.f32.mrf.mxu3  ;;  %v1399_v3 = vpop.f32.mrf.mxu0  ;;  %2044 = vmatpush.msrb.mxu1 %v1920_v7  ;;  %v2336_v7 = vld [vmem:[#allocation2 + $0x3f0] sm:$0xff] }
 0x243   :  { %v1284_v29 = vadd.f32 %v1283_v49, %v1171_v63  ;;  %v2330_v63 = vld [vmem:[#allocation2 + $0x398] sm:$0xff] }
 0x245   :  { %1220 = vmatmul.f32.gmra.mxu2 %v2324_v27  ;;  %1446 = vmatmul.f32.gmra.mxu0 %v2325_v43  ;;  %v1397_v55 = vadd.f32 %v1396_v33, %v1284_v29  ;;  %v2329_v33 = vld [vmem:[#allocation2 + $0x3a0] sm:$0xff]  ;;  %v2331_v27 = vld [vmem:[#allocation2 + $0x3a8] sm:$0xff] }
 0x246   :  { %v1512_v13 = vpop.f32.mrf.mxu1 }
 0x247   :  { %v2886_v51 = vadd.f32 %v1509_v26, %v1397_v55  ;;  %1333 = vmatmul.f32.gmra.mxu3 %v2326_v21  ;;  %v2332_v21 = vld [vmem:[#allocation2 + $0x3c0] sm:$0xff] }
 0x248   :  { %v1173_v8 = vpop.f32.mrf.mxu2 }
 0x249   :  { %v1174_v44 = vadd.f32 %v1173_v8, %v2878_v36  ;;  %1559 = vmatmul.f32.gmra.mxu1 %v2327_v37  ;;  %v409_v8 = vld [vmem:[#allocation5 + $0x438] sm:$0xff]  ;;  %v2334_v37 = vld [vmem:[#allocation2 + $0x3c8] sm:$0xff] }
 0x24a   :  { %v1286_v42 = vpop.f32.mrf.mxu3  ;;  %v1402_v54 = vpop.f32.mrf.mxu0  ;;  %1614 = vmatpush.msrb.mxu2 %v409_v8 }
 0x24b   :  { %v1287_v11 = vadd.f32 %v1286_v42, %v1174_v44  ;;  %v441_v42 = vld [vmem:[#allocation5 + $0x538] sm:$0xff] }
 0x24c   :  { %1727 = vmatpush.msrb.mxu3 %v441_v42 }
 0x24d   :  { %1223 = vmatmul.f32.gmra.mxu2 %v2328_v59  ;;  %1449 = vmatmul.f32.gmra.mxu0 %v2329_v33  ;;  %v1400_v53 = vadd.f32 %v1399_v3, %v1287_v11  ;;  %v2333_v3 = vld [vmem:[#allocation2 + $0x3d0] sm:$0xff]  ;;  %v2335_v33 = vld [vmem:[#allocation2 + $0x3d8] sm:$0xff] }
 0x24e   :  { %v1515_v26 = vpop.f32.mrf.mxu1 }
 0x24f   :  { %v2889_v41 = vadd.f32 %v1512_v13, %v1400_v53  ;;  %1336 = vmatmul.f32.gmra.mxu3 %v2330_v63 }
 0x250   :  { %v1176_v49 = vpop.f32.mrf.mxu2 }
 0x251   :  { %v1177_v29 = vadd.f32 %v1176_v49, %v2878_v36  ;;  %1562 = vmatmul.f32.gmra.mxu1 %v2331_v27  ;;  %v2338_v27 = vld [vmem:[#allocation2 + $0x3f8] sm:$0xff] }
 0x252   :  { %v1289_v43 = vpop.f32.mrf.mxu3  ;;  %v1405_v55 = vpop.f32.mrf.mxu0 }
 0x253   :  { %v1290_v17 = vadd.f32 %v1289_v43, %v1177_v29  ;;  %v1903_v29 = vld [vmem:[#allocation8 + $0x58] sm:$0xff] }
 0x254   :  { %1932 = vmatpush.msrb.mxu0 %v1903_v29  ;;  %v2343_v29 = vld [vmem:[#allocation2 + $0x438] sm:$0xff] }
 0x255   :  { %1226 = vmatmul.f32.gmra.mxu2 %v2332_v21  ;;  %1452 = vmatmul.f32.gmra.mxu0 %v2333_v3  ;;  %v1403_v40 = vadd.f32 %v1402_v54, %v1290_v17  ;;  %v2337_v54 = vld [vmem:[#allocation2 + $0x400] sm:$0xff] }
 0x256   :  { %v1518_v13 = vpop.f32.mrf.mxu1  ;;  %v1919_v17 = vld [vmem:[#allocation8 + $0xd8] sm:$0xff] }
 0x257   :  { %v2892_v44 = vadd.f32 %v1515_v26, %v1403_v40  ;;  %1339 = vmatmul.f32.gmra.mxu3 %v2334_v37  ;;  %2045 = vmatpush.msrb.mxu1 %v1919_v17  ;;  %v2339_v40 = vld [vmem:[#allocation2 + $0x408] sm:$0xff] }
 0x258   :  { %v1179_v11 = vpop.f32.mrf.mxu2 }
 0x259   :  { %v1180_v59 = vadd.f32 %v1179_v11, %v2878_v36  ;;  %1565 = vmatmul.f32.gmra.mxu1 %v2335_v33  ;;  %v2340_v11 = vld [vmem:[#allocation2 + $0x420] sm:$0xff] }
 0x25a   :  { %v1292_v53 = vpop.f32.mrf.mxu3  ;;  %v1408_v31 = vpop.f32.mrf.mxu0 }
 0x25b   :  { %v1293_v63 = vadd.f32 %v1292_v53, %v1180_v59  ;;  %v2342_v53 = vld [vmem:[#allocation2 + $0x428] sm:$0xff] }
 0x25d   :  { %1229 = vmatmul.f32.gmra.mxu2 %v2336_v7  ;;  %1455 = vmatmul.f32.gmra.mxu0 %v2337_v54  ;;  %v1406_v49 = vadd.f32 %v1405_v55, %v1293_v63  ;;  %v2341_v55 = vld [vmem:[#allocation2 + $0x430] sm:$0xff]  ;;  %v439_v63 = vld [vmem:[#allocation5 + $0x528] sm:$0xff] }
 0x25e   :  { %v1521_v43 = vpop.f32.mrf.mxu1  ;;  %1728 = vmatpush.msrb.mxu3 %v439_v63 }
 0x25f   :  { %v2895_v26 = vadd.f32 %v1518_v13, %v1406_v49  ;;  %1342 = vmatmul.f32.gmra.mxu3 %v2338_v27  ;;  %v407_v13 = vld [vmem:[#allocation5 + $0x428] sm:$0xff] }
 0x260   :  { %v1182_v21 = vpop.f32.mrf.mxu2  ;;  %1615 = vmatpush.msrb.mxu2 %v407_v13  ;;  %v2347_v13 = vld [vmem:[#allocation2 + $0x468] sm:$0xff] }
 0x261   :  { %v1183_v3 = vadd.f32 %v1182_v21, %v2878_v36  ;;  %1568 = vmatmul.f32.gmra.mxu1 %v2339_v40 }
 0x262   :  { %v1295_v8 = vpop.f32.mrf.mxu3  ;;  %v1411_v37 = vpop.f32.mrf.mxu0 }
 0x263   :  { %v1296_v42 = vadd.f32 %v1295_v8, %v1183_v3  ;;  %v2344_v3 = vld [vmem:[#allocation2 + $0x450] sm:$0xff] }
 0x265   :  { %1232 = vmatmul.f32.gmra.mxu2 %v2340_v11  ;;  %1458 = vmatmul.f32.gmra.mxu0 %v2341_v55  ;;  %v1409_v59 = vadd.f32 %v1408_v31, %v1296_v42  ;;  %v2345_v31 = vld [vmem:[#allocation2 + $0x460] sm:$0xff]  ;;  %v2346_v42 = vld [vmem:[#allocation2 + $0x458] sm:$0xff] }
 0x266   :  { %v1524_v49 = vpop.f32.mrf.mxu1  ;;  %v1918_v11 = vld [vmem:[#allocation8 + $0xd0] sm:$0xff] }
 0x267   :  { %v2898_v33 = vadd.f32 %v1521_v43, %v1409_v59  ;;  %1345 = vmatmul.f32.gmra.mxu3 %v2342_v53  ;;  %v1902_v43 = vld [vmem:[#allocation8 + $0x50] sm:$0xff]  ;;  %2046 = vmatpush.msrb.mxu1 %v1918_v11 }
 0x268   :  { %v1185_v7 = vpop.f32.mrf.mxu2  ;;  %1933 = vmatpush.msrb.mxu0 %v1902_v43 }
 0x269   :  { %v1186_v54 = vadd.f32 %v1185_v7, %v2878_v36  ;;  %1571 = vmatmul.f32.gmra.mxu1 %v2343_v29  ;;  %v2348_v29 = vld [vmem:[#allocation2 + $0x480] sm:$0xff] }
 0x26a   :  { %v1298_v27 = vpop.f32.mrf.mxu3  ;;  %v1414_v17 = vpop.f32.mrf.mxu0 }
 0x26b   :  { %v1299_v21 = vadd.f32 %v1298_v27, %v1186_v54 }
 0x26d   :  { %1235 = vmatmul.f32.gmra.mxu2 %v2344_v3  ;;  %1461 = vmatmul.f32.gmra.mxu0 %v2345_v31  ;;  %v1412_v40 = vadd.f32 %v1411_v37, %v1299_v21  ;;  %v2349_v37 = vld [vmem:[#allocation2 + $0x490] sm:$0xff]  ;;  %v2350_v3 = vld [vmem:[#allocation2 + $0x488] sm:$0xff]  ;;  %v437_v31 = vld [vmem:[#allocation5 + $0x518] sm:$0xff] }
 0x26e   :  { %v1527_v54 = vpop.f32.mrf.mxu1  ;;  %1729 = vmatpush.msrb.mxu3 %v437_v31 }
 0x26f   :  { %v2901_v8 = vadd.f32 %v1524_v49, %v1412_v40  ;;  %1348 = vmatmul.f32.gmra.mxu3 %v2346_v42  ;;  %v405_v49 = vld [vmem:[#allocation5 + $0x418] sm:$0xff] }
 0x270   :  { %v1188_v55 = vpop.f32.mrf.mxu2  ;;  %1616 = vmatpush.msrb.mxu2 %v405_v49  ;;  %v2351_v42 = vld [vmem:[#allocation2 + $0x498] sm:$0xff]  ;;  %v2355_v49 = vld [vmem:[#allocation2 + $0x4c8] sm:$0xff] }
 0x271   :  { %v1189_v59 = vadd.f32 %v1188_v55, %v2878_v36  ;;  %1574 = vmatmul.f32.gmra.mxu1 %v2347_v13  ;;  %v2352_v13 = vld [vmem:[#allocation2 + $0x4b0] sm:$0xff] }
 0x272   :  { %v1301_v53 = vpop.f32.mrf.mxu3  ;;  %v1417_v63 = vpop.f32.mrf.mxu0 }
 0x273   :  { %v1302_v7 = vadd.f32 %v1301_v53, %v1189_v59  ;;  %v2353_v53 = vld [vmem:[#allocation2 + $0x4c0] sm:$0xff] }
 0x275   :  { %1238 = vmatmul.f32.gmra.mxu2 %v2348_v29  ;;  %1464 = vmatmul.f32.gmra.mxu0 %v2349_v37  ;;  %v1415_v27 = vadd.f32 %v1414_v17, %v1302_v7  ;;  %v1901_v7 = vld [vmem:[#allocation8 + $0x48] sm:$0xff] }
 0x276   :  { %1934 = vmatpush.msrb.mxu0 %v1901_v7  ;;  %v1917_v29 = vld [vmem:[#allocation8 + $0xc8] sm:$0xff] }
 0x277   :  { %v2904_v21 = vadd.f32 %v1527_v54, %v1415_v27  ;;  %1351 = vmatmul.f32.gmra.mxu3 %v2350_v3  ;;  %v2354_v54 = vld [vmem:[#allocation2 + $0x4b8] sm:$0xff]  ;;  %2047 = vmatpush.msrb.mxu1 %v1917_v29  ;;  %v435_v7 = vld [vmem:[#allocation5 + $0x508] sm:$0xff] }
 0x278   :  { %v1191_v40 = vpop.f32.mrf.mxu2  ;;  %1730 = vmatpush.msrb.mxu3 %v435_v7  ;;  %v1916_v7 = vld [vmem:[#allocation8 + $0xc0] sm:$0xff] }
 0x279   :  { %v1192_v43 = vadd.f32 %v1191_v40, %v2878_v36  ;;  %1577 = vmatmul.f32.gmra.mxu1 %v2351_v42  ;;  %v2356_v42 = vld [vmem:[#allocation2 + $0x4e0] sm:$0xff] }
 0x27a   :  { %v1304_v11 = vpop.f32.mrf.mxu3  ;;  %v1420_v55 = vpop.f32.mrf.mxu0  ;;  %2048 = vmatpush.msrb.mxu1 %v1916_v7 }
 0x27b   :  { %v1305_v59 = vadd.f32 %v1304_v11, %v1192_v43  ;;  %v1900_v43 = vld [vmem:[#allocation8 + $0x40] sm:$0xff] }
 0x27c   :  { %1935 = vmatpush.msrb.mxu0 %v1900_v43 }
 0x27d   :  { %1241 = vmatmul.f32.gmra.mxu2 %v2352_v13  ;;  %1467 = vmatmul.f32.gmra.mxu0 %v2353_v53  ;;  %v2907_v17 = vadd.f32 %v1417_v63, %v1305_v59  ;;  %v2357_v63 = vld [vmem:[#allocation2 + $0x4f0] sm:$0xff]  ;;  %v403_v59 = vld [vmem:[#allocation5 + $0x408] sm:$0xff]  ;;  %v1899_v13 = vld [vmem:[#allocation8 + $0x38] sm:$0xff] }
 0x27e   :  { %1617 = vmatpush.msrb.mxu2 %v403_v59  ;;  %1936 = vmatpush.msrb.mxu0 %v1899_v13  ;;  %v2358_v53 = vld [vmem:[#allocation2 + $0x4e8] sm:$0xff]  ;;  %v1895_v13 = vld [vmem:[#allocation8 + $0x18] sm:$0xff] }
 0x27f   :  { %1354 = vmatmul.f32.gmra.mxu3 %v2354_v54  ;;  %v1898_v54 = vld [vmem:[#allocation8 + $0x30] sm:$0xff] }
 0x280   :  { %v1194_v37 = vpop.f32.mrf.mxu2  ;;  %1937 = vmatpush.msrb.mxu0 %v1898_v54  ;;  %v1894_v54 = vld [vmem:[#allocation8 + $0x10] sm:$0xff] }
 0x281   :  { %v1195_v27 = vadd.f32 %v1194_v37, %v2878_v36  ;;  %1580 = vmatmul.f32.gmra.mxu1 %v2355_v49  ;;  %v1897_v49 = vld [vmem:[#allocation8 + $0x28] sm:$0xff] }
 0x282   :  { %v1307_v3 = vpop.f32.mrf.mxu3  ;;  %v1423_v31 = vpop.f32.mrf.mxu0  ;;  %1938 = vmatpush.msrb.mxu0 %v1897_v49  ;;  %v1893_v49 = vld [vmem:[#allocation8 + $0x8] sm:$0xff] }
 0x283   :  { %v1308_v40 = vadd.f32 %v1307_v3, %v1195_v27  ;;  %v2359_v27 = vld [vmem:[#allocation2 + $0x4f8] sm:$0xff] }
 0x285   :  { %1244 = vmatmul.f32.gmra.mxu2 %v2356_v42  ;;  %1470 = vmatmul.f32.gmra.mxu0 %v2357_v63  ;;  %v2910_v11 = vadd.f32 %v1420_v55, %v1308_v40  ;;  %v1896_v40 = vld [vmem:[#allocation8 + $0x20] sm:$0xff]  ;;  %v2360_v42 = vld [vmem:[#allocation2 + $0x510] sm:$0xff] }
 0x286   :  { %1939 = vmatpush.msrb.mxu0 %v1896_v40  ;;  %v2361_v63 = vld [vmem:[#allocation2 + $0x520] sm:$0xff] }
 0x287   :  { %1357 = vmatmul.f32.gmra.mxu3 %v2358_v53  ;;  %v2362_v53 = vld [vmem:[#allocation2 + $0x518] sm:$0xff] }
 0x288   :  { %v1197_v29 = vpop.f32.mrf.mxu2  ;;  %1940 = vmatpush.msrb.mxu0 %v1895_v13 }
 0x289   :  { %v1198_v37 = vadd.f32 %v1197_v29, %v2878_v36  ;;  %1583 = vmatmul.f32.gmra.mxu1 %v2359_v27 }
 0x28a   :  { %v1310_v3 = vpop.f32.mrf.mxu3  ;;  %v1426_v43 = vpop.f32.mrf.mxu0  ;;  %1941 = vmatpush.msrb.mxu0 %v1894_v54 }
 0x28b   :  { %v1311_v55 = vadd.f32 %v1310_v3, %v1198_v37  ;;  %v2363_v37 = vld [vmem:[#allocation2 + $0x528] sm:$0xff] }
 0x28c   :  { %1942 = vmatpush.msrb.mxu0 %v1893_v49  ;;  %v2368_v49 = vld [vmem:[#allocation2 + $0x570] sm:$0xff] }
 0x28d   :  { %1247 = vmatmul.f32.gmra.mxu2 %v2360_v42  ;;  %1473 = vmatmul.f32.gmra.mxu0 %v2361_v63  ;;  %v2913_v59 = vadd.f32 %v1423_v31, %v1311_v55  ;;  %v1892_v31 = vld [vmem:[#allocation8] sm:$0xff]  ;;  %v2365_v63 = vld [vmem:[#allocation2 + $0x550] sm:$0xff] }
 0x28e   :  { %1943 = vmatpush.msrb.mxu0 %v1892_v31  ;;  %v2364_v55 = vld [vmem:[#allocation2 + $0x540] sm:$0xff] }
 0x28f   :  { %1360 = vmatmul.f32.gmra.mxu3 %v2362_v53  ;;  %v2366_v53 = vld [vmem:[#allocation2 + $0x548] sm:$0xff] }
 0x290   :  { %v1200_v29 = vpop.f32.mrf.mxu2 }
 0x291   :  { %v1201_v27 = vadd.f32 %v1200_v29, %v2878_v36  ;;  %1586 = vmatmul.f32.gmra.mxu1 %v2363_v37  ;;  %v2367_v29 = vld [vmem:[#allocation2 + $0x558] sm:$0xff] }
 0x292   :  { %v1313_v3 = vpop.f32.mrf.mxu3  ;;  %v1429_v40 = vpop.f32.mrf.mxu0 }
 0x293   :  { %v1314_v42 = vadd.f32 %v1313_v3, %v1201_v27  ;;  %v2369_v3 = vld [vmem:[#allocation2 + $0x578] sm:$0xff] }
 0x295   :  { %1250 = vmatmul.f32.gmra.mxu2 %v2364_v55  ;;  %1476 = vmatmul.f32.gmra.mxu0 %v2365_v63  ;;  %v2916_v13 = vadd.f32 %v1426_v43, %v1314_v42  ;;  %v1915_v43 = vld [vmem:[#allocation8 + $0xb8] sm:$0xff]  ;;  %v2370_v55 = vld [vmem:[#allocation2 + $0x588] sm:$0xff] }
 0x296   :  { %2049 = vmatpush.msrb.mxu1 %v1915_v43  ;;  %v2373_v43 = vld [vmem:[#allocation2 + $0x5d0] sm:$0xff] }
 0x297   :  { %1363 = vmatmul.f32.gmra.mxu3 %v2366_v53 }
 0x298   :  { %v1203_v7 = vpop.f32.mrf.mxu2 }
 0x299   :  { %v1204_v54 = vadd.f32 %v1203_v7, %v2878_v36  ;;  %1589 = vmatmul.f32.gmra.mxu1 %v2367_v29  ;;  %v2371_v29 = vld [vmem:[#allocation2 + $0x5a0] sm:$0xff] }
 0x29a   :  { %v1316_v37 = vpop.f32.mrf.mxu3  ;;  %v1432_v19 = vpop.f32.mrf.mxu0 }
 0x29b   :  { %v1317_v24 = vadd.f32 %v1316_v37, %v1204_v54 }
 0x29d   :  { %1253 = vmatmul.f32.gmra.mxu2 %v2368_v49  ;;  %1479 = vmatmul.f32.gmra.mxu0 %v2802_v9  ;;  %v2920_v27 = vadd.f32 %v1429_v40, %v1317_v24  ;;  %v2372_v9 = vld [vmem:[#allocation2 + $0x5a8] sm:$0xff] }
 0x29f   :  { %1366 = vmatmul.f32.gmra.mxu3 %v2369_v3 }
 0x2a0   :  { %v1206_v42 = vpop.f32.mrf.mxu2 }
 0x2a1   :  { %v1207_v31 = vadd.f32 %v1206_v42, %v2878_v36  ;;  %1592 = vmatmul.f32.gmra.mxu1 %v2370_v55 }
 0x2a2   :  { %v1319_v63 = vpop.f32.mrf.mxu3  ;;  %v1435_v53 = vpop.f32.mrf.mxu0 }
 0x2a3   :  { %v1320_v7 = vadd.f32 %v1319_v63, %v1207_v31  ;;  %v2374_v31 = vld [vmem:[#allocation2 + $0x5d8] sm:$0xff] }
 0x2a5   :  { %1256 = vmatmul.f32.gmra.mxu2 %v2371_v29  ;;  %1482 = vmatmul.f32.gmra.mxu0 %v2810_v12  ;;  %v2924_v54 = vadd.f32 %v1432_v19, %v1320_v7  ;;  %v1914_v12 = vld [vmem:[#allocation8 + $0xb0] sm:$0xff]  ;;  %v1828_v7 = vmax.f32 %v2743_v48, 0.0 }
 0x2a6   :  { %2050 = vmatpush.msrb.mxu1 %v1914_v12  ;;  %v2378_v12 = vld [vmem:[#allocation2 + $0x58] sm:$0xff] }
 0x2a7   :  { %1369 = vmatmul.f32.gmra.mxu3 %v2372_v9  ;;  %v2375_v9 = vld [vmem:[#allocation2 + $0x20] sm:$0xff] }
 0x2a8   :  { %v1209_v24 = vpop.f32.mrf.mxu2 }
 0x2a9   :  { %v1210_v40 = vadd.f32 %v1209_v24, %v2878_v36  ;;  %1595 = vmatmul.f32.gmra.mxu1 %v2812_v14 }
 0x2aa   :  { %v1322_v37 = vpop.f32.mrf.mxu3  ;;  %v1438_v49 = vpop.f32.mrf.mxu0 }
 0x2ab   :  { %v1323_v3 = vadd.f32 %v1322_v37, %v1210_v40 }
 0x2ad   :  { %1259 = vmatmul.f32.gmra.mxu2 %v2373_v43  ;;  %1485 = vmatmul.f32.gmra.mxu0 %v2821_v1  ;;  %v2929_v42 = vadd.f32 %v1435_v53, %v1323_v3  ;;  %v2376_v53 = vld [vmem:[#allocation2 + $0x28] sm:$0xff]  ;;  %v1830_v43 = vmax.f32 %v2748_v58, 0.0 }
 0x2af   :  { %1372 = vmatmul.f32.gmra.mxu3 %v2374_v31  ;;  %v2377_v31 = vld [vmem:[#allocation2 + $0x50] sm:$0xff] }
 0x2b0   :  { %v1212_v19 = vpop.f32.mrf.mxu2 }
 0x2b1   :  { %v1213_v55 = vadd.f32 %v1212_v19, %v2878_v36  ;;  %1598 = vmatmul.f32.gmra.mxu1 %v2823_v57  ;;  %v1913_v19 = vld [vmem:[#allocation8 + $0xa8] sm:$0xff] }
 0x2b2   :  { %v1325_v63 = vpop.f32.mrf.mxu3  ;;  %v1441_v14 = vpop.f32.mrf.mxu0  ;;  %2051 = vmatpush.msrb.mxu1 %v1913_v19  ;;  %v2381_v19 = vld [vmem:[#allocation2 + $0xb0] sm:$0xff] }
 0x2b3   :  { %v1326_v29 = vadd.f32 %v1325_v63, %v1213_v55 }
 0x2b5   :  { %1618 = vmatmul.f32.vlgmr.msrb.gmra.mxu2 %v2375_v9  ;;  %1944 = vmatmul.f32.vlgmr.msrb.gmra.mxu0 %v1828_v7  ;;  %v2934_v1 = vadd.f32 %v1438_v49, %v1326_v29  ;;  %v1832_v29 = vmax.f32 %v2753_v6, 0.0 }
 0x2b7   :  { %1731 = vmatmul.f32.vlgmr.msrb.gmra.mxu3 %v2376_v53  ;;  %v2379_v53 = vld [vmem:[#allocation2 + $0x80] sm:$0xff] }
 0x2b8   :  { %v1215_v24 = vpop.f32.mrf.mxu2 }
 0x2b9   :  { %v1216_v40 = vadd.f32 %v1215_v24, %v2878_v36  ;;  %v2380_v24 = vld [vmem:[#allocation2 + $0x88] sm:$0xff] }
 0x2ba   :  { %v1328_v37 = vpop.f32.mrf.mxu3  ;;  %v1444_v3 = vpop.f32.mrf.mxu0 }
 0x2bb   :  { %v1329_v57 = vadd.f32 %v1328_v37, %v1216_v40 }
 0x2bd   :  { %1621 = vmatmul.f32.gmra.mxu2 %v2377_v31  ;;  %1947 = vmatmul.f32.gmra.mxu0 %v1830_v43  ;;  %v2938_v48 = vadd.f32 %v1441_v14, %v1329_v57  ;;  %v1834_v57 = vmax.f32 %v2758_v16, 0.0 }
 0x2bf   :  { %1734 = vmatmul.f32.gmra.mxu3 %v2378_v12  ;;  %v2946_v12 = vpop.f32.mrf.mxu1 }
 0x2c0   :  { %v1218_v49 = vpop.f32.mrf.mxu2 }
 0x2c1   :  { %v1219_v55 = vadd.f32 %v1218_v49, %v2878_v36  ;;  %v2382_v49 = vld [vmem:[#allocation2 + $0xb8] sm:$0xff] }
 0x2c2   :  { %v1331_v63 = vpop.f32.mrf.mxu3  ;;  %v1447_v7 = vpop.f32.mrf.mxu0 }
 0x2c3   :  { %v1332_v9 = vadd.f32 %v1331_v63, %v1219_v55 }
 0x2c5   :  { %1624 = vmatmul.f32.gmra.mxu2 %v2379_v53  ;;  %1950 = vmatmul.f32.gmra.mxu0 %v1832_v29  ;;  %v2942_v58 = vadd.f32 %v1444_v3, %v1332_v9  ;;  %v1912_v3 = vld [vmem:[#allocation8 + $0xa0] sm:$0xff]  ;;  %v1836_v53 = vmax.f32 %v2763_v28, 0.0 }
 0x2c6   :  { %2052 = vmatpush.msrb.mxu1 %v1912_v3 }
 0x2c7   :  { %1737 = vmatmul.f32.gmra.mxu3 %v2380_v24  ;;  %v2383_v24 = vld [vmem:[#allocation2 + $0xe0] sm:$0xff] }
 0x2c8   :  { %v1221_v14 = vpop.f32.mrf.mxu2 }
 0x2c9   :  { %v1222_v40 = vadd.f32 %v1221_v14, %v2878_v36 }
 0x2ca   :  { %v1334_v37 = vpop.f32.mrf.mxu3  ;;  %v1450_v43 = vpop.f32.mrf.mxu0 }
 0x2cb   :  { %v1335_v31 = vadd.f32 %v1334_v37, %v1222_v40  ;;  %v2954_v40 = vpop.f32.mrf.mxu1 }
 0x2cd   :  { %1627 = vmatmul.f32.gmra.mxu2 %v2381_v19  ;;  %1953 = vmatmul.f32.gmra.mxu0 %v1834_v57  ;;  %v2948_v6 = vadd.f32 %v1447_v7, %v1335_v31  ;;  %v2384_v7 = vld [vmem:[#allocation2 + $0xe8] sm:$0xff] }
 0x2cf   :  { %1740 = vmatmul.f32.gmra.mxu3 %v2382_v49  ;;  %v1838_v49 = vmax.f32 %v2768_v39, 0.0 }
 0x2d0   :  { %v1224_v55 = vpop.f32.mrf.mxu2 }
 0x2d1   :  { %v1225_v63 = vadd.f32 %v1224_v55, %v2878_v36  ;;  %v2385_v55 = vld [vmem:[#allocation2 + $0x110] sm:$0xff] }
 0x2d2   :  { %v1337_v29 = vpop.f32.mrf.mxu3  ;;  %v1453_v9 = vpop.f32.mrf.mxu0 }
 0x2d3   :  { %v1338_v16 = vadd.f32 %v1337_v29, %v1225_v63  ;;  %v2386_v63 = vld [vmem:[#allocation2 + $0x118] sm:$0xff] }
 0x2d5   :  { %1630 = vmatmul.f32.gmra.mxu2 %v2383_v24  ;;  %1956 = vmatmul.f32.gmra.mxu0 %v1836_v53  ;;  %v2952_v14 = vadd.f32 %v1450_v43, %v1338_v16  ;;  %v1911_v43 = vld [vmem:[#allocation8 + $0x98] sm:$0xff]  ;;  %v2960_v53 = vpop.f32.mrf.mxu1 }
 0x2d6   :  { %2053 = vmatpush.msrb.mxu1 %v1911_v43  ;;  %v1842_v43 = vmax.f32 %v2778_v5, 0.0 }
 0x2d7   :  { %3210 = vst [vmem:[#allocation17_spill] sm:$0xff] %v2952_v14  ;;  %1743 = vmatmul.f32.gmra.mxu3 %v2384_v7  ;;  %v2389_v14 = vld [vmem:[#allocation2 + $0x170] sm:$0xff] }
 0x2d8   :  { %v1227_v37 = vpop.f32.mrf.mxu2 }
 0x2d9   :  { %v1228_v57 = vadd.f32 %v1227_v37, %v2878_v36  ;;  %v1840_v37 = vmax.f32 %v2773_v56, 0.0 }
 0x2da   :  { %v1340_v31 = vpop.f32.mrf.mxu3  ;;  %v1456_v19 = vpop.f32.mrf.mxu0 }
 0x2db   :  { %v1341_v3 = vadd.f32 %v1340_v31, %v1228_v57  ;;  %v2387_v57 = vld [vmem:[#allocation2 + $0x140] sm:$0xff] }
 0x2dd   :  { %1633 = vmatmul.f32.gmra.mxu2 %v2385_v55  ;;  %1959 = vmatmul.f32.gmra.mxu0 %v1838_v49  ;;  %v2958_v28 = vadd.f32 %v1453_v9, %v1341_v3  ;;  %v2388_v9 = vld [vmem:[#allocation2 + $0x148] sm:$0xff] }
 0x2df   :  { %3211 = vst [vmem:[#allocation18_spill] sm:$0xff] %v2958_v28  ;;  %1746 = vmatmul.f32.gmra.mxu3 %v2386_v63  ;;  %v2968_v28 = vpop.f32.mrf.mxu1 }
 0x2e0   :  { %v1230_v29 = vpop.f32.mrf.mxu2 }
 0x2e1   :  { %v1231_v16 = vadd.f32 %v1230_v29, %v2878_v36 }
 0x2e2   :  { %v1343_v24 = vpop.f32.mrf.mxu3  ;;  %v1459_v7 = vpop.f32.mrf.mxu0 }
 0x2e3   :  { %v1344_v39 = vadd.f32 %v1343_v24, %v1231_v16  ;;  %v2390_v16 = vld [vmem:[#allocation2 + $0x178] sm:$0xff] }
 0x2e5   :  { %1636 = vmatmul.f32.gmra.mxu2 %v2387_v57  ;;  %1962 = vmatmul.f32.gmra.mxu0 %v1840_v37  ;;  %v2964_v31 = vadd.f32 %v1456_v19, %v1344_v39  ;;  %v1910_v19 = vld [vmem:[#allocation8 + $0x90] sm:$0xff] }
 0x2e6   :  { %2054 = vmatpush.msrb.mxu1 %v1910_v19  ;;  %v1846_v19 = vmax.f32 %v2788_v18, 0.0 }
 0x2e7   :  { %1749 = vmatmul.f32.gmra.mxu3 %v2388_v9  ;;  %v1844_v9 = vmax.f32 %v2783_v22, 0.0 }
 0x2e8   :  { %v1233_v49 = vpop.f32.mrf.mxu2 }
 0x2e9   :  { %v1234_v3 = vadd.f32 %v1233_v49, %v2878_v36  ;;  %v2391_v49 = vld [vmem:[#allocation2 + $0x1a0] sm:$0xff] }
 0x2ea   :  { %v1346_v55 = vpop.f32.mrf.mxu3  ;;  %v1462_v63 = vpop.f32.mrf.mxu0 }
 0x2eb   :  { %v1347_v29 = vadd.f32 %v1346_v55, %v1234_v3 }
 0x2ed   :  { %1639 = vmatmul.f32.gmra.mxu2 %v2389_v14  ;;  %1965 = vmatmul.f32.gmra.mxu0 %v1842_v43  ;;  %v2970_v56 = vadd.f32 %v1459_v7, %v1347_v29  ;;  %v2976_v14 = vpop.f32.mrf.mxu1  ;;  %v2392_v7 = vld [vmem:[#allocation2 + $0x1a8] sm:$0xff] }
 0x2ef   :  { %3212 = vst [vmem:[#allocation19_spill] sm:$0xff] %v2970_v56  ;;  %1752 = vmatmul.f32.gmra.mxu3 %v2390_v16  ;;  %v2393_v56 = vld [vmem:[#allocation2 + $0x1d0] sm:$0xff] }
 0x2f0   :  { %v1236_v24 = vpop.f32.mrf.mxu2 }
 0x2f1   :  { %v1237_v37 = vadd.f32 %v1236_v24, %v2878_v36 }
 0x2f2   :  { %v1349_v39 = vpop.f32.mrf.mxu3  ;;  %v1465_v57 = vpop.f32.mrf.mxu0 }
 0x2f3   :  { %v1350_v5 = vadd.f32 %v1349_v39, %v1237_v37  ;;  %v2394_v37 = vld [vmem:[#allocation2 + $0x1d8] sm:$0xff] }
 0x2f5   :  { %1642 = vmatmul.f32.gmra.mxu2 %v2391_v49  ;;  %1968 = vmatmul.f32.gmra.mxu0 %v1844_v9  ;;  %v2974_v3 = vadd.f32 %v1462_v63, %v1350_v5  ;;  %v1909_v63 = vld [vmem:[#allocation8 + $0x88] sm:$0xff]  ;;  %v2982_v39 = vpop.f32.mrf.mxu1 }
 0x2f6   :  { %2055 = vmatpush.msrb.mxu1 %v1909_v63  ;;  %v1850_v63 = vmax.f32 %v2798_v34, 0.0  ;;  %v2399_v34 = vld [vmem:[#allocation2 + $0x260] sm:$0xff] }
 0x2f7   :  { %3213 = vst [vmem:[#allocation20_spill] sm:$0xff] %v2974_v3  ;;  %1755 = vmatmul.f32.gmra.mxu3 %v2392_v7  ;;  %v2397_v3 = vld [vmem:[#allocation2 + $0x230] sm:$0xff] }
 0x2f8   :  { %v1239_v55 = vpop.f32.mrf.mxu2 }
 0x2f9   :  { %v1240_v43 = vadd.f32 %v1239_v55, %v2878_v36  ;;  %v1848_v55 = vmax.f32 %v2793_v30, 0.0 }
 0x2fa   :  { %v1352_v29 = vpop.f32.mrf.mxu3  ;;  %v1468_v16 = vpop.f32.mrf.mxu0 }
 0x2fb   :  { %v1353_v24 = vadd.f32 %v1352_v29, %v1240_v43  ;;  %v2395_v43 = vld [vmem:[#allocation2 + $0x200] sm:$0xff] }
 0x2fd   :  { %1645 = vmatmul.f32.gmra.mxu2 %v2393_v56  ;;  %1971 = vmatmul.f32.gmra.mxu0 %v1846_v19  ;;  %v2980_v22 = vadd.f32 %v1465_v57, %v1353_v24  ;;  %v2396_v57 = vld [vmem:[#allocation2 + $0x208] sm:$0xff]  ;;  %v2989_v24 = vpop.f32.mrf.mxu1 }
 0x2ff   :  { %3214 = vst [vmem:[#allocation21_spill] sm:$0xff] %v2980_v22  ;;  %1758 = vmatmul.f32.gmra.mxu3 %v2394_v37 }
 0x300   :  { %v1242_v9 = vpop.f32.mrf.mxu2 }
 0x301   :  { %v1243_v5 = vadd.f32 %v1242_v9, %v2878_v36 }
 0x302   :  { %v1355_v49 = vpop.f32.mrf.mxu3  ;;  %v1471_v7 = vpop.f32.mrf.mxu0 }
 0x303   :  { %v1356_v18 = vadd.f32 %v1355_v49, %v1243_v5  ;;  %v2398_v5 = vld [vmem:[#allocation2 + $0x238] sm:$0xff] }
 0x305   :  { %1648 = vmatmul.f32.gmra.mxu2 %v2395_v43  ;;  %1974 = vmatmul.f32.gmra.mxu0 %v1848_v55  ;;  %v2986_v56 = vadd.f32 %v1468_v16, %v1356_v18  ;;  %v1908_v16 = vld [vmem:[#allocation8 + $0x80] sm:$0xff]  ;;  %v1852_v43 = vmax.f32 %v2806_v23, 0.0 }
 0x306   :  { %2056 = vmatpush.msrb.mxu1 %v1908_v16 }
 0x307   :  { %1761 = vmatmul.f32.gmra.mxu3 %v2396_v57 }
 0x308   :  { %v1245_v29 = vpop.f32.mrf.mxu2 }
 0x309   :  { %v1246_v19 = vadd.f32 %v1245_v29, %v2878_v36  ;;  %v2996_v29 = vpop.f32.mrf.mxu1 }
 0x30a   :  { %v1358_v37 = vpop.f32.mrf.mxu3  ;;  %v1474_v22 = vpop.f32.mrf.mxu0 }
 0x30b   :  { %v1359_v9 = vadd.f32 %v1358_v37, %v1246_v19  ;;  %v2400_v19 = vld [vmem:[#allocation2 + $0x268] sm:$0xff] }
 0x30d   :  { %1651 = vmatmul.f32.gmra.mxu2 %v2397_v3  ;;  %1977 = vmatmul.f32.gmra.mxu0 %v1850_v63  ;;  %v2992_v30 = vadd.f32 %v1471_v7, %v1359_v9 }
 0x30f   :  { %1764 = vmatmul.f32.gmra.mxu3 %v2398_v5  ;;  %v1854_v5 = vmax.f32 %v2816_v4, 0.0 }
 0x310   :  { %v1248_v49 = vpop.f32.mrf.mxu2 }
 0x311   :  { %v1249_v55 = vadd.f32 %v1248_v49, %v2878_v36  ;;  %v2401_v49 = vld [vmem:[#allocation2 + $0x290] sm:$0xff] }
 0x312   :  { %v1361_v18 = vpop.f32.mrf.mxu3  ;;  %v1477_v7 = vpop.f32.mrf.mxu0 }
 0x313   :  { %v1362_v57 = vadd.f32 %v1361_v18, %v1249_v55  ;;  %v3004_v55 = vpop.f32.mrf.mxu1  ;;  %v2402_v18 = vld [vmem:[#allocation2 + $0x298] sm:$0xff] }
 0x315   :  { %1654 = vmatmul.f32.gmra.mxu2 %v2399_v34  ;;  %1980 = vmatmul.f32.gmra.mxu0 %v1852_v43  ;;  %v2998_v3 = vadd.f32 %v1474_v22, %v1362_v57 }
 0x317   :  { %3215 = vst [vmem:[#allocation22_spill] sm:$0xff] %v2998_v3  ;;  %1767 = vmatmul.f32.gmra.mxu3 %v2400_v19  ;;  %v1856_v19 = vmax.f32 %v2827_v35, 0.0  ;;  %v2403_v3 = vld [vmem:[#allocation2 + $0x2c0] sm:$0xff] }
 0x318   :  { %v1251_v37 = vpop.f32.mrf.mxu2 }
 0x319   :  { %v1252_v63 = vadd.f32 %v1251_v37, %v2878_v36 }
 0x31a   :  { %v1364_v9 = vpop.f32.mrf.mxu3  ;;  %v1480_v22 = vpop.f32.mrf.mxu0 }
 0x31b   :  { %v1365_v16 = vadd.f32 %v1364_v9, %v1252_v63  ;;  %v2404_v63 = vld [vmem:[#allocation2 + $0x2c8] sm:$0xff] }
 0x31d   :  { %1657 = vmatmul.f32.gmra.mxu2 %v2401_v49  ;;  %1983 = vmatmul.f32.gmra.mxu0 %v1854_v5  ;;  %v3002_v23 = vadd.f32 %v1477_v7, %v1365_v16  ;;  %v3010_v7 = vpop.f32.mrf.mxu1 }
 0x31f   :  { %3216 = vst [vmem:[#allocation23_spill] sm:$0xff] %v3002_v23  ;;  %1770 = vmatmul.f32.gmra.mxu3 %v2402_v18  ;;  %v1858_v18 = vmax.f32 %v2830_v15, 0.0  ;;  %v2405_v23 = vld [vmem:[#allocation2 + $0x2f0] sm:$0xff] }
 0x320   :  { %v1254_v43 = vpop.f32.mrf.mxu2 }
 0x321   :  { %v1255_v57 = vadd.f32 %v1254_v43, %v2878_v36 }
 0x322   :  { %v1367_v34 = vpop.f32.mrf.mxu3  ;;  %v1483_v16 = vpop.f32.mrf.mxu0 }
 0x323   :  { %v1368_v37 = vadd.f32 %v1367_v34, %v1255_v57 }
 0x325   :  { %1660 = vmatmul.f32.gmra.mxu2 %v2403_v3  ;;  %1986 = vmatmul.f32.gmra.mxu0 %v1856_v19  ;;  %v3008_v4 = vadd.f32 %v1480_v22, %v1368_v37  ;;  %v2406_v3 = vld [vmem:[#allocation2 + $0x2f8] sm:$0xff]  ;;  %v3017_v34 = vpop.f32.mrf.mxu1  ;;  %v1860_v37 = vmax.f32 %v2833_v0, 0.0  ;;  %v2409_v0 = vld [vmem:[#allocation2 + $0x350] sm:$0xff] }
 0x327   :  { %3217 = vst [vmem:[#allocation24_spill] sm:$0xff] %v3008_v4  ;;  %1773 = vmatmul.f32.gmra.mxu3 %v2404_v63  ;;  %v2407_v4 = vld [vmem:[#allocation2 + $0x320] sm:$0xff] }
 0x328   :  { %v1257_v9 = vpop.f32.mrf.mxu2 }
 0x329   :  { %v1258_v5 = vadd.f32 %v1257_v9, %v2878_v36 }
 0x32a   :  { %v1370_v49 = vpop.f32.mrf.mxu3  ;;  %v1486_v9 = vpop.f32.mrf.mxu0 }
 0x32b   :  { %v1371_v43 = vadd.f32 %v1370_v49, %v1258_v5 }
 0x32d   :  { %1663 = vmatmul.f32.gmra.mxu2 %v2405_v23  ;;  %1989 = vmatmul.f32.gmra.mxu0 %v1858_v18  ;;  %v3014_v35 = vadd.f32 %v1483_v16, %v1371_v43  ;;  %v2408_v23 = vld [vmem:[#allocation2 + $0x328] sm:$0xff]  ;;  %v3024_v43 = vpop.f32.mrf.mxu1 }
 0x32f   :  { %1776 = vmatmul.f32.gmra.mxu3 %v2406_v3 }
 0x330   :  { %v1260_v22 = vpop.f32.mrf.mxu2 }
 0x331   :  { %v1261_v57 = vadd.f32 %v1260_v22, %v2878_v36  ;;  %v1862_v36 = vmax.f32 %v2836_v25, 0.0  ;;  %v2410_v22 = vld [vmem:[#allocation2 + $0x358] sm:$0xff] }
 0x332   :  { %v1373_v19 = vpop.f32.mrf.mxu3 }
 0x333   :  { %v1374_v63 = vadd.f32 %v1373_v19, %v1261_v57 }
 0x335   :  { %1666 = vmatmul.f32.gmra.mxu2 %v2407_v4  ;;  %1992 = vmatmul.f32.gmra.mxu0 %v1860_v37  ;;  %v3020_v15 = vadd.f32 %v1486_v9, %v1374_v63  ;;  %v1864_v37 = vmax.f32 %v2839_v2, 0.0  ;;  %v2411_v9 = vld [vmem:[#allocation2 + $0x380] sm:$0xff]  ;;  %v3028_v25 = vpop.f32.mrf.mxu1  ;;  %v2414_v2 = vld [vmem:[#allocation2 + $0x3b8] sm:$0xff] }
 0x337   :  { %1779 = vmatmul.f32.gmra.mxu3 %v2408_v23  ;;  %v2412_v23 = vld [vmem:[#allocation2 + $0x388] sm:$0xff] }
 0x338   :  { %v1619_v5 = vpop.f32.mrf.mxu2 }
 0x339   :  { %v1620_v16 = vadd.f32 %v1619_v5, %v2883_v47 }
 0x33a   :  { %v1732_v49 = vpop.f32.mrf.mxu3 }
 0x33b   :  { %v1733_v18 = vadd.f32 %v1732_v49, %v1620_v16 }
 0x33d   :  { %v1829_v3 = vmax.f32 %v1733_v18, 0.0  ;;  %1669 = vmatmul.f32.gmra.mxu2 %v2409_v0  ;;  %1995 = vmatmul.f32.gmra.mxu0 %v1862_v36  ;;  %v1866_v36 = vmax.f32 %v2842_v38, 0.0  ;;  %v3032_v0 = vpop.f32.mrf.mxu1  ;;  %v2416_v38 = vld [vmem:[#allocation2 + $0x3e8] sm:$0xff] }
 0x33f   :  { %1782 = vmatmul.f32.gmra.mxu3 %v2410_v22  ;;  %2057 = vmatmul.f32.vlgmr.msrb.gmra.mxu1 %v1829_v3  ;;  %v2413_v3 = vld [vmem:[#allocation2 + $0x3b0] sm:$0xff] }
 0x340   :  { %v1622_v4 = vpop.f32.mrf.mxu2 }
 0x341   :  { %v1623_v57 = vadd.f32 %v1622_v4, %v2886_v51 }
 0x342   :  { %v1735_v19 = vpop.f32.mrf.mxu3 }
 0x343   :  { %v1736_v47 = vadd.f32 %v1735_v19, %v1623_v57  ;;  %v1868_v19 = vmax.f32 %v2845_v50, 0.0  ;;  %v2418_v50 = vld [vmem:[#allocation2 + $0x418] sm:$0xff] }
 0x345   :  { %v1831_v63 = vmax.f32 %v1736_v47, 0.0  ;;  %1672 = vmatmul.f32.gmra.mxu2 %v2411_v9  ;;  %1998 = vmatmul.f32.gmra.mxu0 %v1864_v37  ;;  %v2415_v47 = vld [vmem:[#allocation2 + $0x3e0] sm:$0xff] }
 0x347   :  { %1785 = vmatmul.f32.gmra.mxu3 %v2412_v23  ;;  %2060 = vmatmul.f32.gmra.mxu1 %v1831_v63  ;;  %v3037_v23 = vpop.f32.mrf.mxu1 }
 0x348   :  { %v1625_v5 = vpop.f32.mrf.mxu2 }
 0x349   :  { %v1626_v16 = vadd.f32 %v1625_v5, %v2889_v41 }
 0x34a   :  { %v1738_v49 = vpop.f32.mrf.mxu3 }
 0x34b   :  { %v1739_v51 = vadd.f32 %v1738_v49, %v1626_v16  ;;  %v1870_v16 = vmax.f32 %v2848_v52, 0.0  ;;  %v3044_v52 = vpop.f32.mrf.mxu0 }
 0x34d   :  { %v1833_v18 = vmax.f32 %v1739_v51, 0.0  ;;  %1675 = vmatmul.f32.gmra.mxu2 %v2413_v3  ;;  %2001 = vmatmul.f32.gmra.mxu0 %v1866_v36  ;;  %v2417_v36 = vld [vmem:[#allocation2 + $0x410] sm:$0xff] }
 0x34f   :  { %1788 = vmatmul.f32.gmra.mxu3 %v2414_v2  ;;  %2063 = vmatmul.f32.gmra.mxu1 %v1833_v18  ;;  %v1872_v2 = vmax.f32 %v2851_v62, 0.0 }
 0x350   :  { %v1628_v22 = vpop.f32.mrf.mxu2 }
 0x351   :  { %v1629_v4 = vadd.f32 %v1628_v22, %v2892_v44  ;;  %v3042_v22 = vpop.f32.mrf.mxu1 }
 0x352   :  { %v1741_v57 = vpop.f32.mrf.mxu3 }
 0x353   :  { %v1742_v41 = vadd.f32 %v1741_v57, %v1629_v4  ;;  %v2419_v57 = vld [vmem:[#allocation2 + $0x440] sm:$0xff] }
 0x355   :  { %v1835_v37 = vmax.f32 %v1742_v41, 0.0  ;;  %1678 = vmatmul.f32.gmra.mxu2 %v2415_v47  ;;  %2004 = vmatmul.f32.gmra.mxu0 %v1868_v19  ;;  %v2420_v19 = vld [vmem:[#allocation2 + $0x448] sm:$0xff] }
 0x357   :  { %1791 = vmatmul.f32.gmra.mxu3 %v2416_v38  ;;  %2066 = vmatmul.f32.gmra.mxu1 %v1835_v37 }
 0x358   :  { %v1631_v63 = vpop.f32.mrf.mxu2 }
 0x359   :  { %v1632_v9 = vadd.f32 %v1631_v63, %v2895_v26  ;;  %v2421_v63 = vld [vmem:[#allocation2 + $0x470] sm:$0xff] }
 0x35a   :  { %v1744_v5 = vpop.f32.mrf.mxu3 }
 0x35b   :  { %v1745_v44 = vadd.f32 %v1744_v5, %v1632_v9  ;;  %v3048_v9 = vpop.f32.mrf.mxu1  ;;  %v2422_v5 = vld [vmem:[#allocation2 + $0x478] sm:$0xff] }
 0x35d   :  { %v1837_v49 = vmax.f32 %v1745_v44, 0.0  ;;  %1681 = vmatmul.f32.gmra.mxu2 %v2417_v36  ;;  %2007 = vmatmul.f32.gmra.mxu0 %v1870_v16  ;;  %v3050_v44 = vpop.f32.mrf.mxu0 }
 0x35f   :  { %1794 = vmatmul.f32.gmra.mxu3 %v2418_v50  ;;  %2069 = vmatmul.f32.gmra.mxu1 %v1837_v49 }
 0x360   :  { %v1634_v51 = vpop.f32.mrf.mxu2 }
 0x361   :  { %v1635_v18 = vadd.f32 %v1634_v51, %v2898_v33  ;;  %v1874_v33 = vmax.f32 %v2854_v10, 0.0  ;;  %v2423_v51 = vld [vmem:[#allocation2 + $0x4a0] sm:$0xff] }
 0x362   :  { %v1747_v3 = vpop.f32.mrf.mxu3 }
 0x363   :  { %v1748_v26 = vadd.f32 %v1747_v3, %v1635_v18  ;;  %v1531_v18 = vadd.f32 %v2946_v12, %v2907_v17  ;;  %v2424_v3 = vld [vmem:[#allocation2 + $0x4a8] sm:$0xff]  ;;  %v1534_v17 = vadd.f32 %v2954_v40, %v2910_v11  ;;  %v2426_v12 = vld [vmem:[#allocation2 + $0x4d8] sm:$0xff]  ;;  %v1537_v11 = vadd.f32 %v2960_v53, %v2913_v59 }
 0x364   :  { %v2428_v40 = vld [vmem:[#allocation2 + $0x508] sm:$0xff]  ;;  %v2430_v59 = vld [vmem:[#allocation2 + $0x538] sm:$0xff] }
 0x365   :  { %v1839_v4 = vmax.f32 %v1748_v26, 0.0  ;;  %1684 = vmatmul.f32.gmra.mxu2 %v2419_v57  ;;  %2010 = vmatmul.f32.gmra.mxu0 %v1872_v2  ;;  %v3056_v2 = vpop.f32.mrf.mxu1 }
 0x367   :  { %1797 = vmatmul.f32.gmra.mxu3 %v2420_v19  ;;  %2072 = vmatmul.f32.gmra.mxu1 %v1839_v4  ;;  %v3059_v19 = vpop.f32.mrf.mxu0 }
 0x368   :  { %v1637_v41 = vpop.f32.mrf.mxu2 }
 0x369   :  { %v1638_v37 = vadd.f32 %v1637_v41, %v2901_v8  ;;  %v1876_v8 = vmax.f32 %v2857_v20, 0.0 }
 0x36a   :  { %v1750_v47 = vpop.f32.mrf.mxu3 }
 0x36b   :  { %v1751_v38 = vadd.f32 %v1750_v47, %v1638_v37  ;;  %v2425_v37 = vld [vmem:[#allocation2 + $0x4d0] sm:$0xff] }
 0x36d   :  { %v1841_v62 = vmax.f32 %v1751_v38, 0.0  ;;  %1687 = vmatmul.f32.gmra.mxu2 %v2421_v63  ;;  %2013 = vmatmul.f32.gmra.mxu0 %v1874_v33  ;;  %v3063_v38 = vpop.f32.mrf.mxu1 }
 0x36f   :  { %1800 = vmatmul.f32.gmra.mxu3 %v2422_v5  ;;  %2075 = vmatmul.f32.gmra.mxu1 %v1841_v62  ;;  %v3066_v5 = vpop.f32.mrf.mxu0 }
 0x370   :  { %v1640_v16 = vpop.f32.mrf.mxu2 }
 0x371   :  { %v1641_v49 = vadd.f32 %v1640_v16, %v2904_v21  ;;  %v1878_v21 = vmax.f32 %v2860_v32, 0.0  ;;  %v1880_v32 = vmax.f32 %v2863_v45, 0.0 }
 0x372   :  { %v1753_v36 = vpop.f32.mrf.mxu3 }
 0x373   :  { %v1754_v50 = vadd.f32 %v1753_v36, %v1641_v49  ;;  %v2427_v49 = vld [vmem:[#allocation2 + $0x500] sm:$0xff] }
 0x375   :  { %v1843_v10 = vmax.f32 %v1754_v50, 0.0  ;;  %1690 = vmatmul.f32.gmra.mxu2 %v2423_v51  ;;  %2016 = vmatmul.f32.gmra.mxu0 %v1876_v8  ;;  %v3071_v45 = vpop.f32.mrf.mxu1 }
 0x377   :  { %1803 = vmatmul.f32.gmra.mxu3 %v2424_v3  ;;  %2078 = vmatmul.f32.gmra.mxu1 %v1843_v10  ;;  %v1882_v10 = vmax.f32 %v2866_v61, 0.0  ;;  %v2429_v3 = vld [vmem:[#allocation2 + $0x530] sm:$0xff]  ;;  %v1884_v61 = vmax.f32 %v2869_v46, 0.0  ;;  %v1886_v46 = vmax.f32 %v2872_v60, 0.0 }
 0x378   :  { %v1643_v26 = vpop.f32.mrf.mxu2 }
 0x379   :  { %v1644_v4 = vadd.f32 %v1643_v26, %v1531_v18  ;;  %v1540_v26 = vadd.f32 %v2968_v28, %v2916_v13  ;;  %v1543_v13 = vadd.f32 %v2976_v14, %v2920_v27  ;;  %v2432_v28 = vld [vmem:[#allocation2 + $0x568] sm:$0xff] }
 0x37a   :  { %v1756_v57 = vpop.f32.mrf.mxu3 }
 0x37b   :  { %v1757_v20 = vadd.f32 %v1756_v57, %v1644_v4  ;;  %v3075_v4 = vpop.f32.mrf.mxu0 }
 0x37d   :  { %v1845_v41 = vmax.f32 %v1757_v20, 0.0  ;;  %1693 = vmatmul.f32.gmra.mxu2 %v2425_v37  ;;  %2019 = vmatmul.f32.gmra.mxu0 %v1878_v21  ;;  %v2431_v37 = vld [vmem:[#allocation2 + $0x560] sm:$0xff] }
 0x37f   :  { %1806 = vmatmul.f32.gmra.mxu3 %v2426_v12  ;;  %2081 = vmatmul.f32.gmra.mxu1 %v1845_v41 }
 0x380   :  { %v1646_v47 = vpop.f32.mrf.mxu2 }
 0x381   :  { %v1647_v33 = vadd.f32 %v1646_v47, %v1534_v17  ;;  %v3078_v17 = vpop.f32.mrf.mxu1 }
 0x382   :  { %v1759_v62 = vpop.f32.mrf.mxu3 }
 0x383   :  { %v1760_v63 = vadd.f32 %v1759_v62, %v1647_v33  ;;  %v3082_v47 = vpop.f32.mrf.mxu0 }
 0x385   :  { %v1847_v16 = vmax.f32 %v1760_v63, 0.0  ;;  %1696 = vmatmul.f32.gmra.mxu2 %v2427_v49  ;;  %2022 = vmatmul.f32.gmra.mxu0 %v1880_v32  ;;  %v1546_v49 = vadd.f32 %v2982_v39, %v2924_v54  ;;  %v1549_v54 = vadd.f32 %v2989_v24, %v2929_v42  ;;  %v2436_v39 = vld [vmem:[#allocation2 + $0x5c8] sm:$0xff]  ;;  %v1552_v42 = vadd.f32 %v2996_v29, %v2934_v1  ;;  %v2438_v24 = vld [vmem:[#allocation2 + $0x5f8] sm:$0xff] }
 0x387   :  { %1809 = vmatmul.f32.gmra.mxu3 %v2428_v40  ;;  %2084 = vmatmul.f32.gmra.mxu1 %v1847_v16  ;;  %v2433_v16 = vld [vmem:[#allocation2 + $0x590] sm:$0xff] }
 0x388   :  { %v1649_v36 = vpop.f32.mrf.mxu2 }
 0x389   :  { %v1650_v8 = vadd.f32 %v1649_v36, %v1537_v11  ;;  %v2434_v11 = vld [vmem:[#allocation2 + $0x598] sm:$0xff]  ;;  %v3087_v27 = vpop.f32.mrf.mxu1 }
 0x38a   :  { %v1762_v50 = vpop.f32.mrf.mxu3 }
 0x38b   :  { %v1763_v51 = vadd.f32 %v1762_v50, %v1650_v8  ;;  %v3218_v8 = vld [vmem:[#allocation15_spill] sm:$0xff] }
 0x38c   :  { %v1888_v50 = vmax.f32 %v3218_v8, 0.0  ;;  %v1558_v8 = vadd.f32 %v3010_v7, %v2942_v58 }
 0x38d   :  { %v1849_v18 = vmax.f32 %v1763_v51, 0.0  ;;  %1699 = vmatmul.f32.gmra.mxu2 %v2429_v3  ;;  %2025 = vmatmul.f32.gmra.mxu0 %v1882_v10  ;;  %v3090_v10 = vpop.f32.mrf.mxu0 }
 0x38f   :  { %1812 = vmatmul.f32.gmra.mxu3 %v2430_v59  ;;  %2087 = vmatmul.f32.gmra.mxu1 %v1849_v18  ;;  %v2435_v18 = vld [vmem:[#allocation2 + $0x5c0] sm:$0xff] }
 0x390   :  { %v1652_v53 = vpop.f32.mrf.mxu2 }
 0x391   :  { %v1653_v57 = vadd.f32 %v1652_v53, %v1540_v26  ;;  %v3094_v59 = vpop.f32.mrf.mxu1 }
 0x392   :  { %v1765_v21 = vpop.f32.mrf.mxu3 }
 0x393   :  { %v1766_v20 = vadd.f32 %v1765_v21, %v1653_v57  ;;  %v3219_v57 = vld [vmem:[#allocation16_spill] sm:$0xff] }
 0x394   :  { %v1890_v21 = vmax.f32 %v3219_v57, 0.0 }
 0x395   :  { %v1851_v41 = vmax.f32 %v1766_v20, 0.0  ;;  %1702 = vmatmul.f32.gmra.mxu2 %v2431_v37  ;;  %2028 = vmatmul.f32.gmra.mxu0 %v1884_v61  ;;  %v3097_v20 = vpop.f32.mrf.mxu0  ;;  %v2437_v37 = vld [vmem:[#allocation2 + $0x5f0] sm:$0xff] }
 0x397   :  { %1815 = vmatmul.f32.gmra.mxu3 %v2432_v28  ;;  %2090 = vmatmul.f32.gmra.mxu1 %v1851_v41 }
 0x398   :  { %v1655_v12 = vpop.f32.mrf.mxu2 }
 0x399   :  { %v1656_v33 = vadd.f32 %v1655_v12, %v1543_v13 }
 0x39a   :  { %v1768_v62 = vpop.f32.mrf.mxu3 }
 0x39b   :  { %v1769_v32 = vadd.f32 %v1768_v62, %v1656_v33  ;;  %v3101_v62 = vpop.f32.mrf.mxu1 }
 0x39d   :  { %v1853_v63 = vmax.f32 %v1769_v32, 0.0  ;;  %1705 = vmatmul.f32.gmra.mxu2 %v2433_v16  ;;  %2031 = vmatmul.f32.gmra.mxu0 %v1886_v46  ;;  %v1555_v32 = vadd.f32 %v3004_v55, %v2938_v48  ;;  %v3118_v58 = vpop.f32.mrf.mxu0 }
 0x39f   :  { %1818 = vmatmul.f32.gmra.mxu3 %v2434_v11  ;;  %2093 = vmatmul.f32.gmra.mxu1 %v1853_v63  ;;  %v3108_v63 = vld [vmem:[%s3202_s4] ss:$0 sm:$0xff]  ;;  %s2577_s4 = smov [#allocation10]  }
 0x3a0   :  { %v1658_v14 = vpop.f32.mrf.mxu2  ;;  %s2190_s17 = sshll.u32 %s2577_s4, 4  ;;  %s2191_s17 = int_to_ptr.vmem [resolvable:$true] %s2190_s17 }
 0x3a1   :  { %v1659_v40 = vadd.f32 %v1658_v14, %v1546_v49  ;;  %v1946_v49 = vadd.f32 %v3108_v63, %v3044_v52  ;;  %v1561_v52 = vadd.f32 %v3017_v34, %v2948_v6 }
 0x3a2   :  { %v1771_v36 = vpop.f32.mrf.mxu3 }
 0x3a3   :  { %v1772_v60 = vadd.f32 %v1771_v36, %v1659_v40 }
 0x3a5   :  { %v1855_v51 = vmax.f32 %v1772_v60, 0.0  ;;  %1708 = vmatmul.f32.gmra.mxu2 %v2435_v18  ;;  %2034 = vmatmul.f32.gmra.mxu0 %v1888_v50  ;;  %v1949_v60 = vadd.f32 %v3108_v63, %v3050_v44 }
 0x3a7   :  { %1821 = vmatmul.f32.gmra.mxu3 %v2436_v39  ;;  %2096 = vmatmul.f32.gmra.mxu1 %v1855_v51 }
 0x3a8   :  { %v1661_v3 = vpop.f32.mrf.mxu2 }
 0x3a9   :  { %v1662_v26 = vadd.f32 %v1661_v3, %v1549_v54 }
 0x3aa   :  { %v1774_v53 = vpop.f32.mrf.mxu3 }
 0x3ab   :  { %v1775_v61 = vadd.f32 %v1774_v53, %v1662_v26  ;;  %v1952_v53 = vadd.f32 %v3108_v63, %v3059_v19 }
 0x3ad   :  { %v1857_v41 = vmax.f32 %v1775_v61, 0.0  ;;  %1711 = vmatmul.f32.gmra.mxu2 %v2437_v37  ;;  %2037 = vmatmul.f32.gmra.mxu0 %v1890_v21 }
 0x3af   :  { %1824 = vmatmul.f32.gmra.mxu3 %v2438_v24  ;;  %2099 = vmatmul.f32.gmra.mxu1 %v1857_v41  ;;  %v3220_v41 = vld [vmem:[#allocation17_spill] sm:$0xff]  ;;  %v1955_v24 = vadd.f32 %v3108_v63, %v3066_v5 }
 0x3b0   :  { %v1664_v13 = vpop.f32.mrf.mxu2  ;;  %v1564_v37 = vadd.f32 %v3024_v43, %v3220_v41 }
 0x3b1   :  { %v1665_v28 = vadd.f32 %v1664_v13, %v1552_v42 }
 0x3b2   :  { %v1777_v12 = vpop.f32.mrf.mxu3 }
 0x3b3   :  { %v1778_v33 = vadd.f32 %v1777_v12, %v1665_v28  ;;  %v3126_v28 = vpop.f32.mrf.mxu0 }
 0x3b5   :  { %v1859_v46 = vmax.f32 %v1778_v33, 0.0 }
 0x3b7   :  { %2102 = vmatmul.f32.gmra.mxu1 %v1859_v46  ;;  %v3221_v46 = vld [vmem:[#allocation18_spill] sm:$0xff] }
 0x3b8   :  { %v1667_v1 = vpop.f32.mrf.mxu2 }
 0x3b9   :  { %v1668_v29 = vadd.f32 %v1667_v1, %v1555_v32  ;;  %v1567_v32 = vadd.f32 %v3028_v25, %v3221_v46 }
 0x3ba   :  { %v1780_v16 = vpop.f32.mrf.mxu3 }
 0x3bb   :  { %v1781_v11 = vadd.f32 %v1780_v16, %v1668_v29  ;;  %v1958_v16 = vadd.f32 %v3108_v63, %v3075_v4 }
 0x3bc   :  { %v2058_v14 = vpop.f32.mrf.mxu1 }
 0x3bd   :  { %v1861_v40 = vmax.f32 %v1781_v11, 0.0  ;;  %v2059_v36 = vadd.f32 %v2058_v14, %v1946_v49 }
 0x3bf   :  { %2154 = vst [vmem:[#allocation10] sm:$0xff] %v2059_v36  ;;  %2105 = vmatmul.f32.gmra.mxu1 %v1861_v40  ;;  %v3132_v40 = vpop.f32.mrf.mxu0  ;;  %v1570_v36 = vadd.f32 %v3032_v0, %v2964_v31 }
 0x3c0   :  { %v1670_v48 = vpop.f32.mrf.mxu2 }
 0x3c1   :  { %v1671_v55 = vadd.f32 %v1670_v48, %v1558_v8 }
 0x3c2   :  { %v1783_v50 = vpop.f32.mrf.mxu3 }
 0x3c3   :  { %v1784_v51 = vadd.f32 %v1783_v50, %v1671_v55  ;;  %v1961_v55 = vadd.f32 %v3108_v63, %v3082_v47 }
 0x3c4   :  { %v2061_v18 = vpop.f32.mrf.mxu1 }
 0x3c5   :  { %v1863_v54 = vmax.f32 %v1784_v51, 0.0  ;;  %v2062_v39 = vadd.f32 %v2061_v18, %v1949_v60  ;;  %v3222_v18 = vld [vmem:[#allocation19_spill] sm:$0xff] }
 0x3c7   :  { %2155 = vst [vmem:[#allocation10 + $0x8] sm:$0xff] %v2062_v39  ;;  %2108 = vmatmul.f32.gmra.mxu1 %v1863_v54  ;;  %v1573_v54 = vadd.f32 %v3037_v23, %v3222_v18  ;;  %v3140_v39 = vpop.f32.mrf.mxu0 }
 0x3c8   :  { %v1673_v3 = vpop.f32.mrf.mxu2 }
 0x3c9   :  { %v1674_v26 = vadd.f32 %v1673_v3, %v1561_v52  ;;  %v1964_v3 = vadd.f32 %v3108_v63, %v3090_v10 }
 0x3ca   :  { %v1786_v7 = vpop.f32.mrf.mxu3 }
 0x3cb   :  { %v1787_v57 = vadd.f32 %v1786_v7, %v1674_v26 }
 0x3cc   :  { %v2064_v21 = vpop.f32.mrf.mxu1 }
 0x3cd   :  { %v1865_v44 = vmax.f32 %v1787_v57, 0.0  ;;  %v2065_v61 = vadd.f32 %v2064_v21, %v1952_v53  ;;  %v3223_v57 = vld [vmem:[#allocation20_spill] sm:$0xff] }
 0x3ce   :  { %v1576_v21 = vadd.f32 %v3042_v22, %v3223_v57 }
 0x3cf   :  { %2156 = vst [vmem:[#allocation10 + $0x10] sm:$0xff] %v2065_v61  ;;  %2111 = vmatmul.f32.gmra.mxu1 %v1865_v44  ;;  %v1981_v61 = vpop.f32.mrf.mxu0 }
 0x3d0   :  { %v1676_v6 = vpop.f32.mrf.mxu2 }
 0x3d1   :  { %v1677_v34 = vadd.f32 %v1676_v6, %v1564_v37  ;;  %v1967_v37 = vadd.f32 %v3108_v63, %v3097_v20 }
 0x3d2   :  { %v1789_v42 = vpop.f32.mrf.mxu3 }
 0x3d3   :  { %v1790_v13 = vadd.f32 %v1789_v42, %v1677_v34 }
 0x3d4   :  { %v2067_v12 = vpop.f32.mrf.mxu1 }
 0x3d5   :  { %v1867_v19 = vmax.f32 %v1790_v13, 0.0  ;;  %v2068_v33 = vadd.f32 %v2067_v12, %v1955_v24  ;;  %v3224_v24 = vld [vmem:[#allocation21_spill] sm:$0xff] }
 0x3d6   :  { %v1579_v13 = vadd.f32 %v3048_v9, %v3224_v24 }
 0x3d7   :  { %2157 = vst [vmem:[#allocation10 + $0x18] sm:$0xff] %v2068_v33  ;;  %2114 = vmatmul.f32.gmra.mxu1 %v1867_v19  ;;  %v1970_v33 = vadd.f32 %v3108_v63, %v3118_v58 }
 0x3d8   :  { %v1679_v43 = vpop.f32.mrf.mxu2 }
 0x3d9   :  { %v1680_v1 = vadd.f32 %v1679_v43, %v1567_v32  ;;  %v1984_v32 = vpop.f32.mrf.mxu0 }
 0x3da   :  { %v1792_v29 = vpop.f32.mrf.mxu3  ;;  %v1985_v24 = vadd.f32 %v3108_v63, %v1984_v32 }
 0x3db   :  { %v1793_v49 = vadd.f32 %v1792_v29, %v1680_v1  ;;  %v1582_v29 = vadd.f32 %v3056_v2, %v2986_v56 }
 0x3dc   :  { %v2070_v11 = vpop.f32.mrf.mxu1 }
 0x3dd   :  { %v1869_v5 = vmax.f32 %v1793_v49, 0.0  ;;  %v2071_v14 = vadd.f32 %v2070_v11, %v1958_v16  ;;  %v1973_v11 = vadd.f32 %v3108_v63, %v3126_v28 }
 0x3df   :  { %2158 = vst [vmem:[#allocation10 + $0x20] sm:$0xff] %v2071_v14  ;;  %2117 = vmatmul.f32.gmra.mxu1 %v1869_v5 }
 0x3e0   :  { %v1682_v25 = vpop.f32.mrf.mxu2 }
 0x3e1   :  { %v1683_v8 = vadd.f32 %v1682_v25, %v1570_v36  ;;  %v1987_v25 = vpop.f32.mrf.mxu0 }
 0x3e2   :  { %v1795_v48 = vpop.f32.mrf.mxu3 }
 0x3e3   :  { %v1796_v50 = vadd.f32 %v1795_v48, %v1683_v8  ;;  %v1585_v8 = vadd.f32 %v3063_v38, %v2992_v30 }
 0x3e4   :  { %v2073_v60 = vpop.f32.mrf.mxu1 }
 0x3e5   :  { %v1871_v4 = vmax.f32 %v1796_v50, 0.0  ;;  %v2074_v51 = vadd.f32 %v2073_v60, %v1961_v55  ;;  %v1976_v55 = vadd.f32 %v3108_v63, %v3132_v40 }
 0x3e7   :  { %2159 = vst [vmem:[#allocation10 + $0x28] sm:$0xff] %v2074_v51  ;;  %2120 = vmatmul.f32.gmra.mxu1 %v1871_v4  ;;  %v3225_v51 = vld [vmem:[#allocation22_spill] sm:$0xff] }
 0x3e8   :  { %v1685_v31 = vpop.f32.mrf.mxu2  ;;  %v1588_v18 = vadd.f32 %v3071_v45, %v3225_v51 }
 0x3e9   :  { %v1686_v0 = vadd.f32 %v1685_v31, %v1573_v54  ;;  %v1990_v54 = vpop.f32.mrf.mxu0 }
 0x3ea   :  { %v1798_v52 = vpop.f32.mrf.mxu3 }
 0x3eb   :  { %v1799_v26 = vadd.f32 %v1798_v52, %v1686_v0  ;;  %v1979_v0 = vadd.f32 %v3108_v63, %v3140_v39  ;;  %v3227_v39 = vld [vmem:[#allocation24_spill] sm:$0xff] }
 0x3ec   :  { %v2076_v7 = vpop.f32.mrf.mxu1 }
 0x3ed   :  { %v1873_v47 = vmax.f32 %v1799_v26, 0.0  ;;  %v2077_v53 = vadd.f32 %v2076_v7, %v1964_v3  ;;  %v3226_v7 = vld [vmem:[#allocation23_spill] sm:$0xff] }
 0x3ef   :  { %2160 = vst [vmem:[#allocation10 + $0x30] sm:$0xff] %v2077_v53  ;;  %2123 = vmatmul.f32.gmra.mxu1 %v1873_v47  ;;  %v1591_v47 = vadd.f32 %v3078_v17, %v3226_v7 }
 0x3f0   :  { %v1688_v23 = vpop.f32.mrf.mxu2 }
 0x3f1   :  { %v1689_v44 = vadd.f32 %v1688_v23, %v1576_v21  ;;  %v1993_v57 = vpop.f32.mrf.mxu0  ;;  %v1982_v23 = vadd.f32 %v3108_v63, %v1981_v61  ;;  %v1597_v61 = vadd.f32 %v3094_v59, %v3014_v35  ;;  %v1991_v59 = vadd.f32 %v3108_v63, %v1990_v54 }
 0x3f2   :  { %v1801_v41 = vpop.f32.mrf.mxu3 }
 0x3f3   :  { %v1802_v6 = vadd.f32 %v1801_v41, %v1689_v44 }
 0x3f4   :  { %v2079_v34 = vpop.f32.mrf.mxu1 }
 0x3f5   :  { %v1875_v42 = vmax.f32 %v1802_v6, 0.0  ;;  %v2080_v10 = vadd.f32 %v2079_v34, %v1967_v37  ;;  %v1594_v34 = vadd.f32 %v3087_v27, %v3227_v39 }
 0x3f7   :  { %2161 = vst [vmem:[#allocation10 + $0x38] sm:$0xff] %v2080_v10  ;;  %2126 = vmatmul.f32.gmra.mxu1 %v1875_v42 }
 0x3f8   :  { %v1691_v12 = vpop.f32.mrf.mxu2 }
 0x3f9   :  { %v1692_v22 = vadd.f32 %v1691_v12, %v1579_v13  ;;  %v1996_v12 = vpop.f32.mrf.mxu0 }
 0x3fa   :  { %v1804_v19 = vpop.f32.mrf.mxu3 }
 0x3fb   :  { %v1805_v46 = vadd.f32 %v1804_v19, %v1692_v22 }
 0x3fc   :  { %v2082_v43 = vpop.f32.mrf.mxu1 }
 0x3fd   :  { %v1877_v1 = vmax.f32 %v1805_v46, 0.0  ;;  %v2083_v20 = vadd.f32 %v2082_v43, %v1970_v33 }
 0x3ff   :  { %2162 = vst [vmem:[#allocation10 + $0x40] sm:$0xff] %v2083_v20  ;;  %2129 = vmatmul.f32.gmra.mxu1 %v1877_v1  ;;  %v1988_v1 = vadd.f32 %v3108_v63, %v1987_v25 }
 0x400   :  { %v1694_v16 = vpop.f32.mrf.mxu2 }
 0x401   :  { %v1695_v9 = vadd.f32 %v1694_v16, %v1582_v29  ;;  %v1999_v32 = vpop.f32.mrf.mxu0 }
 0x402   :  { %v1807_v49 = vpop.f32.mrf.mxu3 }
 0x403   :  { %v1808_v5 = vadd.f32 %v1807_v49, %v1695_v9  ;;  %v1600_v49 = vadd.f32 %v3101_v62, %v3020_v15  ;;  %v1997_v62 = vadd.f32 %v3108_v63, %v1996_v12 }
 0x404   :  { %v2085_v14 = vpop.f32.mrf.mxu1 }
 0x405   :  { %v1879_v36 = vmax.f32 %v1808_v5, 0.0  ;;  %v2086_v58 = vadd.f32 %v2085_v14, %v1973_v11 }
 0x407   :  { %2163 = vst [vmem:[#allocation10 + $0x48] sm:$0xff] %v2086_v58  ;;  %2132 = vmatmul.f32.gmra.mxu1 %v1879_v36 }
 0x408   :  { %v1697_v48 = vpop.f32.mrf.mxu2 }
 0x409   :  { %v1698_v56 = vadd.f32 %v1697_v48, %v1585_v8  ;;  %v2002_v25 = vpop.f32.mrf.mxu0  ;;  %v1994_v48 = vadd.f32 %v3108_v63, %v1993_v57 }
 0x40a   :  { %v1810_v2 = vpop.f32.mrf.mxu3 }
 0x40b   :  { %v1811_v50 = vadd.f32 %v1810_v2, %v1698_v56 }
 0x40c   :  { %v2088_v60 = vpop.f32.mrf.mxu1 }
 0x40d   :  { %v1881_v4 = vmax.f32 %v1811_v50, 0.0  ;;  %v2089_v28 = vadd.f32 %v2088_v60, %v1976_v55  ;;  %v2000_v60 = vadd.f32 %v3108_v63, %v1999_v32 }
 0x40f   :  { %2164 = vst [vmem:[#allocation10 + $0x50] sm:$0xff] %v2089_v28  ;;  %2135 = vmatmul.f32.gmra.mxu1 %v1881_v4 }
 0x410   :  { %v1700_v31 = vpop.f32.mrf.mxu2 }
 0x411   :  { %v1701_v30 = vadd.f32 %v1700_v31, %v1588_v18  ;;  %v2005_v15 = vpop.f32.mrf.mxu0  ;;  %v2003_v18 = vadd.f32 %v3108_v63, %v2002_v25 }
 0x412   :  { %v1813_v38 = vpop.f32.mrf.mxu3 }
 0x413   :  { %v1814_v52 = vadd.f32 %v1813_v38, %v1701_v30  ;;  %v2006_v38 = vadd.f32 %v3108_v63, %v2005_v15 }
 0x414   :  { %v2091_v3 = vpop.f32.mrf.mxu1 }
 0x415   :  { %v1883_v26 = vmax.f32 %v1814_v52, 0.0  ;;  %v2092_v40 = vadd.f32 %v2091_v3, %v1979_v0 }
 0x417   :  { %2165 = vst [vmem:[#allocation10 + $0x58] sm:$0xff] %v2092_v40  ;;  %2138 = vmatmul.f32.gmra.mxu1 %v1883_v26 }
 0x418   :  { %v1703_v53 = vpop.f32.mrf.mxu2 }
 0x419   :  { %v1704_v45 = vadd.f32 %v1703_v53, %v1591_v47  ;;  %v2008_v4 = vpop.f32.mrf.mxu0 }
 0x41a   :  { %v1816_v21 = vpop.f32.mrf.mxu3  ;;  %v2009_v26 = vadd.f32 %v3108_v63, %v2008_v4 }
 0x41b   :  { %v1817_v44 = vadd.f32 %v1816_v21, %v1704_v45 }
 0x41c   :  { %v2094_v41 = vpop.f32.mrf.mxu1 }
 0x41d   :  { %v1885_v37 = vmax.f32 %v1817_v44, 0.0  ;;  %v2095_v6 = vadd.f32 %v2094_v41, %v1982_v23 }
 0x41f   :  { %2166 = vst [vmem:[#allocation10 + $0x60] sm:$0xff] %v2095_v6  ;;  %2141 = vmatmul.f32.gmra.mxu1 %v1885_v37 }
 0x420   :  { %v1706_v42 = vpop.f32.mrf.mxu2 }
 0x421   :  { %v1707_v10 = vadd.f32 %v1706_v42, %v1594_v34  ;;  %v2011_v30 = vpop.f32.mrf.mxu0 }
 0x422   :  { %v1819_v17 = vpop.f32.mrf.mxu3  ;;  %v2012_v53 = vadd.f32 %v3108_v63, %v2011_v30 }
 0x423   :  { %v1820_v13 = vadd.f32 %v1819_v17, %v1707_v10 }
 0x424   :  { %v2097_v22 = vpop.f32.mrf.mxu1 }
 0x425   :  { %v1887_v19 = vmax.f32 %v1820_v13, 0.0  ;;  %v2098_v33 = vadd.f32 %v2097_v22, %v1985_v24 }
 0x427   :  { %2167 = vst [vmem:[#allocation10 + $0x68] sm:$0xff] %v2098_v33  ;;  %2144 = vmatmul.f32.gmra.mxu1 %v1887_v19 }
 0x428   :  { %v1709_v46 = vpop.f32.mrf.mxu2 }
 0x429   :  { %v1710_v43 = vadd.f32 %v1709_v46, %v1597_v61  ;;  %v2014_v3 = vpop.f32.mrf.mxu0 }
 0x42a   :  { %v1822_v27 = vpop.f32.mrf.mxu3  ;;  %v2015_v21 = vadd.f32 %v3108_v63, %v2014_v3 }
 0x42b   :  { %v1823_v20 = vadd.f32 %v1822_v27, %v1710_v43 }
 0x42c   :  { %v2100_v29 = vpop.f32.mrf.mxu1 }
 0x42d   :  { %v1889_v16 = vmax.f32 %v1823_v20, 0.0  ;;  %v2101_v9 = vadd.f32 %v2100_v29, %v1988_v1 }
 0x42f   :  { %2168 = vst [vmem:[#allocation10 + $0x70] sm:$0xff] %v2101_v9  ;;  %2147 = vmatmul.f32.gmra.mxu1 %v1889_v16 }
 0x430   :  { %v1712_v11 = vpop.f32.mrf.mxu2 }
 0x431   :  { %v1713_v5 = vadd.f32 %v1712_v11, %v1600_v49  ;;  %v2017_v47 = vpop.f32.mrf.mxu0 }
 0x432   :  { %v1825_v35 = vpop.f32.mrf.mxu3  ;;  %v2018_v37 = vadd.f32 %v3108_v63, %v2017_v47 }
 0x433   :  { %v1826_v14 = vadd.f32 %v1825_v35, %v1713_v5 }
 0x434   :  { %v2103_v36 = vpop.f32.mrf.mxu1 }
 0x435   :  { %v1891_v58 = vmax.f32 %v1826_v14, 0.0  ;;  %v2104_v8 = vadd.f32 %v2103_v36, %v1991_v59 }
 0x437   :  { %2169 = vst [vmem:[#allocation10 + $0x78] sm:$0xff] %v2104_v8  ;;  %2150 = vmatmul.f32.gmra.mxu1 %v1891_v58 }
 0x439   :  { %v2020_v23 = vpop.f32.mrf.mxu0 }
 0x43a   :  { %v2021_v42 = vadd.f32 %v3108_v63, %v2020_v23 }
 0x43c   :  { %v2106_v56 = vpop.f32.mrf.mxu1 }
 0x43d   :  { %v2107_v2 = vadd.f32 %v2106_v56, %v1994_v48 }
 0x43f   :  { %2170 = vst [vmem:[#allocation10 + $0x80] sm:$0xff] %v2107_v2 }
 0x441   :  { %v2023_v34 = vpop.f32.mrf.mxu0 }
 0x442   :  { %v2024_v13 = vadd.f32 %v3108_v63, %v2023_v34 }
 0x444   :  { %v2109_v55 = vpop.f32.mrf.mxu1 }
 0x445   :  { %v2110_v50 = vadd.f32 %v2109_v55, %v1997_v62 }
 0x447   :  { %2171 = vst [vmem:[#allocation10 + $0x88] sm:$0xff] %v2110_v50 }
 0x449   :  { %v2026_v24 = vpop.f32.mrf.mxu0 }
 0x44a   :  { %v2027_v33 = vadd.f32 %v3108_v63, %v2026_v24 }
 0x44c   :  { %v2112_v28 = vpop.f32.mrf.mxu1 }
 0x44d   :  { %v2113_v51 = vadd.f32 %v2112_v28, %v2000_v60 }
 0x44f   :  { %2172 = vst [vmem:[#allocation10 + $0x90] sm:$0xff] %v2113_v51 }
 0x451   :  { %v2029_v19 = vpop.f32.mrf.mxu0 }
 0x452   :  { %v2030_v43 = vadd.f32 %v3108_v63, %v2029_v19 }
 0x454   :  { %v2115_v54 = vpop.f32.mrf.mxu1 }
 0x455   :  { %v2116_v31 = vadd.f32 %v2115_v54, %v2003_v18 }
 0x457   :  { %2173 = vst [vmem:[#allocation10 + $0x98] sm:$0xff] %v2116_v31 }
 0x459   :  { %v2032_v27 = vpop.f32.mrf.mxu0 }
 0x45a   :  { %v2033_v29 = vadd.f32 %v3108_v63, %v2032_v27 }
 0x45c   :  { %v2118_v0 = vpop.f32.mrf.mxu1 }
 0x45d   :  { %v2119_v52 = vadd.f32 %v2118_v0, %v2006_v38 }
 0x45f   :  { %2174 = vst [vmem:[#allocation10 + $0xa0] sm:$0xff] %v2119_v52 }
 0x461   :  { %v2035_v32 = vpop.f32.mrf.mxu0 }
 0x462   :  { %v2036_v49 = vadd.f32 %v3108_v63, %v2035_v32 }
 0x464   :  { %v2121_v40 = vpop.f32.mrf.mxu1 }
 0x465   :  { %v2122_v7 = vadd.f32 %v2121_v40, %v2009_v26 }
 0x467   :  { %2175 = vst [vmem:[#allocation10 + $0xa8] sm:$0xff] %v2122_v7 }
 0x469   :  { %v2038_v35 = vpop.f32.mrf.mxu0 }
 0x46a   :  { %v2039_v59 = vadd.f32 %v3108_v63, %v2038_v35 }
 0x46c   :  { %v2124_v45 = vpop.f32.mrf.mxu1 }
 0x46d   :  { %v2125_v57 = vadd.f32 %v2124_v45, %v2012_v53 }
 0x46f   :  { %2176 = vst [vmem:[#allocation10 + $0xb0] sm:$0xff] %v2125_v57 }
 0x474   :  { %v2127_v44 = vpop.f32.mrf.mxu1 }
 0x475   :  { %v2128_v41 = vadd.f32 %v2127_v44, %v2015_v21 }
 0x477   :  { %2177 = vst [vmem:[#allocation10 + $0xb8] sm:$0xff] %v2128_v41 }
 0x47c   :  { %v2130_v6 = vpop.f32.mrf.mxu1 }
 0x47d   :  { %v2131_v39 = vadd.f32 %v2130_v6, %v2018_v37 }
 0x47f   :  { %2178 = vst [vmem:[#allocation10 + $0xc0] sm:$0xff] %v2131_v39 }
 0x484   :  { %v2133_v10 = vpop.f32.mrf.mxu1 }
 0x485   :  { %v2134_v17 = vadd.f32 %v2133_v10, %v2021_v42 }
 0x487   :  { %2179 = vst [vmem:[#allocation10 + $0xc8] sm:$0xff] %v2134_v17 }
 0x48c   :  { %v2136_v12 = vpop.f32.mrf.mxu1 }
 0x48d   :  { %v2137_v22 = vadd.f32 %v2136_v12, %v2024_v13 }
 0x48f   :  { %2180 = vst [vmem:[#allocation10 + $0xd0] sm:$0xff] %v2137_v22 }
 0x494   :  { %v2139_v61 = vpop.f32.mrf.mxu1 }
 0x495   :  { %v2140_v46 = vadd.f32 %v2139_v61, %v2027_v33 }
 0x497   :  { %2181 = vst [vmem:[#allocation10 + $0xd8] sm:$0xff] %v2140_v46 }
 0x49c   :  { %v2142_v1 = vpop.f32.mrf.mxu1 }
 0x49d   :  { %v2143_v20 = vadd.f32 %v2142_v1, %v2030_v43 }
 0x49f   :  { %2182 = vst [vmem:[#allocation10 + $0xe0] sm:$0xff] %v2143_v20 }
 0x4a4   :  { %v2145_v16 = vpop.f32.mrf.mxu1 }
 0x4a5   :  { %v2146_v9 = vadd.f32 %v2145_v16, %v2033_v29 }
 0x4a7   :  { %2183 = vst [vmem:[#allocation10 + $0xe8] sm:$0xff] %v2146_v9 }
 0x4ac   :  { %v2148_v11 = vpop.f32.mrf.mxu1 }
 0x4ad   :  { %v2149_v5 = vadd.f32 %v2148_v11, %v2036_v49 }
 0x4af   :  { %2184 = vst [vmem:[#allocation10 + $0xf0] sm:$0xff] %v2149_v5 }
 0x4b4   :  { %v2151_v14 = vpop.f32.mrf.mxu1 }
 0x4b5   :  { %v2152_v36 = vadd.f32 %v2151_v14, %v2039_v59 }
 0x4b7   :  { %2185 = vst [vmem:[#allocation10 + $0xf8] sm:$0xff] %v2152_v36 }
 0x4b8   :  { %2198 = dma.vmem_to_hbm [thread:$0]  %s2191_s17, 4096, %s2193_s20, [#allocation4], %s2575_s15, %s2575_s15, %s2576_s16  }
 0x4b9   :  { %2565 = dma.done.wait [#allocation4], 4096  }
 0x4ba   :  { %2566 = vsyncadd [#allocation4], 4294963200 }
 0x4bb   :  { %2203 = vsyncpa [#allocation3], 1 }
 0x4bc   :  { %2204 = vsyncpa [#allocation6], 1 }
 0x4bd   :  { %2205 = vsyncpa [#allocation9], 1 }
 0x4be   :  { %2206 = vsyncpa [#allocation4], 1 }

</bundles_post_ra>
